<compile_context>
chip_gen: v7x
topology: tpu7x:2x2x1
jax: 0.10.0
libtpu: 0.0.40
codegen_flags: <defaults>
</compile_context>

<pallas_src>
import functools

import jax
import jax.numpy as jnp
from jax.experimental import pallas as pl
from jax.experimental.pallas import tpu as pltpu

KSIZE = 7
PAD = 3
RPAD = 8      # sublane-aligned halo (>= PAD) above/below the interior
LPAD = 128    # lane-aligned halo (>= PAD) left/right of the interior


def _round_up(n, m):
    return ((n + m - 1) // m) * m


def _pick_channel_chunk(C, H, W, budget_bytes=512 * 1024, max_tc=64):
    """Largest divisor of C (<= max_tc) whose lane-padded f32 block fits the budget."""
    per_ch = _round_up(H, 8) * _round_up(W, 128) * 4
    best = 1
    for tc in range(1, min(C, max_tc) + 1):
        if C % tc == 0 and tc * per_ch <= budget_bytes:
            best = tc
    return best


def _sa_kernel(w_ref, x_ref, o_ref, asum_ref, amax_ref, *, H, W, inv_c):
    # w_ref   : (98,) f32 in SMEM (scalar prefetch). [0:49]=avg-ch, [49:98]=max-ch.
    # x_ref   : (1, tc, H, W) VMEM input chunk for this (batch, chunk) step.
    # o_ref   : (1, 1, H, W)  VMEM output block (written on the last chunk only).
    # asum_ref/amax_ref : (H + 2*RPAD, W + 2*LPAD) f32 VMEM scratch holding the
    #     zero-padded running channel-sum / channel-max planes.
    c = pl.program_id(1)
    num_c = pl.num_programs(1)
    tc = x_ref.shape[1]

    # ---- fused single-pass channel reduction over this chunk ---------------
    p0 = x_ref[0, 0].astype(jnp.float32)                       # (H, W)
    psum, pmax = p0, p0

    if tc > 1:
        if tc <= 16:
            # static unroll: each plane read once, feeds both accumulators
            for i in range(1, tc):
                p = x_ref[0, i].astype(jnp.float32)
                psum = psum + p
                pmax = jnp.maximum(pmax, p)
        else:
            def body(i, carry):
                s, m = carry
                p = x_ref[0, i].astype(jnp.float32)
                return s + p, jnp.maximum(m, p)

            psum, pmax = jax.lax.fori_loop(1, tc, body, (psum, pmax), unroll=4)

    rows = pl.ds(RPAD, H)        # tile-aligned interior window of the scratch
    cols = pl.ds(LPAD, W)

    @pl.when(c == 0)
    def _init():
        # Zero halo == the conv's zero padding of the reduced planes.
        asum_ref[...] = jnp.zeros_like(asum_ref)
        amax_ref[...] = jnp.zeros_like(amax_ref)
        asum_ref[rows, cols] = psum
        amax_ref[rows, cols] = pmax

    @pl.when(c > 0)
    def _accumulate():
        asum_ref[rows, cols] = asum_ref[rows, cols] + psum
        amax_ref[rows, cols] = jnp.maximum(amax_ref[rows, cols], pmax)

    @pl.when(c == num_c - 1)
    def _finalize():
        # 7x7 conv over [avg, max] + sigmoid.  Interior sits at (RPAD, LPAD);
        # conv tap (kh, kw) for output (h, w) reads padded coord (h+kh, w+kw),
        # i.e. scratch row RPAD - PAD + kh + h, col LPAD - PAD + kw + w.
        accs = [jnp.zeros((H, W), jnp.float32) for _ in range(4)]
        t = 0
        for kh in range(KSIZE):
            r0 = RPAD - PAD + kh
            for kw in range(KSIZE):
                q0 = LPAD - PAD + kw
                w_avg = w_ref[kh * KSIZE + kw] * inv_c          # fold mean's 1/C
                w_max = w_ref[KSIZE * KSIZE + kh * KSIZE + kw]
                a_win = asum_ref[pl.ds(r0, H), pl.ds(q0, W)]
                m_win = amax_ref[pl.ds(r0, H), pl.ds(q0, W)]
                accs[t % 4] = accs[t % 4] + w_avg * a_win
                accs[(t + 1) % 4] = accs[(t + 1) % 4] + w_max * m_win
                t += 2
        acc = (accs[0] + accs[1]) + (accs[2] + accs[3])
        o_ref[0, 0] = jax.nn.sigmoid(acc).astype(o_ref.dtype)


def spatial_attention(x, weight):
    """x: (B, C, H, W); weight: (2, 7, 7) = Conv2d(2, 1, 7, bias=False).weight[0].

    Returns sigmoid(conv7x7(cat([mean_C(x), max_C(x)]), pad=3)): (B, 1, H, W).
    """
    B, C, H, W = x.shape
    assert weight.shape == (2, KSIZE, KSIZE)

    tc = _pick_channel_chunk(C, H, W)
    ct = C // tc
    w_flat = weight.astype(jnp.float32).reshape(2 * KSIZE * KSIZE)

    kernel = functools.partial(_sa_kernel, H=H, W=W, inv_c=1.0 / C)

    hp = H + 2 * RPAD
    wp = W + 2 * LPAD

    itemsize = x.dtype.itemsize
    cost = pl.CostEstimate(
        flops=B * (2 * C * H * W + 4 * KSIZE * KSIZE * H * W),
        transcendentals=B * H * W,                       # sigmoid
        bytes_accessed=(x.size + B * H * W) * itemsize + 2 * KSIZE * KSIZE * 4,
    )

    return pl.pallas_call(
        kernel,
        out_shape=jax.ShapeDtypeStruct((B, 1, H, W), x.dtype),
        grid_spec=pltpu.PrefetchScalarGridSpec(
            num_scalar_prefetch=1,                       # conv weight -> SMEM
            grid=(B, ct),
            in_specs=[pl.BlockSpec((1, tc, H, W), lambda b, c, w: (b, c, 0, 0))],
            out_specs=pl.BlockSpec((1, 1, H, W), lambda b, c, w: (b, 0, 0, 0)),
            scratch_shapes=[pltpu.VMEM((hp, wp), jnp.float32),
                            pltpu.VMEM((hp, wp), jnp.float32)],
        ),
        compiler_params=pltpu.CompilerParams(
            dimension_semantics=("parallel", "arbitrary")),
        cost_estimate=cost,
    )(w_flat, x)


def reference(x, weight):
    # pure-JAX reference of the PyTorch forward
    avg = jnp.mean(x, axis=1, keepdims=True)
    mx = jnp.max(x, axis=1, keepdims=True)
    inp = jnp.concatenate([avg, mx], axis=1)             # (B, 2, H, W)
    w = weight[None]                                     # (1, 2, 7, 7) OIHW
    y = jax.lax.conv_general_dilated(
        inp, w, window_strides=(1, 1), padding=((PAD, PAD), (PAD, PAD)),
        dimension_numbers=("NCHW", "OIHW", "NCHW"))
    return jax.nn.sigmoid(y)


if __name__ == "__main__":
    key = jax.random.PRNGKey(0)
    kx, kw = jax.random.split(key)

    B, C, H, W = 2, 4, 16, 16
    x = jax.random.normal(kx, (B, C, H, W), dtype=jnp.float32)

    # deterministic Conv2d(2, 1, 7, bias=False) weight init (kaiming-uniform style)
    fan_in = 2 * KSIZE * KSIZE
    bound = 1.0 / jnp.sqrt(fan_in)
    weight = jax.random.uniform(kw, (2, KSIZE, KSIZE), jnp.float32,
                                minval=-bound, maxval=bound)

    out = jax.block_until_ready(spatial_attention(x, weight))
    ref = jax.block_until_ready(reference(x, weight))

    assert out.shape == (B, 1, H, W)
    assert jnp.allclose(out, ref, atol=1e-5, rtol=1e-5), "mismatch vs JAX reference"

    print("KERNEL_OK")
</pallas_src>

<mosaic_0001>
module attributes {stable_mosaic.version = 11 : i64} {
  func.func @_sa_kernel(%arg0: i32, %arg1: i32, %arg2: memref<98xf32, #tpu.memory_space<smem>>, %arg3: memref<1x4x16x16xf32, #tpu.memory_space<vmem>>, %arg4: memref<1x1x16x16xf32, #tpu.memory_space<vmem>>, %arg5: memref<32x272xf32, #tpu.memory_space<vmem>>, %arg6: memref<32x272xf32, #tpu.memory_space<vmem>>) attributes {dimension_semantics = [#tpu.dimension_semantics<parallel>, #tpu.dimension_semantics<arbitrary>], iteration_bounds = array<i64: 2, 1>, scalar_prefetch = 1 : i64, scratch_operands = 2 : i64, tpu.core_type = #tpu.core_type<tc>, window_params = [{transform_indices = @transform_0, window_bounds = array<i64: 1, 4, 16, 16>}, {transform_indices = @transform_1, window_bounds = array<i64: 1, 1, 16, 16>}]} {
    %c0 = arith.constant 0 : index
    %c0_0 = arith.constant 0 : index
    %c0_1 = arith.constant 0 : index
    %c0_2 = arith.constant 0 : index
    %0 = vector.load %arg3[%c0, %c0_0, %c0_1, %c0_2] : memref<1x4x16x16xf32, #tpu.memory_space<vmem>>, vector<1x1x16x16xf32>
    %1 = vector.shape_cast %0 : vector<1x1x16x16xf32> to vector<16x16xf32>
    %c0_3 = arith.constant 0 : index
    %c1 = arith.constant 1 : index
    %c0_4 = arith.constant 0 : index
    %c0_5 = arith.constant 0 : index
    %2 = vector.load %arg3[%c0_3, %c1, %c0_4, %c0_5] : memref<1x4x16x16xf32, #tpu.memory_space<vmem>>, vector<1x1x16x16xf32>
    %3 = vector.shape_cast %2 : vector<1x1x16x16xf32> to vector<16x16xf32>
    %4 = arith.addf %1, %3 : vector<16x16xf32>
    %5 = arith.maximumf %1, %3 : vector<16x16xf32>
    %c0_6 = arith.constant 0 : index
    %c2 = arith.constant 2 : index
    %c0_7 = arith.constant 0 : index
    %c0_8 = arith.constant 0 : index
    %6 = vector.load %arg3[%c0_6, %c2, %c0_7, %c0_8] : memref<1x4x16x16xf32, #tpu.memory_space<vmem>>, vector<1x1x16x16xf32>
    %7 = vector.shape_cast %6 : vector<1x1x16x16xf32> to vector<16x16xf32>
    %8 = arith.addf %4, %7 : vector<16x16xf32>
    %9 = arith.maximumf %5, %7 : vector<16x16xf32>
    %c0_9 = arith.constant 0 : index
    %c3 = arith.constant 3 : index
    %c0_10 = arith.constant 0 : index
    %c0_11 = arith.constant 0 : index
    %10 = vector.load %arg3[%c0_9, %c3, %c0_10, %c0_11] : memref<1x4x16x16xf32, #tpu.memory_space<vmem>>, vector<1x1x16x16xf32>
    %11 = vector.shape_cast %10 : vector<1x1x16x16xf32> to vector<16x16xf32>
    %12 = arith.addf %8, %11 : vector<16x16xf32>
    %13 = arith.maximumf %9, %11 : vector<16x16xf32>
    %c0_i32 = arith.constant 0 : i32
    %14 = arith.cmpi eq, %arg1, %c0_i32 : i32
    %15 = arith.extui %14 : i1 to i32
    %c0_i32_12 = arith.constant 0 : i32
    %16 = arith.cmpi ne, %15, %c0_i32_12 : i32
    scf.if %16 {
      %cst = arith.constant 0.000000e+00 : f32
      %23 = vector.broadcast %cst : f32 to vector<32x272xf32>
      %c0_17 = arith.constant 0 : index
      %c0_18 = arith.constant 0 : index
      %24 = vector.load %arg5[%c0_17, %c0_18] : memref<32x272xf32, #tpu.memory_space<vmem>>, vector<32x272xf32>
      tpu.vector_store %arg5[%c0_17, %c0_18], %23 {strides = array<i32>} : memref<32x272xf32, #tpu.memory_space<vmem>>, vector<32x272xf32>,
      %cst_19 = arith.constant 0.000000e+00 : f32
      %25 = vector.broadcast %cst_19 : f32 to vector<32x272xf32>
      %c0_20 = arith.constant 0 : index
      %c0_21 = arith.constant 0 : index
      %26 = vector.load %arg6[%c0_20, %c0_21] : memref<32x272xf32, #tpu.memory_space<vmem>>, vector<32x272xf32>
      tpu.vector_store %arg6[%c0_20, %c0_21], %25 {strides = array<i32>} : memref<32x272xf32, #tpu.memory_space<vmem>>, vector<32x272xf32>,
      %c8 = arith.constant 8 : index
      %c128 = arith.constant 128 : index
      %27 = vector.load %arg5[%c8, %c128] : memref<32x272xf32, #tpu.memory_space<vmem>>, vector<16x16xf32>
      tpu.vector_store %arg5[%c8, %c128], %12 {strides = array<i32>} : memref<32x272xf32, #tpu.memory_space<vmem>>, vector<16x16xf32>,
      %c8_22 = arith.constant 8 : index
      %c128_23 = arith.constant 128 : index
      %28 = vector.load %arg6[%c8_22, %c128_23] : memref<32x272xf32, #tpu.memory_space<vmem>>, vector<16x16xf32>
      tpu.vector_store %arg6[%c8_22, %c128_23], %13 {strides = array<i32>} : memref<32x272xf32, #tpu.memory_space<vmem>>, vector<16x16xf32>,
    } else {
    }
    %c0_i32_13 = arith.constant 0 : i32
    %17 = arith.cmpi sgt, %arg1, %c0_i32_13 : i32
    %18 = arith.extui %17 : i1 to i32
    %c0_i32_14 = arith.constant 0 : i32
    %19 = arith.cmpi ne, %18, %c0_i32_14 : i32
    scf.if %19 {
      %c8 = arith.constant 8 : index
      %c128 = arith.constant 128 : index
      %23 = vector.load %arg5[%c8, %c128] : memref<32x272xf32, #tpu.memory_space<vmem>>, vector<16x16xf32>
      %24 = arith.addf %23, %12 : vector<16x16xf32>
      %c8_17 = arith.constant 8 : index
      %c128_18 = arith.constant 128 : index
      %25 = vector.load %arg5[%c8_17, %c128_18] : memref<32x272xf32, #tpu.memory_space<vmem>>, vector<16x16xf32>
      tpu.vector_store %arg5[%c8_17, %c128_18], %24 {strides = array<i32>} : memref<32x272xf32, #tpu.memory_space<vmem>>, vector<16x16xf32>,
      %c8_19 = arith.constant 8 : index
      %c128_20 = arith.constant 128 : index
      %26 = vector.load %arg6[%c8_19, %c128_20] : memref<32x272xf32, #tpu.memory_space<vmem>>, vector<16x16xf32>
      %27 = arith.maximumf %26, %13 : vector<16x16xf32>
      %c8_21 = arith.constant 8 : index
      %c128_22 = arith.constant 128 : index
      %28 = vector.load %arg6[%c8_21, %c128_22] : memref<32x272xf32, #tpu.memory_space<vmem>>, vector<16x16xf32>
      tpu.vector_store %arg6[%c8_21, %c128_22], %27 {strides = array<i32>} : memref<32x272xf32, #tpu.memory_space<vmem>>, vector<16x16xf32>,
    } else {
    }
    %c0_i32_15 = arith.constant 0 : i32
    %20 = arith.cmpi eq, %arg1, %c0_i32_15 : i32
    %21 = arith.extui %20 : i1 to i32
    %c0_i32_16 = arith.constant 0 : i32
    %22 = arith.cmpi ne, %21, %c0_i32_16 : i32
    scf.if %22 {
      %cst = arith.constant 0.000000e+00 : f32
      %23 = vector.broadcast %cst : f32 to vector<16x16xf32>
      %cst_17 = arith.constant 0.000000e+00 : f32
      %24 = vector.broadcast %cst_17 : f32 to vector<16x16xf32>
      %cst_18 = arith.constant 0.000000e+00 : f32
      %25 = vector.broadcast %cst_18 : f32 to vector<16x16xf32>
      %cst_19 = arith.constant 0.000000e+00 : f32
      %26 = vector.broadcast %cst_19 : f32 to vector<16x16xf32>
      %c0_20 = arith.constant 0 : index
      %27 = memref.load %arg2[%c0_20] : memref<98xf32, #tpu.memory_space<smem>>
      %cst_21 = arith.constant 2.500000e-01 : f32
      %28 = arith.mulf %27, %cst_21 : f32
      %c49 = arith.constant 49 : index
      %29 = memref.load %arg2[%c49] : memref<98xf32, #tpu.memory_space<smem>>
      %c5 = arith.constant 5 : index
      %c125 = arith.constant 125 : index
      %30 = vector.load %arg5[%c5, %c125] : memref<32x272xf32, #tpu.memory_space<vmem>>, vector<16x16xf32>
      %c5_22 = arith.constant 5 : index
      %c125_23 = arith.constant 125 : index
      %31 = vector.load %arg6[%c5_22, %c125_23] : memref<32x272xf32, #tpu.memory_space<vmem>>, vector<16x16xf32>
      %32 = vector.broadcast %28 : f32 to vector<16x16xf32>
      %33 = arith.mulf %32, %30 : vector<16x16xf32>
      %34 = arith.addf %23, %33 : vector<16x16xf32>
      %35 = vector.broadcast %29 : f32 to vector<16x16xf32>
      %36 = arith.mulf %35, %31 : vector<16x16xf32>
      %37 = arith.addf %24, %36 : vector<16x16xf32>
      %c1_24 = arith.constant 1 : index
      %38 = memref.load %arg2[%c1_24] : memref<98xf32, #tpu.memory_space<smem>>
      %cst_25 = arith.constant 2.500000e-01 : f32
      %39 = arith.mulf %38, %cst_25 : f32
      %c50 = arith.constant 50 : index
      %40 = memref.load %arg2[%c50] : memref<98xf32, #tpu.memory_space<smem>>
      %c5_26 = arith.constant 5 : index
      %c126 = arith.constant 126 : index
      %41 = vector.load %arg5[%c5_26, %c126] : memref<32x272xf32, #tpu.memory_space<vmem>>, vector<16x16xf32>
      %c5_27 = arith.constant 5 : index
      %c126_28 = arith.constant 126 : index
      %42 = vector.load %arg6[%c5_27, %c126_28] : memref<32x272xf32, #tpu.memory_space<vmem>>, vector<16x16xf32>
      %43 = vector.broadcast %39 : f32 to vector<16x16xf32>
      %44 = arith.mulf %43, %41 : vector<16x16xf32>
      %45 = arith.addf %25, %44 : vector<16x16xf32>
      %46 = vector.broadcast %40 : f32 to vector<16x16xf32>
      %47 = arith.mulf %46, %42 : vector<16x16xf32>
      %48 = arith.addf %26, %47 : vector<16x16xf32>
      %c2_29 = arith.constant 2 : index
      %49 = memref.load %arg2[%c2_29] : memref<98xf32, #tpu.memory_space<smem>>
      %cst_30 = arith.constant 2.500000e-01 : f32
      %50 = arith.mulf %49, %cst_30 : f32
      %c51 = arith.constant 51 : index
      %51 = memref.load %arg2[%c51] : memref<98xf32, #tpu.memory_space<smem>>
      %c5_31 = arith.constant 5 : index
      %c127 = arith.constant 127 : index
      %52 = vector.load %arg5[%c5_31, %c127] : memref<32x272xf32, #tpu.memory_space<vmem>>, vector<16x16xf32>
      %c5_32 = arith.constant 5 : index
      %c127_33 = arith.constant 127 : index
      %53 = vector.load %arg6[%c5_32, %c127_33] : memref<32x272xf32, #tpu.memory_space<vmem>>, vector<16x16xf32>
      %54 = vector.broadcast %50 : f32 to vector<16x16xf32>
      %55 = arith.mulf %54, %52 : vector<16x16xf32>
      %56 = arith.addf %34, %55 : vector<16x16xf32>
      %57 = vector.broadcast %51 : f32 to vector<16x16xf32>
      %58 = arith.mulf %57, %53 : vector<16x16xf32>
      %59 = arith.addf %37, %58 : vector<16x16xf32>
      %c3_34 = arith.constant 3 : index
      %60 = memref.load %arg2[%c3_34] : memref<98xf32, #tpu.memory_space<smem>>
      %cst_35 = arith.constant 2.500000e-01 : f32
      %61 = arith.mulf %60, %cst_35 : f32
      %c52 = arith.constant 52 : index
      %62 = memref.load %arg2[%c52] : memref<98xf32, #tpu.memory_space<smem>>
      %c5_36 = arith.constant 5 : index
      %c128 = arith.constant 128 : index
      %63 = vector.load %arg5[%c5_36, %c128] : memref<32x272xf32, #tpu.memory_space<vmem>>, vector<16x16xf32>
      %c5_37 = arith.constant 5 : index
      %c128_38 = arith.constant 128 : index
      %64 = vector.load %arg6[%c5_37, %c128_38] : memref<32x272xf32, #tpu.memory_space<vmem>>, vector<16x16xf32>
      %65 = vector.broadcast %61 : f32 to vector<16x16xf32>
      %66 = arith.mulf %65, %63 : vector<16x16xf32>
      %67 = arith.addf %45, %66 : vector<16x16xf32>
      %68 = vector.broadcast %62 : f32 to vector<16x16xf32>
      %69 = arith.mulf %68, %64 : vector<16x16xf32>
      %70 = arith.addf %48, %69 : vector<16x16xf32>
      %c4 = arith.constant 4 : index
      %71 = memref.load %arg2[%c4] : memref<98xf32, #tpu.memory_space<smem>>
      %cst_39 = arith.constant 2.500000e-01 : f32
      %72 = arith.mulf %71, %cst_39 : f32
      %c53 = arith.constant 53 : index
      %73 = memref.load %arg2[%c53] : memref<98xf32, #tpu.memory_space<smem>>
      %c5_40 = arith.constant 5 : index
      %c129 = arith.constant 129 : index
      %74 = vector.load %arg5[%c5_40, %c129] : memref<32x272xf32, #tpu.memory_space<vmem>>, vector<16x16xf32>
      %c5_41 = arith.constant 5 : index
      %c129_42 = arith.constant 129 : index
      %75 = vector.load %arg6[%c5_41, %c129_42] : memref<32x272xf32, #tpu.memory_space<vmem>>, vector<16x16xf32>
      %76 = vector.broadcast %72 : f32 to vector<16x16xf32>
      %77 = arith.mulf %76, %74 : vector<16x16xf32>
      %78 = arith.addf %56, %77 : vector<16x16xf32>
      %79 = vector.broadcast %73 : f32 to vector<16x16xf32>
      %80 = arith.mulf %79, %75 : vector<16x16xf32>
      %81 = arith.addf %59, %80 : vector<16x16xf32>
      %c5_43 = arith.constant 5 : index
      %82 = memref.load %arg2[%c5_43] : memref<98xf32, #tpu.memory_space<smem>>
      %cst_44 = arith.constant 2.500000e-01 : f32
      %83 = arith.mulf %82, %cst_44 : f32
      %c54 = arith.constant 54 : index
      %84 = memref.load %arg2[%c54] : memref<98xf32, #tpu.memory_space<smem>>
      %c5_45 = arith.constant 5 : index
      %c130 = arith.constant 130 : index
      %85 = vector.load %arg5[%c5_45, %c130] : memref<32x272xf32, #tpu.memory_space<vmem>>, vector<16x16xf32>
      %c5_46 = arith.constant 5 : index
      %c130_47 = arith.constant 130 : index
      %86 = vector.load %arg6[%c5_46, %c130_47] : memref<32x272xf32, #tpu.memory_space<vmem>>, vector<16x16xf32>
      %87 = vector.broadcast %83 : f32 to vector<16x16xf32>
      %88 = arith.mulf %87, %85 : vector<16x16xf32>
      %89 = arith.addf %67, %88 : vector<16x16xf32>
      %90 = vector.broadcast %84 : f32 to vector<16x16xf32>
      %91 = arith.mulf %90, %86 : vector<16x16xf32>
      %92 = arith.addf %70, %91 : vector<16x16xf32>
      %c6 = arith.constant 6 : index
      %93 = memref.load %arg2[%c6] : memref<98xf32, #tpu.memory_space<smem>>
      %cst_48 = arith.constant 2.500000e-01 : f32
      %94 = arith.mulf %93, %cst_48 : f32
      %c55 = arith.constant 55 : index
      %95 = memref.load %arg2[%c55] : memref<98xf32, #tpu.memory_space<smem>>
      %c5_49 = arith.constant 5 : index
      %c131 = arith.constant 131 : index
      %96 = vector.load %arg5[%c5_49, %c131] : memref<32x272xf32, #tpu.memory_space<vmem>>, vector<16x16xf32>
      %c5_50 = arith.constant 5 : index
      %c131_51 = arith.constant 131 : index
      %97 = vector.load %arg6[%c5_50, %c131_51] : memref<32x272xf32, #tpu.memory_space<vmem>>, vector<16x16xf32>
      %98 = vector.broadcast %94 : f32 to vector<16x16xf32>
      %99 = arith.mulf %98, %96 : vector<16x16xf32>
      %100 = arith.addf %78, %99 : vector<16x16xf32>
      %101 = vector.broadcast %95 : f32 to vector<16x16xf32>
      %102 = arith.mulf %101, %97 : vector<16x16xf32>
      %103 = arith.addf %81, %102 : vector<16x16xf32>
      %c7 = arith.constant 7 : index
      %104 = memref.load %arg2[%c7] : memref<98xf32, #tpu.memory_space<smem>>
      %cst_52 = arith.constant 2.500000e-01 : f32
      %105 = arith.mulf %104, %cst_52 : f32
      %c56 = arith.constant 56 : index
      %106 = memref.load %arg2[%c56] : memref<98xf32, #tpu.memory_space<smem>>
      %c6_53 = arith.constant 6 : index
      %c125_54 = arith.constant 125 : index
      %107 = vector.load %arg5[%c6_53, %c125_54] : memref<32x272xf32, #tpu.memory_space<vmem>>, vector<16x16xf32>
      %c6_55 = arith.constant 6 : index
      %c125_56 = arith.constant 125 : index
      %108 = vector.load %arg6[%c6_55, %c125_56] : memref<32x272xf32, #tpu.memory_space<vmem>>, vector<16x16xf32>
      %109 = vector.broadcast %105 : f32 to vector<16x16xf32>
      %110 = arith.mulf %109, %107 : vector<16x16xf32>
      %111 = arith.addf %89, %110 : vector<16x16xf32>
      %112 = vector.broadcast %106 : f32 to vector<16x16xf32>
      %113 = arith.mulf %112, %108 : vector<16x16xf32>
      %114 = arith.addf %92, %113 : vector<16x16xf32>
      %c8 = arith.constant 8 : index
      %115 = memref.load %arg2[%c8] : memref<98xf32, #tpu.memory_space<smem>>
      %cst_57 = arith.constant 2.500000e-01 : f32
      %116 = arith.mulf %115, %cst_57 : f32
      %c57 = arith.constant 57 : index
      %117 = memref.load %arg2[%c57] : memref<98xf32, #tpu.memory_space<smem>>
      %c6_58 = arith.constant 6 : index
      %c126_59 = arith.constant 126 : index
      %118 = vector.load %arg5[%c6_58, %c126_59] : memref<32x272xf32, #tpu.memory_space<vmem>>, vector<16x16xf32>
      %c6_60 = arith.constant 6 : index
      %c126_61 = arith.constant 126 : index
      %119 = vector.load %arg6[%c6_60, %c126_61] : memref<32x272xf32, #tpu.memory_space<vmem>>, vector<16x16xf32>
      %120 = vector.broadcast %116 : f32 to vector<16x16xf32>
      %121 = arith.mulf %120, %118 : vector<16x16xf32>
      %122 = arith.addf %100, %121 : vector<16x16xf32>
      %123 = vector.broadcast %117 : f32 to vector<16x16xf32>
      %124 = arith.mulf %123, %119 : vector<16x16xf32>
      %125 = arith.addf %103, %124 : vector<16x16xf32>
      %c9 = arith.constant 9 : index
      %126 = memref.load %arg2[%c9] : memref<98xf32, #tpu.memory_space<smem>>
      %cst_62 = arith.constant 2.500000e-01 : f32
      %127 = arith.mulf %126, %cst_62 : f32
      %c58 = arith.constant 58 : index
      %128 = memref.load %arg2[%c58] : memref<98xf32, #tpu.memory_space<smem>>
      %c6_63 = arith.constant 6 : index
      %c127_64 = arith.constant 127 : index
      %129 = vector.load %arg5[%c6_63, %c127_64] : memref<32x272xf32, #tpu.memory_space<vmem>>, vector<16x16xf32>
      %c6_65 = arith.constant 6 : index
      %c127_66 = arith.constant 127 : index
      %130 = vector.load %arg6[%c6_65, %c127_66] : memref<32x272xf32, #tpu.memory_space<vmem>>, vector<16x16xf32>
      %131 = vector.broadcast %127 : f32 to vector<16x16xf32>
      %132 = arith.mulf %131, %129 : vector<16x16xf32>
      %133 = arith.addf %111, %132 : vector<16x16xf32>
      %134 = vector.broadcast %128 : f32 to vector<16x16xf32>
      %135 = arith.mulf %134, %130 : vector<16x16xf32>
      %136 = arith.addf %114, %135 : vector<16x16xf32>
      %c10 = arith.constant 10 : index
      %137 = memref.load %arg2[%c10] : memref<98xf32, #tpu.memory_space<smem>>
      %cst_67 = arith.constant 2.500000e-01 : f32
      %138 = arith.mulf %137, %cst_67 : f32
      %c59 = arith.constant 59 : index
      %139 = memref.load %arg2[%c59] : memref<98xf32, #tpu.memory_space<smem>>
      %c6_68 = arith.constant 6 : index
      %c128_69 = arith.constant 128 : index
      %140 = vector.load %arg5[%c6_68, %c128_69] : memref<32x272xf32, #tpu.memory_space<vmem>>, vector<16x16xf32>
      %c6_70 = arith.constant 6 : index
      %c128_71 = arith.constant 128 : index
      %141 = vector.load %arg6[%c6_70, %c128_71] : memref<32x272xf32, #tpu.memory_space<vmem>>, vector<16x16xf32>
      %142 = vector.broadcast %138 : f32 to vector<16x16xf32>
      %143 = arith.mulf %142, %140 : vector<16x16xf32>
      %144 = arith.addf %122, %143 : vector<16x16xf32>
      %145 = vector.broadcast %139 : f32 to vector<16x16xf32>
      %146 = arith.mulf %145, %141 : vector<16x16xf32>
      %147 = arith.addf %125, %146 : vector<16x16xf32>
      %c11 = arith.constant 11 : index
      %148 = memref.load %arg2[%c11] : memref<98xf32, #tpu.memory_space<smem>>
      %cst_72 = arith.constant 2.500000e-01 : f32
      %149 = arith.mulf %148, %cst_72 : f32
      %c60 = arith.constant 60 : index
      %150 = memref.load %arg2[%c60] : memref<98xf32, #tpu.memory_space<smem>>
      %c6_73 = arith.constant 6 : index
      %c129_74 = arith.constant 129 : index
      %151 = vector.load %arg5[%c6_73, %c129_74] : memref<32x272xf32, #tpu.memory_space<vmem>>, vector<16x16xf32>
      %c6_75 = arith.constant 6 : index
      %c129_76 = arith.constant 129 : index
      %152 = vector.load %arg6[%c6_75, %c129_76] : memref<32x272xf32, #tpu.memory_space<vmem>>, vector<16x16xf32>
      %153 = vector.broadcast %149 : f32 to vector<16x16xf32>
      %154 = arith.mulf %153, %151 : vector<16x16xf32>
      %155 = arith.addf %133, %154 : vector<16x16xf32>
      %156 = vector.broadcast %150 : f32 to vector<16x16xf32>
      %157 = arith.mulf %156, %152 : vector<16x16xf32>
      %158 = arith.addf %136, %157 : vector<16x16xf32>
      %c12 = arith.constant 12 : index
      %159 = memref.load %arg2[%c12] : memref<98xf32, #tpu.memory_space<smem>>
      %cst_77 = arith.constant 2.500000e-01 : f32
      %160 = arith.mulf %159, %cst_77 : f32
      %c61 = arith.constant 61 : index
      %161 = memref.load %arg2[%c61] : memref<98xf32, #tpu.memory_space<smem>>
      %c6_78 = arith.constant 6 : index
      %c130_79 = arith.constant 130 : index
      %162 = vector.load %arg5[%c6_78, %c130_79] : memref<32x272xf32, #tpu.memory_space<vmem>>, vector<16x16xf32>
      %c6_80 = arith.constant 6 : index
      %c130_81 = arith.constant 130 : index
      %163 = vector.load %arg6[%c6_80, %c130_81] : memref<32x272xf32, #tpu.memory_space<vmem>>, vector<16x16xf32>
      %164 = vector.broadcast %160 : f32 to vector<16x16xf32>
      %165 = arith.mulf %164, %162 : vector<16x16xf32>
      %166 = arith.addf %144, %165 : vector<16x16xf32>
      %167 = vector.broadcast %161 : f32 to vector<16x16xf32>
      %168 = arith.mulf %167, %163 : vector<16x16xf32>
      %169 = arith.addf %147, %168 : vector<16x16xf32>
      %c13 = arith.constant 13 : index
      %170 = memref.load %arg2[%c13] : memref<98xf32, #tpu.memory_space<smem>>
      %cst_82 = arith.constant 2.500000e-01 : f32
      %171 = arith.mulf %170, %cst_82 : f32
      %c62 = arith.constant 62 : index
      %172 = memref.load %arg2[%c62] : memref<98xf32, #tpu.memory_space<smem>>
      %c6_83 = arith.constant 6 : index
      %c131_84 = arith.constant 131 : index
      %173 = vector.load %arg5[%c6_83, %c131_84] : memref<32x272xf32, #tpu.memory_space<vmem>>, vector<16x16xf32>
      %c6_85 = arith.constant 6 : index
      %c131_86 = arith.constant 131 : index
      %174 = vector.load %arg6[%c6_85, %c131_86] : memref<32x272xf32, #tpu.memory_space<vmem>>, vector<16x16xf32>
      %175 = vector.broadcast %171 : f32 to vector<16x16xf32>
      %176 = arith.mulf %175, %173 : vector<16x16xf32>
      %177 = arith.addf %155, %176 : vector<16x16xf32>
      %178 = vector.broadcast %172 : f32 to vector<16x16xf32>
      %179 = arith.mulf %178, %174 : vector<16x16xf32>
      %180 = arith.addf %158, %179 : vector<16x16xf32>
      %c14 = arith.constant 14 : index
      %181 = memref.load %arg2[%c14] : memref<98xf32, #tpu.memory_space<smem>>
      %cst_87 = arith.constant 2.500000e-01 : f32
      %182 = arith.mulf %181, %cst_87 : f32
      %c63 = arith.constant 63 : index
      %183 = memref.load %arg2[%c63] : memref<98xf32, #tpu.memory_space<smem>>
      %c7_88 = arith.constant 7 : index
      %c125_89 = arith.constant 125 : index
      %184 = vector.load %arg5[%c7_88, %c125_89] : memref<32x272xf32, #tpu.memory_space<vmem>>, vector<16x16xf32>
      %c7_90 = arith.constant 7 : index
      %c125_91 = arith.constant 125 : index
      %185 = vector.load %arg6[%c7_90, %c125_91] : memref<32x272xf32, #tpu.memory_space<vmem>>, vector<16x16xf32>
      %186 = vector.broadcast %182 : f32 to vector<16x16xf32>
      %187 = arith.mulf %186, %184 : vector<16x16xf32>
      %188 = arith.addf %166, %187 : vector<16x16xf32>
      %189 = vector.broadcast %183 : f32 to vector<16x16xf32>
      %190 = arith.mulf %189, %185 : vector<16x16xf32>
      %191 = arith.addf %169, %190 : vector<16x16xf32>
      %c15 = arith.constant 15 : index
      %192 = memref.load %arg2[%c15] : memref<98xf32, #tpu.memory_space<smem>>
      %cst_92 = arith.constant 2.500000e-01 : f32
      %193 = arith.mulf %192, %cst_92 : f32
      %c64 = arith.constant 64 : index
      %194 = memref.load %arg2[%c64] : memref<98xf32, #tpu.memory_space<smem>>
      %c7_93 = arith.constant 7 : index
      %c126_94 = arith.constant 126 : index
      %195 = vector.load %arg5[%c7_93, %c126_94] : memref<32x272xf32, #tpu.memory_space<vmem>>, vector<16x16xf32>
      %c7_95 = arith.constant 7 : index
      %c126_96 = arith.constant 126 : index
      %196 = vector.load %arg6[%c7_95, %c126_96] : memref<32x272xf32, #tpu.memory_space<vmem>>, vector<16x16xf32>
      %197 = vector.broadcast %193 : f32 to vector<16x16xf32>
      %198 = arith.mulf %197, %195 : vector<16x16xf32>
      %199 = arith.addf %177, %198 : vector<16x16xf32>
      %200 = vector.broadcast %194 : f32 to vector<16x16xf32>
      %201 = arith.mulf %200, %196 : vector<16x16xf32>
      %202 = arith.addf %180, %201 : vector<16x16xf32>
      %c16 = arith.constant 16 : index
      %203 = memref.load %arg2[%c16] : memref<98xf32, #tpu.memory_space<smem>>
      %cst_97 = arith.constant 2.500000e-01 : f32
      %204 = arith.mulf %203, %cst_97 : f32
      %c65 = arith.constant 65 : index
      %205 = memref.load %arg2[%c65] : memref<98xf32, #tpu.memory_space<smem>>
      %c7_98 = arith.constant 7 : index
      %c127_99 = arith.constant 127 : index
      %206 = vector.load %arg5[%c7_98, %c127_99] : memref<32x272xf32, #tpu.memory_space<vmem>>, vector<16x16xf32>
      %c7_100 = arith.constant 7 : index
      %c127_101 = arith.constant 127 : index
      %207 = vector.load %arg6[%c7_100, %c127_101] : memref<32x272xf32, #tpu.memory_space<vmem>>, vector<16x16xf32>
      %208 = vector.broadcast %204 : f32 to vector<16x16xf32>
      %209 = arith.mulf %208, %206 : vector<16x16xf32>
      %210 = arith.addf %188, %209 : vector<16x16xf32>
      %211 = vector.broadcast %205 : f32 to vector<16x16xf32>
      %212 = arith.mulf %211, %207 : vector<16x16xf32>
      %213 = arith.addf %191, %212 : vector<16x16xf32>
      %c17 = arith.constant 17 : index
      %214 = memref.load %arg2[%c17] : memref<98xf32, #tpu.memory_space<smem>>
      %cst_102 = arith.constant 2.500000e-01 : f32
      %215 = arith.mulf %214, %cst_102 : f32
      %c66 = arith.constant 66 : index
      %216 = memref.load %arg2[%c66] : memref<98xf32, #tpu.memory_space<smem>>
      %c7_103 = arith.constant 7 : index
      %c128_104 = arith.constant 128 : index
      %217 = vector.load %arg5[%c7_103, %c128_104] : memref<32x272xf32, #tpu.memory_space<vmem>>, vector<16x16xf32>
      %c7_105 = arith.constant 7 : index
      %c128_106 = arith.constant 128 : index
      %218 = vector.load %arg6[%c7_105, %c128_106] : memref<32x272xf32, #tpu.memory_space<vmem>>, vector<16x16xf32>
      %219 = vector.broadcast %215 : f32 to vector<16x16xf32>
      %220 = arith.mulf %219, %217 : vector<16x16xf32>
      %221 = arith.addf %199, %220 : vector<16x16xf32>
      %222 = vector.broadcast %216 : f32 to vector<16x16xf32>
      %223 = arith.mulf %222, %218 : vector<16x16xf32>
      %224 = arith.addf %202, %223 : vector<16x16xf32>
      %c18 = arith.constant 18 : index
      %225 = memref.load %arg2[%c18] : memref<98xf32, #tpu.memory_space<smem>>
      %cst_107 = arith.constant 2.500000e-01 : f32
      %226 = arith.mulf %225, %cst_107 : f32
      %c67 = arith.constant 67 : index
      %227 = memref.load %arg2[%c67] : memref<98xf32, #tpu.memory_space<smem>>
      %c7_108 = arith.constant 7 : index
      %c129_109 = arith.constant 129 : index
      %228 = vector.load %arg5[%c7_108, %c129_109] : memref<32x272xf32, #tpu.memory_space<vmem>>, vector<16x16xf32>
      %c7_110 = arith.constant 7 : index
      %c129_111 = arith.constant 129 : index
      %229 = vector.load %arg6[%c7_110, %c129_111] : memref<32x272xf32, #tpu.memory_space<vmem>>, vector<16x16xf32>
      %230 = vector.broadcast %226 : f32 to vector<16x16xf32>
      %231 = arith.mulf %230, %228 : vector<16x16xf32>
      %232 = arith.addf %210, %231 : vector<16x16xf32>
      %233 = vector.broadcast %227 : f32 to vector<16x16xf32>
      %234 = arith.mulf %233, %229 : vector<16x16xf32>
      %235 = arith.addf %213, %234 : vector<16x16xf32>
      %c19 = arith.constant 19 : index
      %236 = memref.load %arg2[%c19] : memref<98xf32, #tpu.memory_space<smem>>
      %cst_112 = arith.constant 2.500000e-01 : f32
      %237 = arith.mulf %236, %cst_112 : f32
      %c68 = arith.constant 68 : index
      %238 = memref.load %arg2[%c68] : memref<98xf32, #tpu.memory_space<smem>>
      %c7_113 = arith.constant 7 : index
      %c130_114 = arith.constant 130 : index
      %239 = vector.load %arg5[%c7_113, %c130_114] : memref<32x272xf32, #tpu.memory_space<vmem>>, vector<16x16xf32>
      %c7_115 = arith.constant 7 : index
      %c130_116 = arith.constant 130 : index
      %240 = vector.load %arg6[%c7_115, %c130_116] : memref<32x272xf32, #tpu.memory_space<vmem>>, vector<16x16xf32>
      %241 = vector.broadcast %237 : f32 to vector<16x16xf32>
      %242 = arith.mulf %241, %239 : vector<16x16xf32>
      %243 = arith.addf %221, %242 : vector<16x16xf32>
      %244 = vector.broadcast %238 : f32 to vector<16x16xf32>
      %245 = arith.mulf %244, %240 : vector<16x16xf32>
      %246 = arith.addf %224, %245 : vector<16x16xf32>
      %c20 = arith.constant 20 : index
      %247 = memref.load %arg2[%c20] : memref<98xf32, #tpu.memory_space<smem>>
      %cst_117 = arith.constant 2.500000e-01 : f32
      %248 = arith.mulf %247, %cst_117 : f32
      %c69 = arith.constant 69 : index
      %249 = memref.load %arg2[%c69] : memref<98xf32, #tpu.memory_space<smem>>
      %c7_118 = arith.constant 7 : index
      %c131_119 = arith.constant 131 : index
      %250 = vector.load %arg5[%c7_118, %c131_119] : memref<32x272xf32, #tpu.memory_space<vmem>>, vector<16x16xf32>
      %c7_120 = arith.constant 7 : index
      %c131_121 = arith.constant 131 : index
      %251 = vector.load %arg6[%c7_120, %c131_121] : memref<32x272xf32, #tpu.memory_space<vmem>>, vector<16x16xf32>
      %252 = vector.broadcast %248 : f32 to vector<16x16xf32>
      %253 = arith.mulf %252, %250 : vector<16x16xf32>
      %254 = arith.addf %232, %253 : vector<16x16xf32>
      %255 = vector.broadcast %249 : f32 to vector<16x16xf32>
      %256 = arith.mulf %255, %251 : vector<16x16xf32>
      %257 = arith.addf %235, %256 : vector<16x16xf32>
      %c21 = arith.constant 21 : index
      %258 = memref.load %arg2[%c21] : memref<98xf32, #tpu.memory_space<smem>>
      %cst_122 = arith.constant 2.500000e-01 : f32
      %259 = arith.mulf %258, %cst_122 : f32
      %c70 = arith.constant 70 : index
      %260 = memref.load %arg2[%c70] : memref<98xf32, #tpu.memory_space<smem>>
      %c8_123 = arith.constant 8 : index
      %c125_124 = arith.constant 125 : index
      %261 = vector.load %arg5[%c8_123, %c125_124] : memref<32x272xf32, #tpu.memory_space<vmem>>, vector<16x16xf32>
      %c8_125 = arith.constant 8 : index
      %c125_126 = arith.constant 125 : index
      %262 = vector.load %arg6[%c8_125, %c125_126] : memref<32x272xf32, #tpu.memory_space<vmem>>, vector<16x16xf32>
      %263 = vector.broadcast %259 : f32 to vector<16x16xf32>
      %264 = arith.mulf %263, %261 : vector<16x16xf32>
      %265 = arith.addf %243, %264 : vector<16x16xf32>
      %266 = vector.broadcast %260 : f32 to vector<16x16xf32>
      %267 = arith.mulf %266, %262 : vector<16x16xf32>
      %268 = arith.addf %246, %267 : vector<16x16xf32>
      %c22 = arith.constant 22 : index
      %269 = memref.load %arg2[%c22] : memref<98xf32, #tpu.memory_space<smem>>
      %cst_127 = arith.constant 2.500000e-01 : f32
      %270 = arith.mulf %269, %cst_127 : f32
      %c71 = arith.constant 71 : index
      %271 = memref.load %arg2[%c71] : memref<98xf32, #tpu.memory_space<smem>>
      %c8_128 = arith.constant 8 : index
      %c126_129 = arith.constant 126 : index
      %272 = vector.load %arg5[%c8_128, %c126_129] : memref<32x272xf32, #tpu.memory_space<vmem>>, vector<16x16xf32>
      %c8_130 = arith.constant 8 : index
      %c126_131 = arith.constant 126 : index
      %273 = vector.load %arg6[%c8_130, %c126_131] : memref<32x272xf32, #tpu.memory_space<vmem>>, vector<16x16xf32>
      %274 = vector.broadcast %270 : f32 to vector<16x16xf32>
      %275 = arith.mulf %274, %272 : vector<16x16xf32>
      %276 = arith.addf %254, %275 : vector<16x16xf32>
      %277 = vector.broadcast %271 : f32 to vector<16x16xf32>
      %278 = arith.mulf %277, %273 : vector<16x16xf32>
      %279 = arith.addf %257, %278 : vector<16x16xf32>
      %c23 = arith.constant 23 : index
      %280 = memref.load %arg2[%c23] : memref<98xf32, #tpu.memory_space<smem>>
      %cst_132 = arith.constant 2.500000e-01 : f32
      %281 = arith.mulf %280, %cst_132 : f32
      %c72 = arith.constant 72 : index
      %282 = memref.load %arg2[%c72] : memref<98xf32, #tpu.memory_space<smem>>
      %c8_133 = arith.constant 8 : index
      %c127_134 = arith.constant 127 : index
      %283 = vector.load %arg5[%c8_133, %c127_134] : memref<32x272xf32, #tpu.memory_space<vmem>>, vector<16x16xf32>
      %c8_135 = arith.constant 8 : index
      %c127_136 = arith.constant 127 : index
      %284 = vector.load %arg6[%c8_135, %c127_136] : memref<32x272xf32, #tpu.memory_space<vmem>>, vector<16x16xf32>
      %285 = vector.broadcast %281 : f32 to vector<16x16xf32>
      %286 = arith.mulf %285, %283 : vector<16x16xf32>
      %287 = arith.addf %265, %286 : vector<16x16xf32>
      %288 = vector.broadcast %282 : f32 to vector<16x16xf32>
      %289 = arith.mulf %288, %284 : vector<16x16xf32>
      %290 = arith.addf %268, %289 : vector<16x16xf32>
      %c24 = arith.constant 24 : index
      %291 = memref.load %arg2[%c24] : memref<98xf32, #tpu.memory_space<smem>>
      %cst_137 = arith.constant 2.500000e-01 : f32
      %292 = arith.mulf %291, %cst_137 : f32
      %c73 = arith.constant 73 : index
      %293 = memref.load %arg2[%c73] : memref<98xf32, #tpu.memory_space<smem>>
      %c8_138 = arith.constant 8 : index
      %c128_139 = arith.constant 128 : index
      %294 = vector.load %arg5[%c8_138, %c128_139] : memref<32x272xf32, #tpu.memory_space<vmem>>, vector<16x16xf32>
      %c8_140 = arith.constant 8 : index
      %c128_141 = arith.constant 128 : index
      %295 = vector.load %arg6[%c8_140, %c128_141] : memref<32x272xf32, #tpu.memory_space<vmem>>, vector<16x16xf32>
      %296 = vector.broadcast %292 : f32 to vector<16x16xf32>
      %297 = arith.mulf %296, %294 : vector<16x16xf32>
      %298 = arith.addf %276, %297 : vector<16x16xf32>
      %299 = vector.broadcast %293 : f32 to vector<16x16xf32>
      %300 = arith.mulf %299, %295 : vector<16x16xf32>
      %301 = arith.addf %279, %300 : vector<16x16xf32>
      %c25 = arith.constant 25 : index
      %302 = memref.load %arg2[%c25] : memref<98xf32, #tpu.memory_space<smem>>
      %cst_142 = arith.constant 2.500000e-01 : f32
      %303 = arith.mulf %302, %cst_142 : f32
      %c74 = arith.constant 74 : index
      %304 = memref.load %arg2[%c74] : memref<98xf32, #tpu.memory_space<smem>>
      %c8_143 = arith.constant 8 : index
      %c129_144 = arith.constant 129 : index
      %305 = vector.load %arg5[%c8_143, %c129_144] : memref<32x272xf32, #tpu.memory_space<vmem>>, vector<16x16xf32>
      %c8_145 = arith.constant 8 : index
      %c129_146 = arith.constant 129 : index
      %306 = vector.load %arg6[%c8_145, %c129_146] : memref<32x272xf32, #tpu.memory_space<vmem>>, vector<16x16xf32>
      %307 = vector.broadcast %303 : f32 to vector<16x16xf32>
      %308 = arith.mulf %307, %305 : vector<16x16xf32>
      %309 = arith.addf %287, %308 : vector<16x16xf32>
      %310 = vector.broadcast %304 : f32 to vector<16x16xf32>
      %311 = arith.mulf %310, %306 : vector<16x16xf32>
      %312 = arith.addf %290, %311 : vector<16x16xf32>
      %c26 = arith.constant 26 : index
      %313 = memref.load %arg2[%c26] : memref<98xf32, #tpu.memory_space<smem>>
      %cst_147 = arith.constant 2.500000e-01 : f32
      %314 = arith.mulf %313, %cst_147 : f32
      %c75 = arith.constant 75 : index
      %315 = memref.load %arg2[%c75] : memref<98xf32, #tpu.memory_space<smem>>
      %c8_148 = arith.constant 8 : index
      %c130_149 = arith.constant 130 : index
      %316 = vector.load %arg5[%c8_148, %c130_149] : memref<32x272xf32, #tpu.memory_space<vmem>>, vector<16x16xf32>
      %c8_150 = arith.constant 8 : index
      %c130_151 = arith.constant 130 : index
      %317 = vector.load %arg6[%c8_150, %c130_151] : memref<32x272xf32, #tpu.memory_space<vmem>>, vector<16x16xf32>
      %318 = vector.broadcast %314 : f32 to vector<16x16xf32>
      %319 = arith.mulf %318, %316 : vector<16x16xf32>
      %320 = arith.addf %298, %319 : vector<16x16xf32>
      %321 = vector.broadcast %315 : f32 to vector<16x16xf32>
      %322 = arith.mulf %321, %317 : vector<16x16xf32>
      %323 = arith.addf %301, %322 : vector<16x16xf32>
      %c27 = arith.constant 27 : index
      %324 = memref.load %arg2[%c27] : memref<98xf32, #tpu.memory_space<smem>>
      %cst_152 = arith.constant 2.500000e-01 : f32
      %325 = arith.mulf %324, %cst_152 : f32
      %c76 = arith.constant 76 : index
      %326 = memref.load %arg2[%c76] : memref<98xf32, #tpu.memory_space<smem>>
      %c8_153 = arith.constant 8 : index
      %c131_154 = arith.constant 131 : index
      %327 = vector.load %arg5[%c8_153, %c131_154] : memref<32x272xf32, #tpu.memory_space<vmem>>, vector<16x16xf32>
      %c8_155 = arith.constant 8 : index
      %c131_156 = arith.constant 131 : index
      %328 = vector.load %arg6[%c8_155, %c131_156] : memref<32x272xf32, #tpu.memory_space<vmem>>, vector<16x16xf32>
      %329 = vector.broadcast %325 : f32 to vector<16x16xf32>
      %330 = arith.mulf %329, %327 : vector<16x16xf32>
      %331 = arith.addf %309, %330 : vector<16x16xf32>
      %332 = vector.broadcast %326 : f32 to vector<16x16xf32>
      %333 = arith.mulf %332, %328 : vector<16x16xf32>
      %334 = arith.addf %312, %333 : vector<16x16xf32>
      %c28 = arith.constant 28 : index
      %335 = memref.load %arg2[%c28] : memref<98xf32, #tpu.memory_space<smem>>
      %cst_157 = arith.constant 2.500000e-01 : f32
      %336 = arith.mulf %335, %cst_157 : f32
      %c77 = arith.constant 77 : index
      %337 = memref.load %arg2[%c77] : memref<98xf32, #tpu.memory_space<smem>>
      %c9_158 = arith.constant 9 : index
      %c125_159 = arith.constant 125 : index
      %338 = vector.load %arg5[%c9_158, %c125_159] : memref<32x272xf32, #tpu.memory_space<vmem>>, vector<16x16xf32>
      %c9_160 = arith.constant 9 : index
      %c125_161 = arith.constant 125 : index
      %339 = vector.load %arg6[%c9_160, %c125_161] : memref<32x272xf32, #tpu.memory_space<vmem>>, vector<16x16xf32>
      %340 = vector.broadcast %336 : f32 to vector<16x16xf32>
      %341 = arith.mulf %340, %338 : vector<16x16xf32>
      %342 = arith.addf %320, %341 : vector<16x16xf32>
      %343 = vector.broadcast %337 : f32 to vector<16x16xf32>
      %344 = arith.mulf %343, %339 : vector<16x16xf32>
      %345 = arith.addf %323, %344 : vector<16x16xf32>
      %c29 = arith.constant 29 : index
      %346 = memref.load %arg2[%c29] : memref<98xf32, #tpu.memory_space<smem>>
      %cst_162 = arith.constant 2.500000e-01 : f32
      %347 = arith.mulf %346, %cst_162 : f32
      %c78 = arith.constant 78 : index
      %348 = memref.load %arg2[%c78] : memref<98xf32, #tpu.memory_space<smem>>
      %c9_163 = arith.constant 9 : index
      %c126_164 = arith.constant 126 : index
      %349 = vector.load %arg5[%c9_163, %c126_164] : memref<32x272xf32, #tpu.memory_space<vmem>>, vector<16x16xf32>
      %c9_165 = arith.constant 9 : index
      %c126_166 = arith.constant 126 : index
      %350 = vector.load %arg6[%c9_165, %c126_166] : memref<32x272xf32, #tpu.memory_space<vmem>>, vector<16x16xf32>
      %351 = vector.broadcast %347 : f32 to vector<16x16xf32>
      %352 = arith.mulf %351, %349 : vector<16x16xf32>
      %353 = arith.addf %331, %352 : vector<16x16xf32>
      %354 = vector.broadcast %348 : f32 to vector<16x16xf32>
      %355 = arith.mulf %354, %350 : vector<16x16xf32>
      %356 = arith.addf %334, %355 : vector<16x16xf32>
      %c30 = arith.constant 30 : index
      %357 = memref.load %arg2[%c30] : memref<98xf32, #tpu.memory_space<smem>>
      %cst_167 = arith.constant 2.500000e-01 : f32
      %358 = arith.mulf %357, %cst_167 : f32
      %c79 = arith.constant 79 : index
      %359 = memref.load %arg2[%c79] : memref<98xf32, #tpu.memory_space<smem>>
      %c9_168 = arith.constant 9 : index
      %c127_169 = arith.constant 127 : index
      %360 = vector.load %arg5[%c9_168, %c127_169] : memref<32x272xf32, #tpu.memory_space<vmem>>, vector<16x16xf32>
      %c9_170 = arith.constant 9 : index
      %c127_171 = arith.constant 127 : index
      %361 = vector.load %arg6[%c9_170, %c127_171] : memref<32x272xf32, #tpu.memory_space<vmem>>, vector<16x16xf32>
      %362 = vector.broadcast %358 : f32 to vector<16x16xf32>
      %363 = arith.mulf %362, %360 : vector<16x16xf32>
      %364 = arith.addf %342, %363 : vector<16x16xf32>
      %365 = vector.broadcast %359 : f32 to vector<16x16xf32>
      %366 = arith.mulf %365, %361 : vector<16x16xf32>
      %367 = arith.addf %345, %366 : vector<16x16xf32>
      %c31 = arith.constant 31 : index
      %368 = memref.load %arg2[%c31] : memref<98xf32, #tpu.memory_space<smem>>
      %cst_172 = arith.constant 2.500000e-01 : f32
      %369 = arith.mulf %368, %cst_172 : f32
      %c80 = arith.constant 80 : index
      %370 = memref.load %arg2[%c80] : memref<98xf32, #tpu.memory_space<smem>>
      %c9_173 = arith.constant 9 : index
      %c128_174 = arith.constant 128 : index
      %371 = vector.load %arg5[%c9_173, %c128_174] : memref<32x272xf32, #tpu.memory_space<vmem>>, vector<16x16xf32>
      %c9_175 = arith.constant 9 : index
      %c128_176 = arith.constant 128 : index
      %372 = vector.load %arg6[%c9_175, %c128_176] : memref<32x272xf32, #tpu.memory_space<vmem>>, vector<16x16xf32>
      %373 = vector.broadcast %369 : f32 to vector<16x16xf32>
      %374 = arith.mulf %373, %371 : vector<16x16xf32>
      %375 = arith.addf %353, %374 : vector<16x16xf32>
      %376 = vector.broadcast %370 : f32 to vector<16x16xf32>
      %377 = arith.mulf %376, %372 : vector<16x16xf32>
      %378 = arith.addf %356, %377 : vector<16x16xf32>
      %c32 = arith.constant 32 : index
      %379 = memref.load %arg2[%c32] : memref<98xf32, #tpu.memory_space<smem>>
      %cst_177 = arith.constant 2.500000e-01 : f32
      %380 = arith.mulf %379, %cst_177 : f32
      %c81 = arith.constant 81 : index
      %381 = memref.load %arg2[%c81] : memref<98xf32, #tpu.memory_space<smem>>
      %c9_178 = arith.constant 9 : index
      %c129_179 = arith.constant 129 : index
      %382 = vector.load %arg5[%c9_178, %c129_179] : memref<32x272xf32, #tpu.memory_space<vmem>>, vector<16x16xf32>
      %c9_180 = arith.constant 9 : index
      %c129_181 = arith.constant 129 : index
      %383 = vector.load %arg6[%c9_180, %c129_181] : memref<32x272xf32, #tpu.memory_space<vmem>>, vector<16x16xf32>
      %384 = vector.broadcast %380 : f32 to vector<16x16xf32>
      %385 = arith.mulf %384, %382 : vector<16x16xf32>
      %386 = arith.addf %364, %385 : vector<16x16xf32>
      %387 = vector.broadcast %381 : f32 to vector<16x16xf32>
      %388 = arith.mulf %387, %383 : vector<16x16xf32>
      %389 = arith.addf %367, %388 : vector<16x16xf32>
      %c33 = arith.constant 33 : index
      %390 = memref.load %arg2[%c33] : memref<98xf32, #tpu.memory_space<smem>>
      %cst_182 = arith.constant 2.500000e-01 : f32
      %391 = arith.mulf %390, %cst_182 : f32
      %c82 = arith.constant 82 : index
      %392 = memref.load %arg2[%c82] : memref<98xf32, #tpu.memory_space<smem>>
      %c9_183 = arith.constant 9 : index
      %c130_184 = arith.constant 130 : index
      %393 = vector.load %arg5[%c9_183, %c130_184] : memref<32x272xf32, #tpu.memory_space<vmem>>, vector<16x16xf32>
      %c9_185 = arith.constant 9 : index
      %c130_186 = arith.constant 130 : index
      %394 = vector.load %arg6[%c9_185, %c130_186] : memref<32x272xf32, #tpu.memory_space<vmem>>, vector<16x16xf32>
      %395 = vector.broadcast %391 : f32 to vector<16x16xf32>
      %396 = arith.mulf %395, %393 : vector<16x16xf32>
      %397 = arith.addf %375, %396 : vector<16x16xf32>
      %398 = vector.broadcast %392 : f32 to vector<16x16xf32>
      %399 = arith.mulf %398, %394 : vector<16x16xf32>
      %400 = arith.addf %378, %399 : vector<16x16xf32>
      %c34 = arith.constant 34 : index
      %401 = memref.load %arg2[%c34] : memref<98xf32, #tpu.memory_space<smem>>
      %cst_187 = arith.constant 2.500000e-01 : f32
      %402 = arith.mulf %401, %cst_187 : f32
      %c83 = arith.constant 83 : index
      %403 = memref.load %arg2[%c83] : memref<98xf32, #tpu.memory_space<smem>>
      %c9_188 = arith.constant 9 : index
      %c131_189 = arith.constant 131 : index
      %404 = vector.load %arg5[%c9_188, %c131_189] : memref<32x272xf32, #tpu.memory_space<vmem>>, vector<16x16xf32>
      %c9_190 = arith.constant 9 : index
      %c131_191 = arith.constant 131 : index
      %405 = vector.load %arg6[%c9_190, %c131_191] : memref<32x272xf32, #tpu.memory_space<vmem>>, vector<16x16xf32>
      %406 = vector.broadcast %402 : f32 to vector<16x16xf32>
      %407 = arith.mulf %406, %404 : vector<16x16xf32>
      %408 = arith.addf %386, %407 : vector<16x16xf32>
      %409 = vector.broadcast %403 : f32 to vector<16x16xf32>
      %410 = arith.mulf %409, %405 : vector<16x16xf32>
      %411 = arith.addf %389, %410 : vector<16x16xf32>
      %c35 = arith.constant 35 : index
      %412 = memref.load %arg2[%c35] : memref<98xf32, #tpu.memory_space<smem>>
      %cst_192 = arith.constant 2.500000e-01 : f32
      %413 = arith.mulf %412, %cst_192 : f32
      %c84 = arith.constant 84 : index
      %414 = memref.load %arg2[%c84] : memref<98xf32, #tpu.memory_space<smem>>
      %c10_193 = arith.constant 10 : index
      %c125_194 = arith.constant 125 : index
      %415 = vector.load %arg5[%c10_193, %c125_194] : memref<32x272xf32, #tpu.memory_space<vmem>>, vector<16x16xf32>
      %c10_195 = arith.constant 10 : index
      %c125_196 = arith.constant 125 : index
      %416 = vector.load %arg6[%c10_195, %c125_196] : memref<32x272xf32, #tpu.memory_space<vmem>>, vector<16x16xf32>
      %417 = vector.broadcast %413 : f32 to vector<16x16xf32>
      %418 = arith.mulf %417, %415 : vector<16x16xf32>
      %419 = arith.addf %397, %418 : vector<16x16xf32>
      %420 = vector.broadcast %414 : f32 to vector<16x16xf32>
      %421 = arith.mulf %420, %416 : vector<16x16xf32>
      %422 = arith.addf %400, %421 : vector<16x16xf32>
      %c36 = arith.constant 36 : index
      %423 = memref.load %arg2[%c36] : memref<98xf32, #tpu.memory_space<smem>>
      %cst_197 = arith.constant 2.500000e-01 : f32
      %424 = arith.mulf %423, %cst_197 : f32
      %c85 = arith.constant 85 : index
      %425 = memref.load %arg2[%c85] : memref<98xf32, #tpu.memory_space<smem>>
      %c10_198 = arith.constant 10 : index
      %c126_199 = arith.constant 126 : index
      %426 = vector.load %arg5[%c10_198, %c126_199] : memref<32x272xf32, #tpu.memory_space<vmem>>, vector<16x16xf32>
      %c10_200 = arith.constant 10 : index
      %c126_201 = arith.constant 126 : index
      %427 = vector.load %arg6[%c10_200, %c126_201] : memref<32x272xf32, #tpu.memory_space<vmem>>, vector<16x16xf32>
      %428 = vector.broadcast %424 : f32 to vector<16x16xf32>
      %429 = arith.mulf %428, %426 : vector<16x16xf32>
      %430 = arith.addf %408, %429 : vector<16x16xf32>
      %431 = vector.broadcast %425 : f32 to vector<16x16xf32>
      %432 = arith.mulf %431, %427 : vector<16x16xf32>
      %433 = arith.addf %411, %432 : vector<16x16xf32>
      %c37 = arith.constant 37 : index
      %434 = memref.load %arg2[%c37] : memref<98xf32, #tpu.memory_space<smem>>
      %cst_202 = arith.constant 2.500000e-01 : f32
      %435 = arith.mulf %434, %cst_202 : f32
      %c86 = arith.constant 86 : index
      %436 = memref.load %arg2[%c86] : memref<98xf32, #tpu.memory_space<smem>>
      %c10_203 = arith.constant 10 : index
      %c127_204 = arith.constant 127 : index
      %437 = vector.load %arg5[%c10_203, %c127_204] : memref<32x272xf32, #tpu.memory_space<vmem>>, vector<16x16xf32>
      %c10_205 = arith.constant 10 : index
      %c127_206 = arith.constant 127 : index
      %438 = vector.load %arg6[%c10_205, %c127_206] : memref<32x272xf32, #tpu.memory_space<vmem>>, vector<16x16xf32>
      %439 = vector.broadcast %435 : f32 to vector<16x16xf32>
      %440 = arith.mulf %439, %437 : vector<16x16xf32>
      %441 = arith.addf %419, %440 : vector<16x16xf32>
      %442 = vector.broadcast %436 : f32 to vector<16x16xf32>
      %443 = arith.mulf %442, %438 : vector<16x16xf32>
      %444 = arith.addf %422, %443 : vector<16x16xf32>
      %c38 = arith.constant 38 : index
      %445 = memref.load %arg2[%c38] : memref<98xf32, #tpu.memory_space<smem>>
      %cst_207 = arith.constant 2.500000e-01 : f32
      %446 = arith.mulf %445, %cst_207 : f32
      %c87 = arith.constant 87 : index
      %447 = memref.load %arg2[%c87] : memref<98xf32, #tpu.memory_space<smem>>
      %c10_208 = arith.constant 10 : index
      %c128_209 = arith.constant 128 : index
      %448 = vector.load %arg5[%c10_208, %c128_209] : memref<32x272xf32, #tpu.memory_space<vmem>>, vector<16x16xf32>
      %c10_210 = arith.constant 10 : index
      %c128_211 = arith.constant 128 : index
      %449 = vector.load %arg6[%c10_210, %c128_211] : memref<32x272xf32, #tpu.memory_space<vmem>>, vector<16x16xf32>
      %450 = vector.broadcast %446 : f32 to vector<16x16xf32>
      %451 = arith.mulf %450, %448 : vector<16x16xf32>
      %452 = arith.addf %430, %451 : vector<16x16xf32>
      %453 = vector.broadcast %447 : f32 to vector<16x16xf32>
      %454 = arith.mulf %453, %449 : vector<16x16xf32>
      %455 = arith.addf %433, %454 : vector<16x16xf32>
      %c39 = arith.constant 39 : index
      %456 = memref.load %arg2[%c39] : memref<98xf32, #tpu.memory_space<smem>>
      %cst_212 = arith.constant 2.500000e-01 : f32
      %457 = arith.mulf %456, %cst_212 : f32
      %c88 = arith.constant 88 : index
      %458 = memref.load %arg2[%c88] : memref<98xf32, #tpu.memory_space<smem>>
      %c10_213 = arith.constant 10 : index
      %c129_214 = arith.constant 129 : index
      %459 = vector.load %arg5[%c10_213, %c129_214] : memref<32x272xf32, #tpu.memory_space<vmem>>, vector<16x16xf32>
      %c10_215 = arith.constant 10 : index
      %c129_216 = arith.constant 129 : index
      %460 = vector.load %arg6[%c10_215, %c129_216] : memref<32x272xf32, #tpu.memory_space<vmem>>, vector<16x16xf32>
      %461 = vector.broadcast %457 : f32 to vector<16x16xf32>
      %462 = arith.mulf %461, %459 : vector<16x16xf32>
      %463 = arith.addf %441, %462 : vector<16x16xf32>
      %464 = vector.broadcast %458 : f32 to vector<16x16xf32>
      %465 = arith.mulf %464, %460 : vector<16x16xf32>
      %466 = arith.addf %444, %465 : vector<16x16xf32>
      %c40 = arith.constant 40 : index
      %467 = memref.load %arg2[%c40] : memref<98xf32, #tpu.memory_space<smem>>
      %cst_217 = arith.constant 2.500000e-01 : f32
      %468 = arith.mulf %467, %cst_217 : f32
      %c89 = arith.constant 89 : index
      %469 = memref.load %arg2[%c89] : memref<98xf32, #tpu.memory_space<smem>>
      %c10_218 = arith.constant 10 : index
      %c130_219 = arith.constant 130 : index
      %470 = vector.load %arg5[%c10_218, %c130_219] : memref<32x272xf32, #tpu.memory_space<vmem>>, vector<16x16xf32>
      %c10_220 = arith.constant 10 : index
      %c130_221 = arith.constant 130 : index
      %471 = vector.load %arg6[%c10_220, %c130_221] : memref<32x272xf32, #tpu.memory_space<vmem>>, vector<16x16xf32>
      %472 = vector.broadcast %468 : f32 to vector<16x16xf32>
      %473 = arith.mulf %472, %470 : vector<16x16xf32>
      %474 = arith.addf %452, %473 : vector<16x16xf32>
      %475 = vector.broadcast %469 : f32 to vector<16x16xf32>
      %476 = arith.mulf %475, %471 : vector<16x16xf32>
      %477 = arith.addf %455, %476 : vector<16x16xf32>
      %c41 = arith.constant 41 : index
      %478 = memref.load %arg2[%c41] : memref<98xf32, #tpu.memory_space<smem>>
      %cst_222 = arith.constant 2.500000e-01 : f32
      %479 = arith.mulf %478, %cst_222 : f32
      %c90 = arith.constant 90 : index
      %480 = memref.load %arg2[%c90] : memref<98xf32, #tpu.memory_space<smem>>
      %c10_223 = arith.constant 10 : index
      %c131_224 = arith.constant 131 : index
      %481 = vector.load %arg5[%c10_223, %c131_224] : memref<32x272xf32, #tpu.memory_space<vmem>>, vector<16x16xf32>
      %c10_225 = arith.constant 10 : index
      %c131_226 = arith.constant 131 : index
      %482 = vector.load %arg6[%c10_225, %c131_226] : memref<32x272xf32, #tpu.memory_space<vmem>>, vector<16x16xf32>
      %483 = vector.broadcast %479 : f32 to vector<16x16xf32>
      %484 = arith.mulf %483, %481 : vector<16x16xf32>
      %485 = arith.addf %463, %484 : vector<16x16xf32>
      %486 = vector.broadcast %480 : f32 to vector<16x16xf32>
      %487 = arith.mulf %486, %482 : vector<16x16xf32>
      %488 = arith.addf %466, %487 : vector<16x16xf32>
      %c42 = arith.constant 42 : index
      %489 = memref.load %arg2[%c42] : memref<98xf32, #tpu.memory_space<smem>>
      %cst_227 = arith.constant 2.500000e-01 : f32
      %490 = arith.mulf %489, %cst_227 : f32
      %c91 = arith.constant 91 : index
      %491 = memref.load %arg2[%c91] : memref<98xf32, #tpu.memory_space<smem>>
      %c11_228 = arith.constant 11 : index
      %c125_229 = arith.constant 125 : index
      %492 = vector.load %arg5[%c11_228, %c125_229] : memref<32x272xf32, #tpu.memory_space<vmem>>, vector<16x16xf32>
      %c11_230 = arith.constant 11 : index
      %c125_231 = arith.constant 125 : index
      %493 = vector.load %arg6[%c11_230, %c125_231] : memref<32x272xf32, #tpu.memory_space<vmem>>, vector<16x16xf32>
      %494 = vector.broadcast %490 : f32 to vector<16x16xf32>
      %495 = arith.mulf %494, %492 : vector<16x16xf32>
      %496 = arith.addf %474, %495 : vector<16x16xf32>
      %497 = vector.broadcast %491 : f32 to vector<16x16xf32>
      %498 = arith.mulf %497, %493 : vector<16x16xf32>
      %499 = arith.addf %477, %498 : vector<16x16xf32>
      %c43 = arith.constant 43 : index
      %500 = memref.load %arg2[%c43] : memref<98xf32, #tpu.memory_space<smem>>
      %cst_232 = arith.constant 2.500000e-01 : f32
      %501 = arith.mulf %500, %cst_232 : f32
      %c92 = arith.constant 92 : index
      %502 = memref.load %arg2[%c92] : memref<98xf32, #tpu.memory_space<smem>>
      %c11_233 = arith.constant 11 : index
      %c126_234 = arith.constant 126 : index
      %503 = vector.load %arg5[%c11_233, %c126_234] : memref<32x272xf32, #tpu.memory_space<vmem>>, vector<16x16xf32>
      %c11_235 = arith.constant 11 : index
      %c126_236 = arith.constant 126 : index
      %504 = vector.load %arg6[%c11_235, %c126_236] : memref<32x272xf32, #tpu.memory_space<vmem>>, vector<16x16xf32>
      %505 = vector.broadcast %501 : f32 to vector<16x16xf32>
      %506 = arith.mulf %505, %503 : vector<16x16xf32>
      %507 = arith.addf %485, %506 : vector<16x16xf32>
      %508 = vector.broadcast %502 : f32 to vector<16x16xf32>
      %509 = arith.mulf %508, %504 : vector<16x16xf32>
      %510 = arith.addf %488, %509 : vector<16x16xf32>
      %c44 = arith.constant 44 : index
      %511 = memref.load %arg2[%c44] : memref<98xf32, #tpu.memory_space<smem>>
      %cst_237 = arith.constant 2.500000e-01 : f32
      %512 = arith.mulf %511, %cst_237 : f32
      %c93 = arith.constant 93 : index
      %513 = memref.load %arg2[%c93] : memref<98xf32, #tpu.memory_space<smem>>
      %c11_238 = arith.constant 11 : index
      %c127_239 = arith.constant 127 : index
      %514 = vector.load %arg5[%c11_238, %c127_239] : memref<32x272xf32, #tpu.memory_space<vmem>>, vector<16x16xf32>
      %c11_240 = arith.constant 11 : index
      %c127_241 = arith.constant 127 : index
      %515 = vector.load %arg6[%c11_240, %c127_241] : memref<32x272xf32, #tpu.memory_space<vmem>>, vector<16x16xf32>
      %516 = vector.broadcast %512 : f32 to vector<16x16xf32>
      %517 = arith.mulf %516, %514 : vector<16x16xf32>
      %518 = arith.addf %496, %517 : vector<16x16xf32>
      %519 = vector.broadcast %513 : f32 to vector<16x16xf32>
      %520 = arith.mulf %519, %515 : vector<16x16xf32>
      %521 = arith.addf %499, %520 : vector<16x16xf32>
      %c45 = arith.constant 45 : index
      %522 = memref.load %arg2[%c45] : memref<98xf32, #tpu.memory_space<smem>>
      %cst_242 = arith.constant 2.500000e-01 : f32
      %523 = arith.mulf %522, %cst_242 : f32
      %c94 = arith.constant 94 : index
      %524 = memref.load %arg2[%c94] : memref<98xf32, #tpu.memory_space<smem>>
      %c11_243 = arith.constant 11 : index
      %c128_244 = arith.constant 128 : index
      %525 = vector.load %arg5[%c11_243, %c128_244] : memref<32x272xf32, #tpu.memory_space<vmem>>, vector<16x16xf32>
      %c11_245 = arith.constant 11 : index
      %c128_246 = arith.constant 128 : index
      %526 = vector.load %arg6[%c11_245, %c128_246] : memref<32x272xf32, #tpu.memory_space<vmem>>, vector<16x16xf32>
      %527 = vector.broadcast %523 : f32 to vector<16x16xf32>
      %528 = arith.mulf %527, %525 : vector<16x16xf32>
      %529 = arith.addf %507, %528 : vector<16x16xf32>
      %530 = vector.broadcast %524 : f32 to vector<16x16xf32>
      %531 = arith.mulf %530, %526 : vector<16x16xf32>
      %532 = arith.addf %510, %531 : vector<16x16xf32>
      %c46 = arith.constant 46 : index
      %533 = memref.load %arg2[%c46] : memref<98xf32, #tpu.memory_space<smem>>
      %cst_247 = arith.constant 2.500000e-01 : f32
      %534 = arith.mulf %533, %cst_247 : f32
      %c95 = arith.constant 95 : index
      %535 = memref.load %arg2[%c95] : memref<98xf32, #tpu.memory_space<smem>>
      %c11_248 = arith.constant 11 : index
      %c129_249 = arith.constant 129 : index
      %536 = vector.load %arg5[%c11_248, %c129_249] : memref<32x272xf32, #tpu.memory_space<vmem>>, vector<16x16xf32>
      %c11_250 = arith.constant 11 : index
      %c129_251 = arith.constant 129 : index
      %537 = vector.load %arg6[%c11_250, %c129_251] : memref<32x272xf32, #tpu.memory_space<vmem>>, vector<16x16xf32>
      %538 = vector.broadcast %534 : f32 to vector<16x16xf32>
      %539 = arith.mulf %538, %536 : vector<16x16xf32>
      %540 = arith.addf %518, %539 : vector<16x16xf32>
      %541 = vector.broadcast %535 : f32 to vector<16x16xf32>
      %542 = arith.mulf %541, %537 : vector<16x16xf32>
      %543 = arith.addf %521, %542 : vector<16x16xf32>
      %c47 = arith.constant 47 : index
      %544 = memref.load %arg2[%c47] : memref<98xf32, #tpu.memory_space<smem>>
      %cst_252 = arith.constant 2.500000e-01 : f32
      %545 = arith.mulf %544, %cst_252 : f32
      %c96 = arith.constant 96 : index
      %546 = memref.load %arg2[%c96] : memref<98xf32, #tpu.memory_space<smem>>
      %c11_253 = arith.constant 11 : index
      %c130_254 = arith.constant 130 : index
      %547 = vector.load %arg5[%c11_253, %c130_254] : memref<32x272xf32, #tpu.memory_space<vmem>>, vector<16x16xf32>
      %c11_255 = arith.constant 11 : index
      %c130_256 = arith.constant 130 : index
      %548 = vector.load %arg6[%c11_255, %c130_256] : memref<32x272xf32, #tpu.memory_space<vmem>>, vector<16x16xf32>
      %549 = vector.broadcast %545 : f32 to vector<16x16xf32>
      %550 = arith.mulf %549, %547 : vector<16x16xf32>
      %551 = arith.addf %529, %550 : vector<16x16xf32>
      %552 = vector.broadcast %546 : f32 to vector<16x16xf32>
      %553 = arith.mulf %552, %548 : vector<16x16xf32>
      %554 = arith.addf %532, %553 : vector<16x16xf32>
      %c48 = arith.constant 48 : index
      %555 = memref.load %arg2[%c48] : memref<98xf32, #tpu.memory_space<smem>>
      %cst_257 = arith.constant 2.500000e-01 : f32
      %556 = arith.mulf %555, %cst_257 : f32
      %c97 = arith.constant 97 : index
      %557 = memref.load %arg2[%c97] : memref<98xf32, #tpu.memory_space<smem>>
      %c11_258 = arith.constant 11 : index
      %c131_259 = arith.constant 131 : index
      %558 = vector.load %arg5[%c11_258, %c131_259] : memref<32x272xf32, #tpu.memory_space<vmem>>, vector<16x16xf32>
      %c11_260 = arith.constant 11 : index
      %c131_261 = arith.constant 131 : index
      %559 = vector.load %arg6[%c11_260, %c131_261] : memref<32x272xf32, #tpu.memory_space<vmem>>, vector<16x16xf32>
      %560 = vector.broadcast %556 : f32 to vector<16x16xf32>
      %561 = arith.mulf %560, %558 : vector<16x16xf32>
      %562 = arith.addf %540, %561 : vector<16x16xf32>
      %563 = vector.broadcast %557 : f32 to vector<16x16xf32>
      %564 = arith.mulf %563, %559 : vector<16x16xf32>
      %565 = arith.addf %543, %564 : vector<16x16xf32>
      %566 = arith.addf %562, %565 : vector<16x16xf32>
      %567 = arith.addf %551, %554 : vector<16x16xf32>
      %568 = arith.addf %566, %567 : vector<16x16xf32>
      %569 = arith.negf %568 : vector<16x16xf32>
      %570 = math.exp %569 : vector<16x16xf32>
      %cst_262 = arith.constant 1.000000e+00 : f32
      %571 = vector.broadcast %cst_262 : f32 to vector<16x16xf32>
      %572 = arith.addf %571, %570 : vector<16x16xf32>
      %573 = arith.divf %571, %572 : vector<16x16xf32>
      %c0_263 = arith.constant 0 : index
      %c0_264 = arith.constant 0 : index
      %c0_265 = arith.constant 0 : index
      %c0_266 = arith.constant 0 : index
      %574 = vector.load %arg4[%c0_263, %c0_264, %c0_265, %c0_266] : memref<1x1x16x16xf32, #tpu.memory_space<vmem>>, vector<1x1x16x16xf32>
      %575 = vector.shape_cast %574 : vector<1x1x16x16xf32> to vector<16x16xf32>
      %576 = vector.shape_cast %573 : vector<16x16xf32> to vector<1x1x16x16xf32>
      tpu.vector_store %arg4[%c0_263, %c0_264, %c0_265, %c0_266], %576 {strides = array<i32>} : memref<1x1x16x16xf32, #tpu.memory_space<vmem>>, vector<1x1x16x16xf32>,
    } else {
    }
    return
  }
  func.func @transform_0(%arg0: i32, %arg1: i32, %arg2: memref<98xf32, #tpu.memory_space<smem>>) -> (i32, i32, i32, i32) {
    %c0_i32 = arith.constant 0 : i32
    %c0_i32_0 = arith.constant 0 : i32
    %c0_i32_1 = arith.constant 0 : i32
    return %arg0, %arg1, %c0_i32, %c0_i32_0 : i32, i32, i32, i32
  }
  func.func @transform_1(%arg0: i32, %arg1: i32, %arg2: memref<98xf32, #tpu.memory_space<smem>>) -> (i32, i32, i32, i32) {
    %c0_i32 = arith.constant 0 : i32
    %c0_i32_0 = arith.constant 0 : i32
    %c0_i32_1 = arith.constant 0 : i32
    %c0_i32_2 = arith.constant 0 : i32
    return %arg0, %c0_i32, %c0_i32_0, %c0_i32_1 : i32, i32, i32, i32
  }
}

</mosaic_0001>

<bundles_post_ra>
// kernel: tpu_custom_call.1
= control target key start
LH: loop header
LB: loop body
LE: loop exit
PB: predicated region body
PF: predicated region fallthrough
CT: control target
= control target key end

     0   :  { %s8206_s0 = inlined_call_operand.hbm [shape: f32[98], index: 0, kind: input, shape index: {}]   ;;  %s8207_s1 = inlined_call_operand.hbm [shape: f32[2,4,16,16], index: 1, kind: input, shape index: {}]   ;;  %s8208_s2 = inlined_call_operand.hbm [shape: f32[2,1,16,16], index: 2, kind: output, shape index: {}]  }
   0x1   :  { %s4080_s11 = scalar_lea.hbm %s8206_s0, 16 }
   0x2   :  { %p4081_p0 = scmp.ne.s32.totalorder %s8206_s0, %s4080_s11  ;;  %p4084_p1 = scmp.lt.u32.totalorder %s4080_s11, %s8206_s0 }
   0x4   :  { %p4086_p2 = pnand %p4084_p1, %p4081_p0 }
   0x6   :  { %4089 = shalt.err (!%p4086_p2)  }
   0x7   :  { %s4206_s16 = smov [#allocation5]  }
   0x8   :  { %8 = dma.hbm_to_smem %s8206_s0, 16, %s4206_s16, [#allocation4] }
   0x9   :  { %4172 = dma.done.wait [#allocation4], 16 }
   0xa   :  { %4173 = vsyncadd [#allocation4], 4294967280 }
   0xb   :  { %10 = sfence }
   0xc   :  { %11 = vsyncpa [#allocation7], 0 }
   0xd   :  { %13 = vsyncpa [#allocation7 + $0x1], 0 }
   0xe   :  { %14 = vsyncpa [#allocation8], 0 }
   0xf   :  { %16 = vsyncpa [#allocation8 + $0x1], 0  ;;  %s4249_s19 = smov 0   ;;  %s4251_s20 = smov 0  }
  0x10   :  { %s4253_s21 = smov 0   ;;  %s4255_s22 = smov 0  }
  0x11   :  { %s4257_s23 = smov 0   ;;  %s4259_s24 = smov 0  }
  0x12 LB: > { %s3804_s0 = sadd.s32 4294967295, %s4204_s24   ;;  %s3805_s25 = sadd.s32 4294967294, %s4204_s24   ;;  %s4204_s24 = sphi %s4259_s24, %s22_s24   ;;  %s4200_s23 = sphi %s4257_s23, %s9037_s23   ;;  %s4196_s22 = sphi %s4255_s22, %s9036_s22   ;;  %s4192_s21 = sphi %s4253_s21, %s9035_s21   ;;  %s4188_s20 = sphi %s4251_s20, %s9034_s20   ;;  %s4184_s19 = sphi %s4249_s19, %s9033_s19  }
  0x13   : > { %s34_s26 = sadd.s32 1, %s4200_s23  ;;  %s43_s27 = sadd.s32 1, %s4192_s21 }
  0x14   : > { %p36_p3 = scmp.ge.s32.totalorder %s34_s26, 2  ;;  %p50_p4 = scmp.ne.s32.totalorder %s4192_s21, %s4188_s20 }
  0x15   : > { %p51_p5 = scmp.eq.s32.totalorder %s4204_s24, 0  ;;  %p56_p6 = scmp.ne.s32.totalorder %s4188_s20, %s4184_s19 }
  0x16   : > { %s9039_s26 = smov (%p36_p3, %s34_s26), 0  ;;  %p57_p8 = scmp.eq.s32.totalorder %s3804_s0, 0 }
  0x17   : > { %p4290_p7 = por %p51_p5, %p50_p4  ;;  %s38_s29 = ssub.s32 %s4200_s23, %s9039_s26 }
  0x18   : > { %p80_p9 = scmp.eq.s32.totalorder %s3804_s0, 1  ;;  %p41_p10 = scmp.eq.s32.totalorder %s38_s29, 0 }
  0x19   : > { %p4296_p11 = por %p57_p8, %p56_p6  ;;  %p86_p13 = scmp.eq.s32.totalorder %s3805_s25, 1 }
  0x1a   : > { %p4300_p12 = por %p80_p9, %p50_p4  ;;  %p3942_p2 = scmp.lt.s32.totalorder %s4204_s24, 2 }
  0x1b   : > { %s4305_s4 = scalar_select %p41_p10, %s4192_s21, %s43_s27  }
  0x1c   : > { %s8409_s3 = scalar_select %p4300_p12, 1, 0 }
  0x1d   : > { %p4307_p0 = por %p86_p13, %p56_p6  ;;  %s106_s6 = sand.u32 1, %s4192_s21  }
  0x1e   : > { %s3808_s7 = sshll.u32 %s106_s6, 6  ;;  %s3928_s8 = sshll.u32 %s4200_s23, 10 }
  0x1f   : > { %s8410_s5 = scalar_select %p4307_p0, 1, 0 }
  0x20   : > { %s4318_s11 = scalar_lea.hbm %s8207_s1, %s3928_s8  ;;  %s110_s12 = scalar_lea.vmem [#allocation6], %s3808_s7 }
  0x21   : > { %s120_s13 = sshll.u32 %s110_s12, 4  ;;  %p4324_p3 = pnand %p3942_p2, %p4290_p7  ;;  %s4320_s13 = int_to_ptr.vmem [resolvable:$true] %s120_s13 }
  0x22   : > { %s4329_s15 = scalar_lea.sflag [#allocation7], %s106_s6  ;;  %s4090_s16 = scalar_lea.hbm %s4318_s11, 1024 }
  0x23   : > { %p4091_p5 = scmp.ne.s32.totalorder %s4318_s11, %s4090_s16  ;;  %p4092_p6 = pneg %p4324_p3 }
  0x24   : > { %s4095_s0 = scalar_lea.hbm %s8207_s1, 2048  ;;  %p4096_p7 = scmp.lt.u32.totalorder %s4318_s11, %s8207_s1 }
  0x25   : > { %p4093_p8 = pnand %p4092_p6, %p4091_p5  ;;  %p4097_p10 = scmp.lt.u32.totalorder %s4095_s0, %s4090_s16 }
  0x26   : > { %p4099_p2 = scmp.lt.u32.totalorder %s4090_s16, %s4318_s11 }
  0x27   : > { %p4094_p9 = pneg %p4093_p8  ;;  %p4098_p13 = por %p4097_p10, %p4096_p7 }
  0x29   : > { %p4100_p1 = por %p4099_p2, %p4098_p13 }
  0x2b   : > { %p4101_p4 = pnand %p4100_p1, %p4094_p9 }
  0x2d   : > { %4104 = shalt.err (!%p4101_p4)
}
  0x2e   : > { %s4105_s28 = scalar_lea.vmem %s4320_s13, 1024  ;;  %s4207_s29 = smov [#allocation6]  }
  0x2f   : > { %p4106_p5 = scmp.ne.s32.totalorder %s4320_s13, %s4105_s28  ;;  %s4110_s6 = sshll.u32 %s4207_s29, 4  ;;  %s4111_s6 = int_to_ptr.vmem [resolvable:$false] %s4110_s6 }
  0x30   : > { %s4112_s7 = scalar_lea.vmem %s4111_s6, 2048  ;;  %p4113_p12 = scmp.lt.s32.totalorder %s4320_s13, %s4111_s6 }
  0x31   : > { %p4108_p8 = pnand %p4106_p5, %p4092_p6  ;;  %p4114_p7 = scmp.lt.s32.totalorder %s4112_s7, %s4105_s28 }
  0x33   : > { %p4109_p0 = pneg %p4108_p8  ;;  %p4115_p10 = por %p4114_p7, %p4113_p12 }
  0x35   : > { %p4116_p13 = pnand %p4115_p10, %p4109_p0 }
  0x37   : > { %4119 = shalt.err (!%p4116_p13)
}
  0x38   : > { %s4208_s8 = smov 128   ;;  %s4209_s9 = smov 8  }
  0x39   : > { %3937 = dma.hbm_to_vmem [thread:$0]  (!%p4324_p3), %s4318_s11, 1024, %s4320_s13, %s4329_s15, %s4208_s8, %s4208_s8, %s4209_s9  }
  0x3a   : > { %p128_p1 = scmp.lt.s32.totalorder %s4204_s24, 3  ;;  %p8412_p4 = scmp.ge.s32.totalorder %s4204_s24, 1 }
  0x3c   : > { %p129_p6 = pnand %p8412_p4, %p128_p1 }
  0x3e   : > { %132 = sbr.rel (%p129_p6) target bundleno = 1035 (0x40b), region = 24 }
  0x45   : > { %s4361_s10 = sand.u32 1, %s4188_s20  }
  0x46   : > { %s3812_s12 = sshll.u32 %s4361_s10, 6  ;;  %s135_s16 = scalar_lea.sflag [#allocation7], %s4361_s10 }
  0x47   : > { %s4365_s17 = scalar_lea.vmem [#allocation6], %s3812_s12 }
  0x48   : > { %4175 = dma.done.wait (%p4296_p11), %s135_s16, 1024  }
  0x49   : > { %4177 = vsyncadd (%p4296_p11), %s135_s16, 4294966272  ;;  %vm187_vm0 = vcmask 130048   ;;  %v4210_v0 = vmov 0.0   ;;  %s3824_s11 = sld [smem:[#allocation5 + $0x33]]  ;;  %s3823_s30 = sld [smem:[#allocation5 + $0x2]]  ;;  %v158_v2 = vld [vmem:[%s4365_s17] sm:$0xff] }
  0x4a   : > { %198 = vst [vmem:[#allocation3] sm:$0xff] %v4210_v0  ;;  %185 = vst [vmem:[#allocation2] sm:$0xff] %v4210_v0  ;;  %v3814_v3 = vld [vmem:[%s4365_s17 + $0x10] sm:$0xff]  ;;  %v3816_v4 = vld [vmem:[%s4365_s17 + $0x20] sm:$0xff]  ;;  %s4211_s14 = smov 126   ;;  %s3825_s15 = sld [smem:[#allocation5 + $0x3]] }
  0x4b   : > { %186 = vst [vmem:[#allocation2 + $0x8] sm:$0xff] %v4210_v0  ;;  %189 = vst [vmem:[#allocation2 + $0x18] sm:$0xff] %v4210_v0  ;;  %v163_v8 = vadd.f32 %v3814_v3, %v158_v2  ;;  %v165_v9 = vmax.f32 %v158_v2, %v3814_v3  ;;  %v3818_v13 = vld [vmem:[%s4365_s17 + $0x30] sm:$0xff]  ;;  %v159_v16 = vld [vmem:[%s4365_s17 + $0x8] sm:$0xff]  ;;  %s3826_s0 = sld [smem:[#allocation5 + $0x34]]  ;;  %s4425_s28 = sld [smem:[#allocation5 + $0x5]] }
  0x4c   : > { %190 = vst [vmem:[#allocation2 + $0x20] sm:$0xff] %v4210_v0  ;;  %192 = vst [vmem:[#allocation2 + $0x30] sm:$0xff] %v4210_v0  ;;  %v3815_v17 = vld [vmem:[%s4365_s17 + $0x18] sm:$0xff]  ;;  %v3817_v18 = vld [vmem:[%s4365_s17 + $0x28] sm:$0xff]  ;;  %s3827_s25 = sld [smem:[#allocation5 + $0x4]]  ;;  %s4429_s29 = sld [smem:[#allocation5 + $0x6]] }
  0x4d   : > { %193 = vst [vmem:[#allocation2 + $0x38] sm:$0xff] %v4210_v0  ;;  %195 = vst [vmem:[#allocation2 + $0x48] sm:$0xff] %v4210_v0  ;;  %v170_v19 = vadd.f32 %v3816_v4, %v163_v8  ;;  %v164_v20 = vadd.f32 %v3815_v17, %v159_v16  ;;  %v172_v21 = vmax.f32 %v165_v9, %v3816_v4  ;;  %v3819_v23 = vld [vmem:[%s4365_s17 + $0x38] sm:$0xff]  ;;  %s3828_s6 = sld [smem:[#allocation5 + $0x35]]  ;;  %s4431_s7 = sld [smem:[#allocation5 + $0xa]]  ;;  %vm600_vm1 = vcmask 1046528  }
  0x4e   : > { %196 = vst [vmem:[#allocation2 + $0x50] sm:$0xff] %v4210_v0  ;;  %199 = vst [vmem:[#allocation3 + $0x8] sm:$0xff] %v4210_v0  ;;  %v166_v24 = vmax.f32 %v159_v16, %v3815_v17  ;;  %s3830_s8 = sld [smem:[#allocation5 + $0x36]]  ;;  %s4437_s9 = sld [smem:[#allocation5 + $0x7]]  ;;  %vm1148_vm2 = vcmask 1045504   ;;  %vm1626_vm3 = vcmask 1044480  }
  0x4f   : > { %201 = vst [vmem:[#allocation3 + $0x18] sm:$0xff] %v4210_v0  ;;  %202 = vst [vmem:[#allocation3 + $0x20] sm:$0xff] %v4210_v0  ;;  %v4371_v1 = vstv %s3824_s11  ;;  %s305_s13 = smul.f32 0.25, %s3823_s30  ;;  %v177_v25 = vadd.f32 %v3818_v13, %v170_v19  ;;  %v171_v26 = vadd.f32 %v3817_v18, %v164_v20  ;;  %v179_v27 = vmax.f32 %v172_v21, %v3818_v13  ;;  %s4439_s12 = sld [smem:[#allocation5 + $0xb]] }
  0x50   : > { %204 = vst [vmem:[#allocation3 + $0x30] sm:$0xff] %v4210_v0  ;;  %205 = vst [vmem:[#allocation3 + $0x38] sm:$0xff] %v4210_v0  ;;  %v173_v28 = vmax.f32 %v166_v24, %v3817_v18  ;;  %v351_v36 = vmul.f32 0.0, %v4371_v1  ;;  %s389_s18 = smul.f32 0.25, %s3825_s15  ;;  %s3832_s17 = sld [smem:[#allocation5 + $0x37]]  ;;  %vm2100_vm4 = vcmask 1043456  }
  0x51   : > { %207 = vst [vmem:[#allocation3 + $0x48] sm:$0xff] %v4210_v0  ;;  %208 = vst [vmem:[#allocation3 + $0x50] sm:$0xff] %v4210_v0  ;;  %v243_v5 = vld [vmem:[#allocation3] sm:$0xe0]  ;;  %v307_v12 = vstv %s305_s13  ;;  %v178_v30 = vadd.f32 %v3819_v23, %v171_v26  ;;  %v413_v48 = vstv %s3826_s0  ;;  %s483_s16 = smul.f32 0.25, %s4425_s28  ;;  %s4212_s11 = smov 124  }
  0x52   : > { %v237_v7 = vld [vmem:[#allocation2] sm:$0xe0]  ;;  %v349_v10 = vmul.f32 %v4371_v1, %v243_v5  ;;  %v310_v15 = vmul.f32 0.0, %v307_v12  ;;  %v4387_v22 = vld [vmem:[#allocation2 + $0x8] sm:$0xe0]  ;;  %210 = vst.msk [vmem:[#allocation2 + $0x20] sm:$0xff] %vm187_vm0, %v177_v25  ;;  %v180_v32 = vmax.f32 %v173_v28, %v3819_v23  ;;  %v391_v42 = vstv %s389_s18 }
  0x53   : > { %v308_v14 = vmul.f32 %v307_v12, %v237_v7  ;;  %v309_v29 = vmul.f32 %v307_v12, %v4387_v22  ;;  %212 = vst.msk [vmem:[#allocation3 + $0x20] sm:$0xff] %vm187_vm0, %v179_v27  ;;  %v241_v31 = vld [vmem:[#allocation2 + $0x30] sm:$0x1f]  ;;  %211 = vst.msk [vmem:[#allocation2 + $0x38] sm:$0xff] %vm187_vm0, %v178_v30  ;;  %v392_v45 = vmul.f32 %v391_v42, %v4387_v22  ;;  %s436_s27 = smul.f32 0.25, %s3827_s25  ;;  %v460_v56 = vstv %s3828_s6  ;;  %s4448_s15 = sld [smem:[#allocation5 + $0x3b]] }
  0x54   : > { %361 = vrot.lane.b32.xlu0 %v349_v10, %s4211_s14  ;;  %213 = vst.msk [vmem:[#allocation3 + $0x38] sm:$0xff] %vm187_vm0, %v180_v32  ;;  %v312_v33 = vmul.f32 %v307_v12, %v241_v31  ;;  %s530_s30 = smul.f32 0.25, %s4429_s29  ;;  %s4452_s18 = sld [smem:[#allocation5 + $0xc]]  ;;  %v485_v59 = vstv %s483_s16  ;;  %v507_v60 = vstv %s3830_s8  ;;  %v4461_v62 = vld [vmem:[#allocation2 + $0x8] sm:$0xc0]  ;;  %vm332_vm5 = vcmask 1031168  }
  0x55   : > { %v4376_v6 = vld [vmem:[#allocation3 + $0x8] sm:$0xe0]  ;;  %v438_v51 = vstv %s436_s27  ;;  %s897_s13 = smul.f32 0.25, %s4431_s7  ;;  %s4459_s25 = sld [smem:[#allocation5 + $0x3c]]  ;;  %v486_v3 = vmul.f32 %v485_v59, %v4387_v22  ;;  %vm2586_vm6 = vcmask 1042432   ;;  %vm623_vm7 = vcmask 7168  }
  0x56   : > { %v350_v11 = vmul.f32 %v4371_v1, %v4376_v6  ;;  %v414_v52 = vmul.f32 %v413_v48, %v4376_v6  ;;  %v439_v53 = vmul.f32 %v438_v51, %v4387_v22  ;;  %v4456_v61 = vstv %s530_s30  ;;  %s577_s0 = smul.f32 0.25, %s4437_s9  ;;  %s4464_s28 = sld [smem:[#allocation5 + $0xd]]  ;;  %v4497_v18 = vld [vmem:[#allocation3 + $0x8] sm:$0xc0] }
  0x57   : > { %v247_v38 = vld [vmem:[#allocation3 + $0x30] sm:$0x1f]  ;;  %v899_v63 = vstv %s897_s13  ;;  %s954_s27 = smul.f32 0.25, %s4439_s12  ;;  %v461_v0 = vmul.f32 %v460_v56, %v4376_v6  ;;  %v4472_v4 = vmul.f32 %v507_v60, %v4376_v6  ;;  %v4476_v5 = vmul.f32 %v4456_v61, %v4387_v22  ;;  %s4493_s29 = sld [smem:[#allocation5 + $0x3d]] }
  0x58   : > { %363 = vrot.lane.b32.xlu1 %v350_v11, %s4211_s14  ;;  %320 = vrot.lane.b32.xlu0 %v308_v14, %s4211_s14  ;;  %v353_v41 = vmul.f32 %v4371_v1, %v247_v38  ;;  %v4478_v7 = vstv %s3832_s17  ;;  %v4483_v9 = vstv %s577_s0  ;;  %s4535_s8 = sld [smem:[#allocation5 + $0x3e]]  ;;  %s4213_s9 = smov 122   ;;  %vm727_vm8 = vcmask 1039360  }
  0x59   : > { %v4398_v34 = vld [vmem:[#allocation2 + $0x20] sm:$0xff]  ;;  %v956_v16 = vstv %s954_s27  ;;  %s3834_s12 = sld [smem:[#allocation5 + $0x38]]  ;;  %s4214_s17 = smov 1   ;;  %vm3132_vm9 = vcmask 1041408   ;;  %vm3693_vm10 = vcmask 23552   ;;  %vm3700_vm11 = vcmask 130053  }
  0x5a   : > { %v311_v35 = vmul.f32 %v307_v12, %v4398_v34  ;;  %v4403_v37 = vld [vmem:[#allocation2 + $0x38] sm:$0x1f]  ;;  %v4407_v40 = vld [vmem:[#allocation3 + $0x20] sm:$0xff]  ;;  %v393_v49 = vmul.f32 %v391_v42, %v4398_v34  ;;  %v440_v57 = vmul.f32 %v438_v51, %v4398_v34  ;;  %v901_v2 = vmul.f32 %v899_v63, %v4398_v34  ;;  %s1011_s6 = smul.f32 0.25, %s4452_s18  ;;  %s3835_s16 = sld [smem:[#allocation5 + $0x8]] }
  0x5b   : > { %v313_v39 = vmul.f32 %v307_v12, %v4403_v37  ;;  %v352_v43 = vmul.f32 %v4371_v1, %v4407_v40  ;;  %v4414_v44 = vld [vmem:[#allocation3 + $0x38] sm:$0x1f]  ;;  %v394_v47 = vmul.f32 %v391_v42, %v4403_v37  ;;  %v415_v50 = vmul.f32 %v413_v48, %v4407_v40  ;;  %s3836_s13 = sld [smem:[#allocation5 + $0x39]]  ;;  %s4215_s18 = smov 127  }
  0x5c   : > { %324 = vrot.lane.b32.xlu1 %v310_v15, %s4211_s14  ;;  %322 = vrot.lane.b32.xlu0 %v309_v29, %s4211_s14  ;;  %v354_v46 = vmul.f32 %v4371_v1, %v4414_v44  ;;  %v416_v54 = vmul.f32 %v413_v48, %v4414_v44  ;;  %v441_v55 = vmul.f32 %v438_v51, %v4403_v37  ;;  %v4480_v8 = vld [vmem:[#allocation2 + $0x38] sm:$0x3f]  ;;  %v907_v11 = vrot.slane %v901_v2, 1  ;;  %s1068_s7 = smul.f32 0.25, %s4464_s28  ;;  %s4216_s27 = smov 125  }
  0x5d   : > { %v462_v58 = vmul.f32 %v460_v56, %v4407_v40  ;;  %v900_v1 = vmul.f32 %v899_v63, %v4461_v62  ;;  %v4486_v12 = vmul.f32 %v899_v63, %v4480_v8  ;;  %v487_v13 = vmul.f32 %v485_v59, %v4398_v34  ;;  %v4517_v27 = vld [vmem:[#allocation3 + $0x38] sm:$0x3f]  ;;  %s3851_s28 = sld [smem:[#allocation5 + $0x10]]  ;;  %p9030_p12 = scmp.ne.s32.totalorder %s8409_s3, 0 }
  0x5e   : > { %v509_v14 = vmul.f32 %v507_v60, %v4407_v40  ;;  %v4491_v15 = vstv %s4448_s15  ;;  %v463_v17 = vmul.f32 %v460_v56, %v4414_v44  ;;  %v957_v23 = vmul.f32 %v956_v16, %v4461_v62  ;;  %s3837_s15 = sld [smem:[#allocation5 + $0x9]] }
  0x5f   : > { %v906_v10 = vrot.slane %v900_v1, 1  ;;  %v909_v20 = vrot.slane %v4486_v12, 1  ;;  %v4505_v21 = vmul.f32 %v4491_v15, %v4407_v40  ;;  %v927_v22 = vmul.f32 %v4491_v15, %v4497_v18 }
  0x60   : > { %328 = vrot.lane.b32.xlu0 %v312_v33, %s4211_s14  ;;  %326 = vrot.lane.b32.xlu1 %v311_v35, %s4211_s14  ;;  %v958_v24 = vmul.f32 %v956_v16, %v4398_v34  ;;  %v4512_v25 = vmul.f32 %v956_v16, %v4480_v8  ;;  %v488_v26 = vmul.f32 %v485_v59, %v4403_v37  ;;  %v983_v30 = vstv %s4459_s25  ;;  %s690_s30 = smul.f32 0.25, %s3835_s16  ;;  %s3838_s25 = sld [smem:[#allocation5 + $0x3a]] }
  0x61   : > { %v4500_v19 = vsel %vm600_vm1, %v906_v10, %v907_v11  ;;  %v4522_v28 = vsel %vm600_vm1, %v907_v11, %v909_v20  ;;  %v934_v29 = vrot.slane %v4505_v21, 1  ;;  %v933_v31 = vrot.slane %v927_v22, 1  ;;  %s3854_s16 = sld [smem:[#allocation5 + $0x42]] }
  0x62   : > { %v963_v32 = vrot.slane %v957_v23, 1  ;;  %v964_v33 = vrot.slane %v958_v24, 1  ;;  %v966_v35 = vrot.slane %v4512_v25, 1  ;;  %v985_v38 = vmul.f32 %v983_v30, %v4407_v40 }
  0x63   : > { %v4540_v42 = vsel %vm600_vm1, %v933_v31, %v934_v29  ;;  %vm3704_vm12 = vcmask 126976  }
  0x64   : > { %365 = vrot.lane.b32.xlu0 %v351_v36, %s4211_s14  ;;  %330 = vrot.lane.b32.xlu1 %v313_v39, %s4211_s14  ;;  %v510_v36 = vmul.f32 %v507_v60, %v4414_v44  ;;  %v4532_v39 = vmul.f32 %v983_v30, %v4517_v27  ;;  %s794_s0 = smul.f32 0.25, %s3837_s15  ;;  %s3856_s15 = sld [smem:[#allocation5 + $0x43]] }
  0x66   : > { %v993_v48 = vrot.slane %v4532_v39, 1 }
  0x68   : > { %369 = vrot.lane.b32.xlu0 %v353_v41, %s4211_s14  ;;  %367 = vrot.lane.b32.xlu1 %v352_v43, %s4211_s14  ;;  %v984_v41 = vmul.f32 %v983_v30, %v4497_v18  ;;  %v4543_v43 = vsel %vm600_vm1, %v963_v32, %v964_v33 }
  0x6c   : > { %398 = vrot.lane.b32.xlu0 %v392_v45, %s4211_s14  ;;  %371 = vrot.lane.b32.xlu1 %v354_v46, %s4211_s14  ;;  %v4548_v45 = vsel %vm600_vm1, %v964_v33, %v966_v35  ;;  %v1013_v46 = vstv %s1011_s6  ;;  %s1280_s6 = smul.f32 0.25, %s3851_s28  ;;  %s3858_s28 = sld [smem:[#allocation5 + $0x44]] }
  0x6d   : > { %v1015_v51 = vmul.f32 %v1013_v46, %v4398_v34 }
  0x6f   : > { %v1021_v59 = vrot.slane %v1015_v51, 1  ;;  %v4626_v51 = vld [vmem:[#allocation2 + $0x30] sm:$0x3f] }
  0x70   : > { %402 = vrot.lane.b32.xlu0 %v394_v47, %s4211_s14  ;;  %400 = vrot.lane.b32.xlu1 %v393_v49, %s4211_s14  ;;  %v991_v47 = vrot.slane %v985_v38, 1  ;;  %v990_v49 = vrot.slane %v984_v41, 1 }
  0x72   : > { %v4565_v56 = vsel %vm600_vm1, %v990_v49, %v991_v47  ;;  %v590_v49 = vmul.f32 0.0, %v4483_v9 }
  0x74   : > { %422 = vrot.lane.b32.xlu0 %v415_v50, %s4211_s14  ;;  %420 = vrot.lane.b32.xlu1 %v414_v52, %s4211_s14  ;;  %v1014_v50 = vmul.f32 %v1013_v46, %v4461_v62  ;;  %v4555_v52 = vmul.f32 %v1013_v46, %v4480_v8 }
  0x76   : > { %v1023_v60 = vrot.slane %v4555_v52, 1 }
  0x78   : > { %445 = vrot.lane.b32.xlu0 %v439_v53, %s4212_s11  ;;  %424 = vrot.lane.b32.xlu1 %v416_v54, %s4211_s14  ;;  %v1040_v53 = vstv %s4493_s29  ;;  %v1070_v54 = vstv %s1068_s7  ;;  %s4217_s29 = smov 123   ;;  %s3852_s7 = sld [smem:[#allocation5 + $0x41]] }
  0x79   : > { %v4570_v63 = vmul.f32 %v1040_v53, %v4517_v27  ;;  %v1071_v2 = vmul.f32 %v1070_v54, %v4461_v62  ;;  %v4577_v10 = vmul.f32 %v1070_v54, %v4480_v8 }
  0x7b   : > { %v1050_v16 = vrot.slane %v4570_v63, 1  ;;  %v1077_v22 = vrot.slane %v1071_v2, 1  ;;  %v1080_v24 = vrot.slane %v4577_v10, 1  ;;  %v591_v2 = vmul.f32 %v4483_v9, %v4398_v34  ;;  %v4875_v10 = vld [vmem:[#allocation2 + $0x38] sm:$0x7f] }
  0x7c   : > { %449 = vrot.lane.b32.xlu0 %v441_v55, %s4212_s11  ;;  %447 = vrot.lane.b32.xlu1 %v440_v57, %s4212_s11  ;;  %v4562_v55 = vsel %vm600_vm1, %v991_v47, %v993_v48  ;;  %v1020_v57 = vrot.slane %v1014_v50, 1 }
  0x7e   : > { %v4580_v11 = vsel %vm600_vm1, %v1020_v57, %v1021_v59  ;;  %v556_v57 = vmul.f32 %v4478_v7, %v4407_v40 }
  0x80   : > { %469 = vrot.lane.b32.xlu0 %v462_v58, %s4212_s11  ;;  %467 = vrot.lane.b32.xlu1 %v461_v0, %s4212_s11  ;;  %v1042_v58 = vmul.f32 %v1040_v53, %v4407_v40  ;;  %v1041_v0 = vmul.f32 %v1040_v53, %v4497_v18 }
  0x82   : > { %v1048_v1 = vrot.slane %v1042_v58, 1 }
  0x84   : > { %492 = vrot.lane.b32.xlu0 %v486_v3, %s4212_s11  ;;  %471 = vrot.lane.b32.xlu1 %v463_v17, %s4212_s11  ;;  %v1072_v3 = vmul.f32 %v1070_v54, %v4398_v34  ;;  %v1047_v17 = vrot.slane %v1041_v0, 1  ;;  %v4597_v30 = vsel %vm600_vm1, %v1048_v1, %v1050_v16  ;;  %v555_v0 = vmul.f32 %v4478_v7, %v4376_v6 }
  0x86   : > { %v1078_v23 = vrot.slane %v1072_v3, 1  ;;  %v4600_v31 = vsel %vm600_vm1, %v1047_v17, %v1048_v1  ;;  %v589_v1 = vmul.f32 %v4483_v9, %v4461_v62 }
  0x88   : > { %496 = vrot.lane.b32.xlu0 %v488_v26, %s4212_s11  ;;  %494 = vrot.lane.b32.xlu1 %v487_v13, %s4212_s11  ;;  %v4585_v13 = vsel %vm600_vm1, %v1021_v59, %v1023_v60  ;;  %v1097_v26 = vstv %s4535_s8  ;;  %v4611_v38 = vsel %vm600_vm1, %v1077_v22, %v1078_v23  ;;  %v4616_v41 = vsel %vm600_vm1, %v1078_v23, %v1080_v24  ;;  %v4653_v23 = vld [vmem:[#allocation3] sm:$0xc0]  ;;  %s4882_s8 = sld [smem:[#allocation5 + $0x11]] }
  0x89   : > { %v1099_v32 = vmul.f32 %v1097_v26, %v4407_v40  ;;  %v4604_v33 = vmul.f32 %v1097_v26, %v4517_v27  ;;  %v1098_v46 = vmul.f32 %v1097_v26, %v4497_v18  ;;  %v602_v59 = vrot.slane %v590_v49, 1 }
  0x8a   : > { %v557_v22 = vmul.f32 %v4478_v7, %v4414_v44  ;;  %v639_v26 = vstv %s3834_s12  ;;  %v604_v6 = vrot.slane %v589_v1, 1  ;;  %v4661_v44 = vld [vmem:[#allocation3 + $0x30] sm:$0x3f]  ;;  %v692_v1 = vstv %s690_s30  ;;  %s4916_s30 = sld [smem:[#allocation5 + $0x12]] }
  0x8b   : > { %v1105_v50 = vrot.slane %v1099_v32, 1  ;;  %v1104_v53 = vrot.slane %v1098_v46, 1  ;;  %v605_v32 = vrot.slane %v591_v2, 1  ;;  %v642_v49 = vmul.f32 0.0, %v639_v26 }
  0x8c   : > { %516 = vrot.lane.b32.xlu0 %v509_v14, %s4212_s11  ;;  %514 = vrot.lane.b32.xlu1 %v4472_v4, %s4212_s11  ;;  %v4590_v14 = vld [vmem:[#allocation2] sm:$0xc0]  ;;  %v535_v4 = vmul.f32 %v4456_v61, %v4403_v37  ;;  %v534_v37 = vmul.f32 %v4456_v61, %v4398_v34  ;;  %v592_v61 = vmul.f32 %v4483_v9, %v4626_v51 }
  0x8d   : > { %v588_v47 = vmul.f32 %v4483_v9, %v4590_v14  ;;  %v4637_v58 = vsel %vm600_vm1, %v1104_v53, %v1105_v50  ;;  %v606_v7 = vsel %vm600_vm1, %v604_v6, %v605_v32  ;;  %v653_v53 = vrot.slane %v642_v49, 1 }
  0x8e   : > { %v607_v17 = vrot.slane %v592_v61, 1  ;;  %s1383_s12 = smul.f32 0.25, %s4882_s8  ;;  %s3860_s8 = sld [smem:[#allocation5 + $0x45]] }
  0x90   : > { %539 = vrot.lane.b32.xlu0 %v4476_v5, %s4213_s9  ;;  %v1107_v5 = vrot.slane %v4604_v33, 1  ;;  %518 = vrot.lane.b32.xlu1 %v510_v36, %s4212_s11  ;;  %v601_v36 = vrot.slane %v588_v47, 1  ;;  %v608_v46 = vsel %vm600_vm1, %v602_v59, %v607_v17  ;;  %v640_v47 = vmul.f32 %v639_v26, %v4653_v23 }
  0x92   : > { %v4631_v54 = vsel %vm600_vm1, %v1105_v50, %v1107_v5  ;;  %v603_v3 = vsel %vm600_vm1, %v601_v36, %v602_v59  ;;  %v641_v36 = vmul.f32 %v639_v26, %v4497_v18  ;;  %v643_v59 = vmul.f32 %v639_v26, %v4407_v40 }
  0x94   : > { %543 = vrot.lane.b32.xlu0 %v535_v4, %s4213_s9  ;;  %541 = vrot.lane.b32.xlu1 %v534_v37, %s4213_s9  ;;  %v593_v4 = vmul.f32 %v4483_v9, %v4480_v8  ;;  %v652_v37 = vrot.slane %v640_v47, 1  ;;  %v644_v9 = vmul.f32 %v639_v26, %v4661_v44  ;;  %v655_v2 = vrot.slane %v641_v36, 1 }
  0x96   : > { %v609_v50 = vrot.slane %v593_v4, 1  ;;  %v654_v61 = vsel %vm600_vm1, %v652_v37, %v653_v53  ;;  %v695_v4 = vmul.f32 0.0, %v692_v1  ;;  %v694_v37 = vmul.f32 %v692_v1, %v4461_v62 }
  0x98   : > { %563 = vrot.lane.b32.xlu0 %v556_v57, %s4213_s9  ;;  %561 = vrot.lane.b32.xlu1 %v555_v0, %s4213_s9  ;;  %v610_v57 = vsel %vm600_vm1, %v605_v32, %v609_v50  ;;  %v658_v0 = vrot.slane %v644_v9, 1  ;;  %v693_v32 = vmul.f32 %v692_v1, %v4590_v14  ;;  %v706_v49 = vrot.slane %v695_v4, 1 }
  0x99   : > { %v708_v36 = vrot.slane %v694_v37, 1 }
  0x9a   : > { %v659_v6 = vsel %vm600_vm1, %v653_v53, %v658_v0  ;;  %v705_v47 = vrot.slane %v693_v32, 1  ;;  %v696_v53 = vmul.f32 %v692_v1, %v4398_v34 }
  0x9c   : > { %611 = vrot.lane.b32.xlu0 %v603_v3, %s4214_s17  ;;  %565 = vrot.lane.b32.xlu1 %v557_v22, %s4213_s9  ;;  %v656_v3 = vrot.slane %v643_v59, 1  ;;  %v645_v22 = vmul.f32 %v639_v26, %v4517_v27  ;;  %v709_v59 = vrot.slane %v696_v53, 1 }
  0xa0   : > { %615 = vrot.lane.b32.xlu0 %v608_v46, %s4214_s17  ;;  %613 = vrot.lane.b32.xlu1 %v606_v7, %s4214_s17  ;;  %v660_v46 = vrot.slane %v645_v22, 1  ;;  %v697_v7 = vmul.f32 %v692_v1, %v4626_v51 }
  0xa2   : > { %v661_v26 = vsel %vm600_vm1, %v656_v3, %v660_v46  ;;  %v711_v9 = vrot.slane %v697_v7, 1 }
  0xa4   : > { %619 = vrot.lane.b32.xlu0 %v607_v17, %s4214_s17  ;;  %617 = vrot.lane.b32.xlu1 %v610_v57, %s4214_s17  ;;  %v657_v17 = vsel %vm600_vm1, %v655_v2, %v656_v3  ;;  %v743_v57 = vstv %s3836_s13  ;;  %v712_v2 = vsel %vm600_vm1, %v706_v49, %v711_v9  ;;  %s1440_s13 = smul.f32 0.25, %s4916_s30  ;;  %s3862_s30 = sld [smem:[#allocation5 + $0x46]] }
  0xa5   : > { %v744_v3 = vmul.f32 %v743_v57, %v4653_v23  ;;  %v746_v22 = vmul.f32 0.0, %v743_v57 }
  0xa7   : > { %v756_v32 = vrot.slane %v744_v3, 1  ;;  %v757_v4 = vrot.slane %v746_v22, 1 }
  0xa8   : > { %662 = vrot.lane.b32.xlu0 %v654_v61, %s4214_s17  ;;  %621 = vrot.lane.b32.xlu1 %v609_v50, %s4214_s17  ;;  %v707_v50 = vsel %vm600_vm1, %v705_v47, %v706_v49  ;;  %v698_v61 = vmul.f32 %v692_v1, %v4480_v8  ;;  %v745_v47 = vmul.f32 %v743_v57, %v4497_v18 }
  0xa9   : > { %v747_v49 = vmul.f32 %v743_v57, %v4407_v40 }
  0xaa   : > { %v759_v37 = vrot.slane %v745_v47, 1  ;;  %v846_v47 = vstv %s3838_s25 }
  0xab   : > { %v760_v53 = vrot.slane %v747_v49, 1 }
  0xac   : > { %666 = vrot.lane.b32.xlu0 %v659_v6, %s4214_s17  ;;  %664 = vrot.lane.b32.xlu1 %v657_v17, %s4214_s17  ;;  %v713_v6 = vrot.slane %v698_v61, 1  ;;  %v748_v17 = vmul.f32 %v743_v57, %v4661_v44 }
  0xae   : > { %v714_v1 = vsel %vm600_vm1, %v709_v59, %v713_v6  ;;  %v762_v7 = vrot.slane %v748_v17, 1 }
  0xb0   : > { %670 = vrot.lane.b32.xlu0 %v658_v0, %s4214_s17  ;;  %668 = vrot.lane.b32.xlu1 %v661_v26, %s4214_s17  ;;  %v710_v0 = vsel %vm600_vm1, %v708_v36, %v709_v59  ;;  %v796_v26 = vstv %s794_s0  ;;  %v763_v36 = vsel %vm600_vm1, %v757_v4, %v762_v7  ;;  %s4947_s0 = sld [smem:[#allocation5 + $0x13]] }
  0xb1   : > { %v797_v59 = vmul.f32 %v796_v26, %v4590_v14  ;;  %v799_v61 = vmul.f32 0.0, %v796_v26  ;;  %v798_v14 = vmul.f32 %v796_v26, %v4461_v62 }
  0xb3   : > { %v809_v3 = vrot.slane %v797_v59, 1  ;;  %v810_v22 = vrot.slane %v799_v61, 1  ;;  %v812_v49 = vrot.slane %v798_v14, 1 }
  0xb4   : > { %715 = vrot.lane.b32.xlu0 %v707_v50, %s4215_s18  ;;  %672 = vrot.lane.b32.xlu1 %v660_v46, %s4214_s17  ;;  %v758_v46 = vsel %vm600_vm1, %v756_v32, %v757_v4  ;;  %v749_v50 = vmul.f32 %v743_v57, %v4517_v27 }
  0xb5   : > { %v811_v4 = vsel %vm600_vm1, %v809_v3, %v810_v22 }
  0xb6   : > { %s1497_s25 = smul.f32 0.25, %s4947_s0  ;;  %s3864_s0 = sld [smem:[#allocation5 + $0x47]] }
  0xb8   : > { %719 = vrot.lane.b32.xlu0 %v712_v2, %s4215_s18  ;;  %717 = vrot.lane.b32.xlu1 %v710_v0, %s4215_s18  ;;  %v764_v2 = vrot.slane %v749_v50, 1  ;;  %v801_v0 = vmul.f32 %v796_v26, %v4626_v51 }
  0xba   : > { %v765_v32 = vsel %vm600_vm1, %v760_v53, %v764_v2  ;;  %v815_v17 = vrot.slane %v801_v0, 1 }
  0xbc   : > { %723 = vrot.lane.b32.xlu0 %v711_v9, %s4215_s18  ;;  %721 = vrot.lane.b32.xlu1 %v714_v1, %s4215_s18  ;;  %v761_v9 = vsel %vm600_vm1, %v759_v37, %v760_v53  ;;  %v802_v37 = vmul.f32 %v796_v26, %v4480_v8  ;;  %v816_v62 = vsel %vm600_vm1, %v810_v22, %v815_v17  ;;  %v849_v53 = vmul.f32 0.0, %v846_v47 }
  0xbd   : > { %v850_v22 = vmul.f32 %v846_v47, %v4407_v40 }
  0xbe   : > { %v817_v61 = vrot.slane %v802_v37, 1  ;;  %v860_v8 = vrot.slane %v849_v53, 1 }
  0xc0   : > { %766 = vrot.lane.b32.xlu0 %v758_v46, %s4215_s18  ;;  %725 = vrot.lane.b32.xlu1 %v713_v6, %s4215_s18  ;;  %v800_v6 = vmul.f32 %v796_v26, %v4398_v34  ;;  %v851_v26 = vmul.f32 %v846_v47, %v4661_v44 }
  0xc2   : > { %v813_v46 = vrot.slane %v800_v6, 1  ;;  %v865_v14 = vrot.slane %v851_v26, 1 }
  0xc4   : > { %770 = vrot.lane.b32.xlu0 %v763_v36, %s4215_s18  ;;  %768 = vrot.lane.b32.xlu1 %v761_v9, %s4215_s18  ;;  %v814_v59 = vsel %vm600_vm1, %v812_v49, %v813_v46  ;;  %v852_v49 = vmul.f32 %v846_v47, %v4517_v27 }
  0xc6   : > { %v4712_v57 = vpop.permute.xlu0 %361 }
  0xc8   : > { %774 = vrot.lane.b32.xlu0 %v762_v7, %s4215_s18  ;;  %772 = vrot.lane.b32.xlu1 %v765_v32, %s4215_s18  ;;  %v847_v7 = vmul.f32 %v846_v47, %v4653_v23  ;;  %v818_v23 = vsel %vm600_vm1, %v813_v46, %v817_v61 }
  0xca   : > { %v4719_v1 = vpop.permute.xlu1 %363  ;;  %v4722_v51 = vpop.permute.xlu0 %320  ;;  %v859_v9 = vrot.slane %v847_v7, 1 }
  0xcc   : > { %819 = vrot.lane.b32.xlu0 %v811_v4, %s4215_s18  ;;  %776 = vrot.lane.b32.xlu1 %v764_v2, %s4215_s18  ;;  %v848_v2 = vmul.f32 %v846_v47, %v4497_v18  ;;  %v861_v32 = vsel %vm600_vm1, %v859_v9, %v860_v8  ;;  %v863_v4 = vrot.slane %v850_v22, 1  ;;  %v866_v18 = vsel %vm600_vm1, %v860_v8, %v865_v14 }
  0xce   : > { %v4729_v50 = vpop.permute.xlu0 %322  ;;  %v4731_v36 = vpop.permute.xlu1 %324  ;;  %v862_v6 = vrot.slane %v848_v2, 1 }
  0xd0   : > { %823 = vrot.lane.b32.xlu0 %v816_v62, %s4215_s18  ;;  %821 = vrot.lane.b32.xlu1 %v814_v59, %s4215_s18  ;;  %v864_v37 = vsel %vm600_vm1, %v862_v6, %v863_v4  ;;  %v867_v62 = vrot.slane %v852_v49, 1 }
  0xd2   : > { %v4737_v3 = vpop.permute.xlu0 %328  ;;  %v4742_v0 = vpop.permute.xlu1 %326  ;;  %v868_v53 = vsel %vm600_vm1, %v863_v4, %v867_v62 }
  0xd4   : > { %827 = vrot.lane.b32.xlu0 %v815_v17, %s4215_s18  ;;  %825 = vrot.lane.b32.xlu1 %v818_v23, %s4215_s18 }
  0xd6   : > { %v4747_v44 = vpop.permute.xlu0 %365  ;;  %v4750_v46 = vpop.permute.xlu1 %330 }
  0xd8   : > { %869 = vrot.lane.b32.xlu0 %v861_v32, %s4215_s18  ;;  %829 = vrot.lane.b32.xlu1 %v817_v61, %s4215_s18  ;;  %v929_v61 = vmul.f32 %v4491_v15, %v4517_v27  ;;  %v4863_v32 = vld [vmem:[#allocation2 + $0x8] sm:$0x80] }
  0xda   : > { %v4755_v17 = vpop.permute.xlu0 %369  ;;  %v4758_v7 = vpop.permute.xlu1 %367  ;;  %v936_v26 = vrot.slane %v929_v61, 1 }
  0xdc   : > { %873 = vrot.lane.b32.xlu0 %v866_v18, %s4215_s18  ;;  %871 = vrot.lane.b32.xlu1 %v864_v37, %s4215_s18  ;;  %v937_v15 = vsel %vm600_vm1, %v934_v29, %v936_v26  ;;  %v1131_v37 = vld [vmem:[#allocation3] sm:$0x80] }
  0xde   : > { %v4762_v47 = vpop.permute.xlu0 %398  ;;  %v4765_v59 = vpop.permute.xlu1 %371 }
  0xe0   : > { %877 = vrot.lane.b32.xlu0 %v865_v14, %s4215_s18  ;;  %875 = vrot.lane.b32.xlu1 %v868_v53, %s4215_s18 }
  0xe2   : > { %v4771_v9 = vpop.permute.xlu0 %402  ;;  %v4773_v8 = vpop.permute.xlu1 %400 }
  0xe4   : > { %911 = vrot.lane.b32.xlu0 %v4500_v19, %s4216_s27  ;;  %879 = vrot.lane.b32.xlu1 %v867_v62, %s4215_s18  ;;  %v1332_v62 = vstv %s3852_s7 }
  0xe6   : > { %v4778_v23 = vpop.permute.xlu0 %422  ;;  %v4780_v2 = vpop.permute.xlu1 %420 }
  0xe8   : > { %915 = vrot.lane.b32.xlu0 %v909_v20, %s4216_s27  ;;  %913 = vrot.lane.b32.xlu1 %v4522_v28, %s4216_s27 }
  0xea   : > { %v4790_v27 = vpop.permute.xlu0 %445  ;;  %v4792_v19 = vpop.permute.xlu1 %424 }
  0xeb   : > { %8413 = vst [vmem:[#allocation13_spill] sm:$0xff] %v4790_v27  ;;  %8414 = vst [vmem:[#allocation14_spill] sm:$0xff] %v4792_v19 }
  0xec   : > { %940 = vrot.lane.b32.xlu0 %v937_v15, %s4216_s27  ;;  %938 = vrot.lane.b32.xlu1 %v4540_v42, %s4216_s27 }
  0xee   : > { %v4797_v22 = vpop.permute.xlu0 %449  ;;  %v4799_v12 = vpop.permute.xlu1 %447 }
  0xef   : > { %8415 = vst [vmem:[#allocation15_spill] sm:$0xff] %v4797_v22  ;;  %8416 = vst [vmem:[#allocation16_spill] sm:$0xff] %v4799_v12 }
  0xf0   : > { %968 = vrot.lane.b32.xlu0 %v4543_v43, %s4216_s27  ;;  %942 = vrot.lane.b32.xlu1 %v936_v26, %s4216_s27 }
  0xf2   : > { %v4804_v20 = vpop.permute.xlu0 %469  ;;  %v4806_v21 = vpop.permute.xlu1 %467 }
  0xf3   : > { %8417 = vst [vmem:[#allocation17_spill] sm:$0xff] %v4804_v20  ;;  %8418 = vst [vmem:[#allocation18_spill] sm:$0xff] %v4806_v21  ;;  %v4040_v20 = vld [vmem:[#allocation3 + $0x38] sm:$0x1f] }
  0xf4   : > { %972 = vrot.lane.b32.xlu0 %v966_v35, %s4216_s27  ;;  %970 = vrot.lane.b32.xlu1 %v4548_v45, %s4216_s27 }
  0xf6   : > { %v4813_v28 = vpop.permute.xlu0 %492  ;;  %v4815_v29 = vpop.permute.xlu1 %471 }
  0xf7   : > { %8419 = vst [vmem:[#allocation19_spill] sm:$0xff] %v4813_v28  ;;  %8420 = vst [vmem:[#allocation20_spill] sm:$0xff] %v4815_v29 }
  0xf8   : > { %997 = vrot.lane.b32.xlu0 %v4562_v55, %s4216_s27  ;;  %995 = vrot.lane.b32.xlu1 %v4565_v56, %s4216_s27  ;;  %v1282_v56 = vstv %s1280_s6  ;;  %s4978_s6 = sld [smem:[#allocation5 + $0x14]] }
  0xf9   : > { %v1286_v4 = vmul.f32 %v1282_v56, %v4398_v34  ;;  %v1288_v26 = vmul.f32 %v1282_v56, %v4875_v10 }
  0xfa   : > { %v4821_v42 = vpop.permute.xlu0 %496  ;;  %v4823_v43 = vpop.permute.xlu1 %494 }
  0xfb   : > { %8421 = vst [vmem:[#allocation21_spill] sm:$0xff] %v4821_v42  ;;  %8422 = vst [vmem:[#allocation22_spill] sm:$0xff] %v4823_v43  ;;  %v1299_v61 = vrot.slane %v1286_v4, 2 }
  0xfc   : > { %1025 = vrot.lane.b32.xlu0 %v4580_v11, %s4217_s29  ;;  %999 = vrot.lane.b32.xlu1 %v993_v48, %s4216_s27  ;;  %v1127_v48 = vld [vmem:[#allocation2] sm:$0x80]  ;;  %v1285_v11 = vmul.f32 0.0, %v1282_v56 }
  0xfe   : > { %v4830_v25 = vpop.permute.xlu0 %516  ;;  %v4832_v35 = vpop.permute.xlu1 %514  ;;  %s1554_s7 = smul.f32 0.25, %s4978_s6  ;;  %s3866_s6 = sld [smem:[#allocation5 + $0x48]] }
  0xff   : > { %8423 = vst [vmem:[#allocation23_spill] sm:$0xff] %v4830_v25  ;;  %8424 = vst [vmem:[#allocation24_spill] sm:$0xff] %v4832_v35  ;;  %v4038_v35 = vld [vmem:[#allocation2 + $0x38] sm:$0x1f] }
 0x100   : > { %1029 = vrot.lane.b32.xlu0 %v1023_v60, %s4217_s29  ;;  %1027 = vrot.lane.b32.xlu1 %v4585_v13, %s4217_s29  ;;  %v1283_v60 = vmul.f32 %v1282_v56, %v1127_v48  ;;  %v1333_v48 = vmul.f32 %v1332_v62, %v1131_v37  ;;  %v1336_v37 = vmul.f32 %v1332_v62, %v4407_v40 }
 0x102   : > { %v4839_v45 = vpop.permute.xlu0 %539  ;;  %v4841_v55 = vpop.permute.xlu1 %518  ;;  %v1295_v14 = vrot.slane %v1283_v60, 2  ;;  %v1335_v60 = vmul.f32 0.0, %v1332_v62 }
 0x103   : > { %8425 = vst [vmem:[#allocation25_spill] sm:$0xff] %v4839_v45  ;;  %8426 = vst [vmem:[#allocation26_spill] sm:$0xff] %v4841_v55  ;;  %v4037_v55 = vld [vmem:[#allocation2 + $0x30] sm:$0x1f] }
 0x104   : > { %1054 = vrot.lane.b32.xlu0 %v4597_v30, %s4217_s29  ;;  %1052 = vrot.lane.b32.xlu1 %v4600_v31, %s4217_s29  ;;  %v1129_v30 = vld [vmem:[#allocation2 + $0x30] sm:$0x7f] }
 0x105   : > { %v1287_v6 = vmul.f32 %v1282_v56, %v1129_v30 }
 0x106   : > { %v4847_v39 = vpop.permute.xlu0 %543  ;;  %v4849_v52 = vpop.permute.xlu1 %541 }
 0x107   : > { %8427 = vst [vmem:[#allocation27_spill] sm:$0xff] %v4847_v39  ;;  %8428 = vst [vmem:[#allocation28_spill] sm:$0xff] %v4849_v52  ;;  %v1301_v18 = vrot.slane %v1287_v6, 2  ;;  %v4898_v6 = vld [vmem:[#allocation3 + $0x8] sm:$0x80] }
 0x108   : > { %1082 = vrot.lane.b32.xlu0 %v4611_v38, %s4217_s29  ;;  %1056 = vrot.lane.b32.xlu1 %v1050_v16, %s4217_s29  ;;  %v1296_v38 = vrot.slane %v1285_v11, 2  ;;  %v1284_v16 = vmul.f32 %v1282_v56, %v4863_v32  ;;  %v1133_v11 = vld [vmem:[#allocation3 + $0x30] sm:$0x7f] }
 0x109   : > { %v1337_v4 = vmul.f32 %v1332_v62, %v1133_v11  ;;  %v1385_v11 = vstv %s1383_s12  ;;  %s5019_s12 = sld [smem:[#allocation5 + $0x15]] }
 0x10a   : > { %v4856_v13 = vpop.permute.xlu0 %563  ;;  %v4858_v31 = vpop.permute.xlu1 %561  ;;  %v1298_v53 = vrot.slane %v1284_v16, 2  ;;  %v1346_v16 = vrot.slane %v1335_v60, 2 }
 0x10b   : > { %8429 = vst [vmem:[#allocation29_spill] sm:$0xff] %v4856_v13  ;;  %8430 = vst [vmem:[#allocation30_spill] sm:$0xff] %v4858_v31 }
 0x10c   : > { %1086 = vrot.lane.b32.xlu0 %v1080_v24, %s4217_s29  ;;  %1084 = vrot.lane.b32.xlu1 %v4616_v41, %s4217_s29  ;;  %v1297_v24 = vsel %vm1148_vm2, %v1295_v14, %v1296_v38  ;;  %v1300_v30 = vsel %vm1148_vm2, %v1298_v53, %v1299_v61  ;;  %v1303_v14 = vrot.slane %v1288_v26, 2  ;;  %v4910_v26 = vld [vmem:[#allocation3 + $0x38] sm:$0x7f] }
 0x10e   : > { %v4867_v63 = vpop.permute.xlu0 %611  ;;  %v4871_v49 = vpop.permute.xlu1 %565  ;;  %v1304_v33 = vsel %vm1148_vm2, %v1299_v61, %v1303_v14 }
 0x10f   : > { %8431 = vst [vmem:[#allocation31_spill] sm:$0xff] %v4867_v63  ;;  %8432 = vst [vmem:[#allocation32_spill] sm:$0xff] %v4871_v49 }
 0x110   : > { %1111 = vrot.lane.b32.xlu0 %v4631_v54, %s4217_s29  ;;  %1109 = vrot.lane.b32.xlu1 %v4637_v58, %s4217_s29  ;;  %v1302_v54 = vsel %vm1148_vm2, %v1296_v38, %v1301_v18  ;;  %v1345_v38 = vrot.slane %v1333_v48, 2  ;;  %v1351_v48 = vrot.slane %v1337_v4, 2  ;;  %v1387_v4 = vmul.f32 %v1385_v11, %v4398_v34 }
 0x112   : > { %v4880_v41 = vpop.permute.xlu0 %615  ;;  %v4885_v15 = vpop.permute.xlu1 %613 }
 0x113   : > { %8433 = vst [vmem:[#allocation33_spill] sm:$0xff] %v4880_v41  ;;  %8434 = vst [vmem:[#allocation34_spill] sm:$0xff] %v4885_v15 }
 0x114   : > { %1305 = vrot.lane.b32.xlu0 %v1297_v24, %s4211_s14  ;;  %1113 = vrot.lane.b32.xlu1 %v1107_v5, %s4217_s29  ;;  %v1334_v5 = vmul.f32 %v1332_v62, %v4898_v6 }
 0x116   : > { %v4892_v58 = vpop.permute.xlu0 %619  ;;  %v4895_v56 = vpop.permute.xlu1 %617  ;;  %v1348_v61 = vrot.slane %v1334_v5, 2 }
 0x117   : > { %8435 = vst [vmem:[#allocation35_spill] sm:$0xff] %v4892_v58  ;;  %8436 = vst [vmem:[#allocation36_spill] sm:$0xff] %v4895_v56 }
 0x118   : > { %1309 = vrot.lane.b32.xlu0 %v1302_v54, %s4211_s14  ;;  %1307 = vrot.lane.b32.xlu1 %v1300_v30, %s4211_s14  ;;  %v1347_v54 = vsel %vm1148_vm2, %v1345_v38, %v1346_v16  ;;  %v1349_v30 = vrot.slane %v1336_v37, 2  ;;  %v1386_v38 = vmul.f32 %v1385_v11, %v4863_v32 }
 0x11a   : > { %v4901_v24 = vpop.permute.xlu0 %662  ;;  %v4907_v53 = vpop.permute.xlu1 %621  ;;  %v1350_v5 = vsel %vm1148_vm2, %v1348_v61, %v1349_v30 }
 0x11b   : > { %8437 = vst [vmem:[#allocation37_spill] sm:$0xff] %v4901_v24  ;;  %8438 = vst [vmem:[#allocation38_spill] sm:$0xff] %v4907_v53  ;;  %v1338_v24 = vmul.f32 %v1332_v62, %v4910_v26  ;;  %v1392_v62 = vrot.slane %v1386_v38, 2 }
 0x11c   : > { %1313 = vrot.lane.b32.xlu0 %v1301_v18, %s4211_s14  ;;  %1311 = vrot.lane.b32.xlu1 %v1304_v33, %s4211_s14  ;;  %v1352_v18 = vsel %vm1148_vm2, %v1346_v16, %v1351_v48 }
 0x11d   : > { %v1353_v37 = vrot.slane %v1338_v24, 2 }
 0x11e   : > { %v4914_v60 = vpop.permute.xlu0 %666  ;;  %v4919_v58 = vpop.permute.xlu1 %664 }
 0x11f   : > { %8439 = vst [vmem:[#allocation39_spill] sm:$0xff] %v4914_v60  ;;  %8440 = vst [vmem:[#allocation40_spill] sm:$0xff] %v4919_v58  ;;  %v1393_v58 = vrot.slane %v1387_v4, 2  ;;  %v1354_v53 = vsel %vm1148_vm2, %v1349_v30, %v1353_v37  ;;  %v1442_v4 = vstv %s1440_s13  ;;  %s3863_s13 = sld [smem:[#allocation5 + $0x16]] }
 0x120   : > { %1355 = vrot.lane.b32.xlu0 %v1347_v54, %s4211_s14  ;;  %1315 = vrot.lane.b32.xlu1 %v1303_v14, %s4211_s14  ;;  %v1412_v54 = vstv %s3854_s16  ;;  %v1388_v14 = vmul.f32 %v1385_v11, %v4875_v10  ;;  %s1611_s16 = smul.f32 0.25, %s5019_s12  ;;  %s3868_s12 = sld [smem:[#allocation5 + $0x49]] }
 0x121   : > { %v1394_v24 = vsel %vm1148_vm2, %v1392_v62, %v1393_v58  ;;  %v1414_v61 = vmul.f32 %v1412_v54, %v4407_v40  ;;  %v1413_v11 = vmul.f32 %v1412_v54, %v4898_v6 }
 0x122   : > { %v4926_v33 = vpop.permute.xlu0 %670  ;;  %v4929_v60 = vpop.permute.xlu1 %668  ;;  %v1395_v30 = vrot.slane %v1388_v14, 2 }
 0x123   : > { %8441 = vst [vmem:[#allocation41_spill] sm:$0xff] %v4926_v33  ;;  %8442 = vst [vmem:[#allocation42_spill] sm:$0xff] %v4929_v60  ;;  %v1419_v14 = vrot.slane %v1413_v11, 2 }
 0x124   : > { %1359 = vrot.lane.b32.xlu0 %v1352_v18, %s4211_s14  ;;  %1357 = vrot.lane.b32.xlu1 %v1350_v5, %s4211_s14  ;;  %v1415_v18 = vmul.f32 %v1412_v54, %v4910_v26 }
 0x126   : > { %v4933_v16 = vpop.permute.xlu0 %715  ;;  %v4938_v33 = vpop.permute.xlu1 %672  ;;  %v1422_v62 = vrot.slane %v1415_v18, 2 }
 0x127   : > { %8443 = vst [vmem:[#allocation43_spill] sm:$0xff] %v4933_v16  ;;  %8444 = vst [vmem:[#allocation44_spill] sm:$0xff] %v4938_v33  ;;  %v1443_v16 = vmul.f32 %v1442_v4, %v4863_v32  ;;  %v1396_v33 = vsel %vm1148_vm2, %v1393_v58, %v1395_v30 }
 0x128   : > { %1363 = vrot.lane.b32.xlu0 %v1351_v48, %s4211_s14  ;;  %1361 = vrot.lane.b32.xlu1 %v1354_v53, %s4211_s14  ;;  %v1420_v48 = vrot.slane %v1414_v61, 2  ;;  %v1444_v53 = vmul.f32 %v1442_v4, %v4398_v34  ;;  %v1469_v34 = vstv %s3856_s15  ;;  %s1703_s15 = smul.f32 0.25, %s3863_s13  ;;  %s3870_s13 = sld [smem:[#allocation5 + $0x4a]] }
 0x129   : > { %v1471_v11 = vmul.f32 %v1469_v34, %v4407_v40 }
 0x12a   : > { %v4945_v38 = vpop.permute.xlu0 %719  ;;  %v4950_v5 = vpop.permute.xlu1 %717  ;;  %v1423_v54 = vsel %vm1148_vm2, %v1420_v48, %v1422_v62  ;;  %v1450_v61 = vrot.slane %v1444_v53, 2  ;;  %v1499_v53 = vstv %s1497_s25  ;;  %s3865_s25 = sld [smem:[#allocation5 + $0x17]] }
 0x12b   : > { %8445 = vst [vmem:[#allocation45_spill] sm:$0xff] %v4945_v38  ;;  %8446 = vst [vmem:[#allocation46_spill] sm:$0xff] %v4950_v5  ;;  %v1500_v40 = vmul.f32 %v1499_v53, %v4863_v32 }
 0x12c   : > { %1397 = vrot.lane.b32.xlu0 %v1394_v24, %s4211_s14  ;;  %1365 = vrot.lane.b32.xlu1 %v1353_v37, %s4211_s14  ;;  %v1449_v24 = vrot.slane %v1443_v16, 2  ;;  %v1421_v37 = vsel %vm1148_vm2, %v1419_v14, %v1420_v48  ;;  %v1472_v16 = vmul.f32 %v1469_v34, %v4910_v26 }
 0x12e   : > { %v4956_v38 = vpop.permute.xlu0 %723  ;;  %v4959_v60 = vpop.permute.xlu1 %721 }
 0x12f   : > { %8447 = vst [vmem:[#allocation47_spill] sm:$0xff] %v4956_v38  ;;  %8448 = vst [vmem:[#allocation48_spill] sm:$0xff] %v4959_v60  ;;  %v1445_v38 = vmul.f32 %v1442_v4, %v4875_v10  ;;  %v1470_v4 = vmul.f32 %v1469_v34, %v4898_v6  ;;  %v1526_v60 = vstv %s3858_s28 }
 0x130   : > { %1401 = vrot.lane.b32.xlu0 %v1395_v30, %s4211_s14  ;;  %1399 = vrot.lane.b32.xlu1 %v1396_v33, %s4211_s14  ;;  %v1451_v30 = vsel %vm1148_vm2, %v1449_v24, %v1450_v61  ;;  %v1479_v24 = vrot.slane %v1472_v16, 2  ;;  %s1790_s28 = smul.f32 0.25, %s3865_s25  ;;  %s3872_s25 = sld [smem:[#allocation5 + $0x4b]] }
 0x131   : > { %v1452_v48 = vrot.slane %v1445_v38, 2  ;;  %v1476_v34 = vrot.slane %v1470_v4, 2  ;;  %v5006_v4 = vld [vmem:[#allocation3 + $0x20] sm:$0xff] }
 0x132   : > { %v4964_v18 = vpop.permute.xlu0 %766  ;;  %v4969_v58 = vpop.permute.xlu1 %725 }
 0x133   : > { %8449 = vst [vmem:[#allocation49_spill] sm:$0xff] %v4964_v18  ;;  %8450 = vst [vmem:[#allocation50_spill] sm:$0xff] %v4969_v58  ;;  %v4985_v18 = vld [vmem:[#allocation2 + $0x20] sm:$0xff]  ;;  %v1453_v38 = vsel %vm1148_vm2, %v1450_v61, %v1452_v48 }
 0x134   : > { %1426 = vrot.lane.b32.xlu0 %v1423_v54, %s4211_s14  ;;  %1424 = vrot.lane.b32.xlu1 %v1421_v37, %s4211_s14  ;;  %v1477_v54 = vrot.slane %v1471_v11, 2  ;;  %v1501_v37 = vmul.f32 %v4985_v18, %v1499_v53  ;;  %v1506_v11 = vrot.slane %v1500_v40, 2  ;;  %v1528_v40 = vmul.f32 %v5006_v4, %v1526_v60 }
 0x136   : > { %v4976_v33 = vpop.permute.xlu0 %770  ;;  %v4981_v14 = vpop.permute.xlu1 %768  ;;  %v1507_v16 = vrot.slane %v1501_v37, 2  ;;  %v1529_v37 = vmul.f32 %v1526_v60, %v4910_v26 }
 0x137   : > { %8451 = vst [vmem:[#allocation51_spill] sm:$0xff] %v4976_v33  ;;  %8452 = vst [vmem:[#allocation52_spill] sm:$0xff] %v4981_v14 }
 0x138   : > { %1454 = vrot.lane.b32.xlu0 %v1451_v30, %s4212_s11  ;;  %1428 = vrot.lane.b32.xlu1 %v1422_v62, %s4211_s14  ;;  %v1480_v30 = vsel %vm1148_vm2, %v1477_v54, %v1479_v24  ;;  %v1478_v62 = vsel %vm1148_vm2, %v1476_v34, %v1477_v54 }
 0x13a   : > { %v4989_v33 = vpop.permute.xlu0 %774  ;;  %v4992_v58 = vpop.permute.xlu1 %772 }
 0x13b   : > { %8453 = vst [vmem:[#allocation53_spill] sm:$0xff] %v4989_v33  ;;  %8454 = vst [vmem:[#allocation54_spill] sm:$0xff] %v4992_v58  ;;  %v1502_v33 = vmul.f32 %v1499_v53, %v4875_v10  ;;  %v1527_v53 = vmul.f32 %v1526_v60, %v4898_v6 }
 0x13c   : > { %1458 = vrot.lane.b32.xlu0 %v1452_v48, %s4212_s11  ;;  %1456 = vrot.lane.b32.xlu1 %v1453_v38, %s4212_s11  ;;  %v1508_v48 = vsel %vm1148_vm2, %v1506_v11, %v1507_v16  ;;  %v1536_v11 = vrot.slane %v1529_v37, 2 }
 0x13d   : > { %v1509_v54 = vrot.slane %v1502_v33, 2 }
 0x13e   : > { %v4997_v14 = vpop.permute.xlu0 %819  ;;  %v5002_v61 = vpop.permute.xlu1 %776 }
 0x13f   : > { %8455 = vst [vmem:[#allocation55_spill] sm:$0xff] %v4997_v14  ;;  %8456 = vst [vmem:[#allocation56_spill] sm:$0xff] %v5002_v61  ;;  %v1556_v14 = vstv %s1554_s7  ;;  %v1510_v33 = vsel %vm1148_vm2, %v1507_v16, %v1509_v54  ;;  %s3867_s7 = sld [smem:[#allocation5 + $0x18]] }
 0x140   : > { %1483 = vrot.lane.b32.xlu0 %v1480_v30, %s4212_s11  ;;  %1481 = vrot.lane.b32.xlu1 %v1478_v62, %s4212_s11  ;;  %v1534_v30 = vrot.slane %v1528_v40, 2  ;;  %v1557_v61 = vmul.f32 %v1556_v14, %v4863_v32  ;;  %v1558_v58 = vmul.f32 %v4985_v18, %v1556_v14 }
 0x142   : > { %v5011_v38 = vpop.permute.xlu0 %823  ;;  %v5014_v34 = vpop.permute.xlu1 %821  ;;  %v1563_v40 = vrot.slane %v1557_v61, 2  ;;  %v1564_v32 = vrot.slane %v1558_v58, 2 }
 0x143   : > { %8457 = vst [vmem:[#allocation57_spill] sm:$0xff] %v5011_v38  ;;  %8458 = vst [vmem:[#allocation58_spill] sm:$0xff] %v5014_v34  ;;  %v1533_v38 = vrot.slane %v1527_v53, 2  ;;  %v1583_v34 = vstv %s3860_s8 }
 0x144   : > { %1511 = vrot.lane.b32.xlu0 %v1508_v48, %s4212_s11  ;;  %1485 = vrot.lane.b32.xlu1 %v1479_v24, %s4212_s11  ;;  %v1537_v48 = vsel %vm1148_vm2, %v1534_v30, %v1536_v11  ;;  %v1565_v53 = vsel %vm1148_vm2, %v1563_v40, %v1564_v32  ;;  %v1586_v61 = vmul.f32 %v1583_v34, %v4910_v26 }
 0x145   : > { %v1535_v24 = vsel %vm1148_vm2, %v1533_v38, %v1534_v30  ;;  %v1584_v38 = vmul.f32 %v1583_v34, %v4898_v6  ;;  %s1877_s8 = smul.f32 0.25, %s3867_s7  ;;  %s3874_s7 = sld [smem:[#allocation5 + $0x4c]] }
 0x146   : > { %v5022_v62 = vpop.permute.xlu0 %827  ;;  %v5025_v60 = vpop.permute.xlu1 %825 }
 0x147   : > { %8459 = vst [vmem:[#allocation59_spill] sm:$0xff] %v5022_v62  ;;  %8460 = vst [vmem:[#allocation60_spill] sm:$0xff] %v5025_v60  ;;  %v1559_v62 = vmul.f32 %v1556_v14, %v4875_v10  ;;  %v1593_v14 = vrot.slane %v1586_v61, 2  ;;  %v5066_v61 = vld [vmem:[#allocation2 + $0x38] sm:$0xff] }
 0x148   : > { %1515 = vrot.lane.b32.xlu0 %v1509_v54, %s4212_s11  ;;  %1513 = vrot.lane.b32.xlu1 %v1510_v33, %s4212_s11  ;;  %v1585_v54 = vmul.f32 %v5006_v4, %v1583_v34 }
 0x149   : > { %v1566_v33 = vrot.slane %v1559_v62, 2  ;;  %v5055_v62 = vld [vmem:[#allocation3] sm:$0xff] }
 0x14a   : > { %v5030_v37 = vpop.permute.xlu0 %869  ;;  %v5034_v16 = vpop.permute.xlu1 %829  ;;  %v1591_v10 = vrot.slane %v1585_v54, 2  ;;  %8467 = vst [vmem:[#allocation67_spill] sm:$0xff] %v5055_v62 }
 0x14b   : > { %8461 = vst [vmem:[#allocation61_spill] sm:$0xff] %v5030_v37  ;;  %8462 = vst [vmem:[#allocation62_spill] sm:$0xff] %v5034_v16  ;;  %v1567_v26 = vsel %vm1148_vm2, %v1564_v32, %v1566_v33  ;;  %v1590_v37 = vrot.slane %v1584_v38, 2 }
 0x14c   : > { %1540 = vrot.lane.b32.xlu0 %v1537_v48, %s4212_s11  ;;  %1538 = vrot.lane.b32.xlu1 %v1535_v24, %s4212_s11  ;;  %v1617_v48 = vstv %s1611_s16  ;;  %v1594_v34 = vsel %vm1148_vm2, %v1591_v10, %v1593_v14  ;;  %s3869_s16 = sld [smem:[#allocation5 + $0x19]] }
 0x14d   : > { %v1618_v6 = vmul.f32 %v5055_v62, %v1617_v48  ;;  %v1619_v38 = vmul.f32 %v4985_v18, %v1617_v48 }
 0x14e   : > { %v5042_v58 = vpop.permute.xlu0 %873  ;;  %v5045_v30 = vpop.permute.xlu1 %871 }
 0x14f   : > { %8463 = vst [vmem:[#allocation63_spill] sm:$0xff] %v5042_v58  ;;  %8464 = vst [vmem:[#allocation64_spill] sm:$0xff] %v5045_v30  ;;  %v1627_v32 = vrot.slane %v1618_v6, 3  ;;  %v1628_v6 = vrot.slane %v1619_v38, 3  ;;  %v5310_v30 = vld [vmem:[#allocation2 + $0x50] sm:$0x1] }
 0x150   : > { %1568 = vrot.lane.b32.xlu0 %v1565_v53, %s4213_s9  ;;  %1542 = vrot.lane.b32.xlu1 %v1536_v11, %s4212_s11  ;;  %v1592_v11 = vsel %vm1148_vm2, %v1590_v37, %v1591_v10  ;;  %v1660_v37 = vstv %s3862_s30 }
 0x152   : > { %v5049_v40 = vpop.permute.xlu0 %877  ;;  %v5052_v24 = vpop.permute.xlu1 %875  ;;  %s1926_s30 = smul.f32 0.25, %s3869_s16  ;;  %s3880_s16 = sld [smem:[#allocation5 + $0x4f]] }
 0x153   : > { %8465 = vst [vmem:[#allocation65_spill] sm:$0xff] %v5049_v40  ;;  %8466 = vst [vmem:[#allocation66_spill] sm:$0xff] %v5052_v24 }
 0x154   : > { %1572 = vrot.lane.b32.xlu0 %v1566_v33, %s4213_s9  ;;  %1570 = vrot.lane.b32.xlu1 %v1567_v26, %s4213_s9  ;;  %v1621_v26 = vmul.f32 %v1617_v48, %v5066_v61 }
 0x156   : > { %v5060_v53 = vpop.permute.xlu0 %911  ;;  %v5063_v54 = vpop.permute.xlu1 %879 }
 0x157   : > { %8468 = vst [vmem:[#allocation68_spill] sm:$0xff] %v5060_v53  ;;  %8469 = vst [vmem:[#allocation69_spill] sm:$0xff] %v5063_v54 }
 0x158   : > { %1597 = vrot.lane.b32.xlu0 %v1594_v34, %s4213_s9  ;;  %1595 = vrot.lane.b32.xlu1 %v1592_v11, %s4213_s9  ;;  %v1631_v34 = vrot.slane %v1621_v26, 3  ;;  %v1662_v26 = vmul.f32 %v5006_v4, %v1660_v37 }
 0x15a   : > { %v5069_v33 = vpop.permute.xlu0 %915  ;;  %v5073_v40 = vpop.permute.xlu1 %913 }
 0x15b   : > { %8470 = vst [vmem:[#allocation70_spill] sm:$0xff] %v5069_v33  ;;  %8471 = vst [vmem:[#allocation71_spill] sm:$0xff] %v5073_v40  ;;  %v1661_v33 = vmul.f32 %v5055_v62, %v1660_v37  ;;  %v1632_v40 = vsel %vm1626_vm3, %v1628_v6, %v1631_v34 }
 0x15c   : > { %1633 = vrot.lane.b32.xlu0 %v1627_v32, %s4214_s17  ;;  %1599 = vrot.lane.b32.xlu1 %v1593_v14, %s4213_s9 }
 0x15d   : > { %v1669_v14 = vrot.slane %v1661_v33, 3  ;;  %v1670_v33 = vrot.slane %v1662_v26, 3 }
 0x15e   : > { %v5077_v10 = vpop.permute.xlu0 %940  ;;  %v5079_v11 = vpop.permute.xlu1 %938 }
 0x15f   : > { %8472 = vst [vmem:[#allocation72_spill] sm:$0xff] %v5077_v10  ;;  %8473 = vst [vmem:[#allocation73_spill] sm:$0xff] %v5079_v11  ;;  %v5090_v10 = vld [vmem:[#allocation3 + $0x38] sm:$0xff] }
 0x160   : > { %1637 = vrot.lane.b32.xlu0 %v1627_v32, %s4214_s17  ;;  %1635 = vrot.lane.b32.xlu1 %v1628_v6, %s4214_s17  ;;  %v1664_v11 = vmul.f32 %v1660_v37, %v5090_v10  ;;  %v1705_v6 = vstv %s1703_s15  ;;  %s3871_s15 = sld [smem:[#allocation5 + $0x1a]] }
 0x161   : > { %v1707_v26 = vmul.f32 %v4985_v18, %v1705_v6 }
 0x162   : > { %v5084_v48 = vpop.permute.xlu0 %968  ;;  %v5087_v53 = vpop.permute.xlu1 %942 }
 0x163   : > { %8474 = vst [vmem:[#allocation74_spill] sm:$0xff] %v5084_v48  ;;  %8475 = vst [vmem:[#allocation75_spill] sm:$0xff] %v5087_v53  ;;  %v1673_v53 = vrot.slane %v1664_v11, 3 }
 0x164   : > { %1641 = vrot.lane.b32.xlu0 %v1627_v32, %s4214_s17  ;;  %1639 = vrot.lane.b32.xlu1 %v1632_v40, %s4214_s17  ;;  %v1706_v40 = vmul.f32 %v5055_v62, %v1705_v6 }
 0x166   : > { %v5093_v38 = vpop.permute.xlu0 %972  ;;  %v5097_v54 = vpop.permute.xlu1 %970 }
 0x167   : > { %8476 = vst [vmem:[#allocation76_spill] sm:$0xff] %v5093_v38  ;;  %8477 = vst [vmem:[#allocation77_spill] sm:$0xff] %v5097_v54  ;;  %v1674_v54 = vsel %vm1626_vm3, %v1670_v33, %v1673_v53 }
 0x168   : > { %1675 = vrot.lane.b32.xlu0 %v1669_v14, %s4214_s17  ;;  %1643 = vrot.lane.b32.xlu1 %v1631_v34, %s4214_s17  ;;  %v1714_v34 = vrot.slane %v1706_v40, 3 }
 0x16a   : > { %v5101_v32 = vpop.permute.xlu0 %997  ;;  %v5103_v48 = vpop.permute.xlu1 %995 }
 0x16b   : > { %8478 = vst [vmem:[#allocation78_spill] sm:$0xff] %v5101_v32  ;;  %8479 = vst [vmem:[#allocation79_spill] sm:$0xff] %v5103_v48  ;;  %v1709_v48 = vmul.f32 %v1705_v6, %v5066_v61 }
 0x16c   : > { %1679 = vrot.lane.b32.xlu0 %v1669_v14, %s4214_s17  ;;  %1677 = vrot.lane.b32.xlu1 %v1670_v33, %s4214_s17 }
 0x16d   : > { %v1718_v40 = vrot.slane %v1709_v48, 3 }
 0x16e   : > { %v5108_v37 = vpop.permute.xlu0 %1025  ;;  %v5111_v38 = vpop.permute.xlu1 %999 }
 0x16f   : > { %8480 = vst [vmem:[#allocation80_spill] sm:$0xff] %v5108_v37  ;;  %8481 = vst [vmem:[#allocation81_spill] sm:$0xff] %v5111_v38  ;;  %v1747_v37 = vstv %s3864_s0  ;;  %s1975_s0 = smul.f32 0.25, %s3871_s15  ;;  %s3882_s15 = sld [smem:[#allocation5 + $0x50]] }
 0x170   : > { %1683 = vrot.lane.b32.xlu0 %v1669_v14, %s4214_s17  ;;  %1681 = vrot.lane.b32.xlu1 %v1674_v54, %s4214_s17  ;;  %v1715_v14 = vrot.slane %v1707_v26, 3  ;;  %v1748_v54 = vmul.f32 %v5055_v62, %v1747_v37  ;;  %v1749_v26 = vmul.f32 %v5006_v4, %v1747_v37 }
 0x172   : > { %v5115_v11 = vpop.permute.xlu0 %1029  ;;  %v5119_v32 = vpop.permute.xlu1 %1027 }
 0x173   : > { %8482 = vst [vmem:[#allocation82_spill] sm:$0xff] %v5115_v11  ;;  %8483 = vst [vmem:[#allocation83_spill] sm:$0xff] %v5119_v32  ;;  %v1719_v32 = vsel %vm1626_vm3, %v1715_v14, %v1718_v40 }
 0x174   : > { %1720 = vrot.lane.b32.xlu0 %v1714_v34, %s4215_s18  ;;  %1685 = vrot.lane.b32.xlu1 %v1673_v53, %s4214_s17  ;;  %v1756_v53 = vrot.slane %v1748_v54, 3 }
 0x176   : > { %v5123_v33 = vpop.permute.xlu0 %1054  ;;  %v5125_v38 = vpop.permute.xlu1 %1052 }
 0x177   : > { %8484 = vst [vmem:[#allocation84_spill] sm:$0xff] %v5123_v33  ;;  %8485 = vst [vmem:[#allocation85_spill] sm:$0xff] %v5125_v38  ;;  %v1751_v38 = vmul.f32 %v1747_v37, %v5090_v10 }
 0x178   : > { %1724 = vrot.lane.b32.xlu0 %v1714_v34, %s4215_s18  ;;  %1722 = vrot.lane.b32.xlu1 %v1715_v14, %s4215_s18 }
 0x179   : > { %v1760_v54 = vrot.slane %v1751_v38, 3 }
 0x17a   : > { %v5130_v6 = vpop.permute.xlu0 %1082  ;;  %v5133_v11 = vpop.permute.xlu1 %1056 }
 0x17b   : > { %8486 = vst [vmem:[#allocation86_spill] sm:$0xff] %v5130_v6  ;;  %8487 = vst [vmem:[#allocation87_spill] sm:$0xff] %v5133_v11  ;;  %v1792_v6 = vstv %s1790_s28  ;;  %s3873_s28 = sld [smem:[#allocation5 + $0x1b]] }
 0x17c   : > { %1728 = vrot.lane.b32.xlu0 %v1714_v34, %s4215_s18  ;;  %1726 = vrot.lane.b32.xlu1 %v1719_v32, %s4215_s18  ;;  %v1757_v34 = vrot.slane %v1749_v26, 3  ;;  %v1793_v32 = vmul.f32 %v5055_v62, %v1792_v6  ;;  %v1794_v26 = vmul.f32 %v4985_v18, %v1792_v6 }
 0x17e   : > { %v5137_v48 = vpop.permute.xlu0 %1086  ;;  %v5141_v33 = vpop.permute.xlu1 %1084 }
 0x17f   : > { %8488 = vst [vmem:[#allocation88_spill] sm:$0xff] %v5137_v48  ;;  %8489 = vst [vmem:[#allocation89_spill] sm:$0xff] %v5141_v33  ;;  %v1761_v33 = vsel %vm1626_vm3, %v1757_v34, %v1760_v54 }
 0x180   : > { %1762 = vrot.lane.b32.xlu0 %v1756_v53, %s4215_s18  ;;  %1730 = vrot.lane.b32.xlu1 %v1718_v40, %s4215_s18  ;;  %v1801_v40 = vrot.slane %v1793_v32, 3 }
 0x182   : > { %v5145_v14 = vpop.permute.xlu0 %1111  ;;  %v5147_v11 = vpop.permute.xlu1 %1109 }
 0x183   : > { %8490 = vst [vmem:[#allocation90_spill] sm:$0xff] %v5145_v14  ;;  %8491 = vst [vmem:[#allocation91_spill] sm:$0xff] %v5147_v11  ;;  %v1796_v11 = vmul.f32 %v1792_v6, %v5066_v61 }
 0x184   : > { %1766 = vrot.lane.b32.xlu0 %v1756_v53, %s4215_s18  ;;  %1764 = vrot.lane.b32.xlu1 %v1757_v34, %s4215_s18 }
 0x185   : > { %v1805_v32 = vrot.slane %v1796_v11, 3 }
 0x186   : > { %v5152_v37 = vpop.permute.xlu0 %1305  ;;  %v5155_v48 = vpop.permute.xlu1 %1113 }
 0x187   : > { %8492 = vst [vmem:[#allocation92_spill] sm:$0xff] %v5152_v37  ;;  %8493 = vst [vmem:[#allocation93_spill] sm:$0xff] %v5155_v48  ;;  %v1834_v37 = vstv %s3866_s6  ;;  %s2024_s6 = smul.f32 0.25, %s3873_s28  ;;  %s3820_s28 = sld [smem:[#allocation5 + $0x31]] }
 0x188   : > { %1770 = vrot.lane.b32.xlu0 %v1756_v53, %s4215_s18  ;;  %1768 = vrot.lane.b32.xlu1 %v1761_v33, %s4215_s18  ;;  %v1802_v53 = vrot.slane %v1794_v26, 3  ;;  %v1835_v33 = vmul.f32 %v5055_v62, %v1834_v37  ;;  %v1836_v26 = vmul.f32 %v5006_v4, %v1834_v37 }
 0x18a   : > { %v5159_v38 = vpop.permute.xlu0 %1309  ;;  %v5163_v14 = vpop.permute.xlu1 %1307 }
 0x18b   : > { %8494 = vst [vmem:[#allocation94_spill] sm:$0xff] %v5159_v38  ;;  %8495 = vst [vmem:[#allocation95_spill] sm:$0xff] %v5163_v14  ;;  %v1806_v38 = vsel %vm1626_vm3, %v1802_v53, %v1805_v32 }
 0x18c   : > { %1807 = vrot.lane.b32.xlu0 %v1801_v40, %s4215_s18  ;;  %1772 = vrot.lane.b32.xlu1 %v1760_v54, %s4215_s18  ;;  %v1843_v54 = vrot.slane %v1835_v33, 3  ;;  %v1844_v33 = vrot.slane %v1836_v26, 3 }
 0x18e   : > { %v5167_v34 = vpop.permute.xlu0 %1313  ;;  %v5169_v48 = vpop.permute.xlu1 %1311 }
 0x18f   : > { %8496 = vst [vmem:[#allocation96_spill] sm:$0xff] %v5167_v34  ;;  %8497 = vst [vmem:[#allocation97_spill] sm:$0xff] %v5169_v48  ;;  %v1838_v34 = vmul.f32 %v1834_v37, %v5090_v10 }
 0x190   : > { %1811 = vrot.lane.b32.xlu0 %v1801_v40, %s4215_s18  ;;  %1809 = vrot.lane.b32.xlu1 %v1802_v53, %s4215_s18  ;;  %v1879_v53 = vstv %s1877_s8  ;;  %s3879_s8 = sld [smem:[#allocation5 + $0x1e]] }
 0x191   : > { %v1881_v58 = vmul.f32 %v1879_v53, %v5066_v61 }
 0x192   : > { %v5174_v6 = vpop.permute.xlu0 %1355  ;;  %v5177_v14 = vpop.permute.xlu1 %1315 }
 0x193   : > { %8498 = vst [vmem:[#allocation98_spill] sm:$0xff] %v5174_v6  ;;  %8499 = vst [vmem:[#allocation99_spill] sm:$0xff] %v5177_v14  ;;  %v1847_v6 = vrot.slane %v1838_v34, 3 }
 0x194   : > { %1815 = vrot.lane.b32.xlu0 %v1801_v40, %s4215_s18  ;;  %1813 = vrot.lane.b32.xlu1 %v1806_v38, %s4215_s18 }
 0x195   : > { %v1848_v14 = vsel %vm1626_vm3, %v1844_v33, %v1847_v6 }
 0x196   : > { %v5181_v11 = vpop.permute.xlu0 %1359  ;;  %v5185_v48 = vpop.permute.xlu1 %1357 }
 0x197   : > { %8500 = vst [vmem:[#allocation100_spill] sm:$0xff] %v5181_v11  ;;  %8501 = vst [vmem:[#allocation101_spill] sm:$0xff] %v5185_v48  ;;  %v1880_v11 = vmul.f32 %v4985_v18, %v1879_v53  ;;  %v1902_v48 = vstv %s3868_s12  ;;  %s2232_s12 = smul.f32 0.25, %s3879_s8  ;;  %s5380_s8 = sld [smem:[#allocation5 + $0x51]] }
 0x198   : > { %1849 = vrot.lane.b32.xlu0 %v1843_v54, %s4215_s18  ;;  %1817 = vrot.lane.b32.xlu1 %v1805_v32, %s4215_s18  ;;  %v1903_v26 = vmul.f32 %v5006_v4, %v1902_v48 }
 0x199   : > { %v1884_v34 = vrot.slane %v1880_v11, 3 }
 0x19a   : > { %v5189_v40 = vpop.permute.xlu0 %1363  ;;  %v5191_v38 = vpop.permute.xlu1 %1361  ;;  %v1907_v53 = vrot.slane %v1903_v26, 3 }
 0x19b   : > { %8502 = vst [vmem:[#allocation102_spill] sm:$0xff] %v5189_v40  ;;  %8503 = vst [vmem:[#allocation103_spill] sm:$0xff] %v5191_v38  ;;  %v1904_v40 = vmul.f32 %v1902_v48, %v5090_v10 }
 0x19c   : > { %1853 = vrot.lane.b32.xlu0 %v1843_v54, %s4215_s18  ;;  %1851 = vrot.lane.b32.xlu1 %v1844_v33, %s4215_s18 }
 0x19d   : > { %v1908_v33 = vrot.slane %v1904_v40, 3  ;;  %v1951_v40 = vstv %s3870_s13  ;;  %v2421_v31 = vstv %s5380_s8  ;;  %s5565_s8 = sld [smem:[#allocation5 + $0x23]] }
 0x19e   : > { %v5196_v37 = vpop.permute.xlu0 %1397  ;;  %v5200_v32 = vpop.permute.xlu1 %1365 }
 0x19f   : > { %8504 = vst [vmem:[#allocation104_spill] sm:$0xff] %v5196_v37  ;;  %8505 = vst [vmem:[#allocation105_spill] sm:$0xff] %v5200_v32  ;;  %v1885_v37 = vrot.slane %v1881_v58, 3  ;;  %v1928_v32 = vstv %s1926_s30  ;;  %s5313_s30 = sld [smem:[#allocation5 + $0x1f]] }
 0x1a0   : > { %1857 = vrot.lane.b32.xlu0 %v1843_v54, %s4215_s18  ;;  %1855 = vrot.lane.b32.xlu1 %v1848_v14, %s4215_s18  ;;  %v1929_v58 = vmul.f32 %v4985_v18, %v1928_v32  ;;  %v1909_v14 = vsel %vm1626_vm3, %v1907_v53, %v1908_v33 }
 0x1a1   : > { %v1886_v48 = vsel %vm1626_vm3, %v1884_v34, %v1885_v37 }
 0x1a2   : > { %v5206_v38 = vpop.permute.xlu0 %1401  ;;  %v5208_v24 = vpop.permute.xlu1 %1399 }
 0x1a3   : > { %8506 = vst [vmem:[#allocation106_spill] sm:$0xff] %v5206_v38  ;;  %8507 = vst [vmem:[#allocation107_spill] sm:$0xff] %v5208_v24  ;;  %v1930_v24 = vmul.f32 %v1928_v32, %v5066_v61  ;;  %v1977_v38 = vstv %s1975_s0  ;;  %s5348_s0 = sld [smem:[#allocation5 + $0x20]] }
 0x1a4   : > { %1887 = vrot.lane.b32.xlu0 %v1884_v34, %s4216_s27  ;;  %1859 = vrot.lane.b32.xlu1 %v1847_v6, %s4215_s18  ;;  %v1933_v34 = vrot.slane %v1929_v58, 3 }
 0x1a5   : > { %s2335_s13 = smul.f32 0.25, %s5313_s30  ;;  %s5391_s30 = sld [smem:[#allocation5 + $0x21]] }
 0x1a6   : > { %v5212_v54 = vpop.permute.xlu0 %1426  ;;  %v5215_v11 = vpop.permute.xlu1 %1424 }
 0x1a7   : > { %8508 = vst [vmem:[#allocation108_spill] sm:$0xff] %v5212_v54  ;;  %8509 = vst [vmem:[#allocation109_spill] sm:$0xff] %v5215_v11  ;;  %v1952_v11 = vmul.f32 %v5006_v4, %v1951_v40 }
 0x1a8   : > { %1891 = vrot.lane.b32.xlu0 %v1885_v37, %s4216_s27  ;;  %1889 = vrot.lane.b32.xlu1 %v1886_v48, %s4216_s27  ;;  %v1953_v37 = vmul.f32 %v1951_v40, %v5090_v10  ;;  %v1934_v48 = vrot.slane %v1930_v24, 3  ;;  %v1978_v24 = vmul.f32 %v4985_v18, %v1977_v38 }
 0x1a9   : > { %v1956_v32 = vrot.slane %v1952_v11, 3 }
 0x1aa   : > { %v5221_v26 = vpop.permute.xlu0 %1454  ;;  %v5224_v6 = vpop.permute.xlu1 %1428 }
 0x1ab   : > { %8510 = vst [vmem:[#allocation110_spill] sm:$0xff] %v5221_v26  ;;  %8511 = vst [vmem:[#allocation111_spill] sm:$0xff] %v5224_v6  ;;  %v1957_v6 = vrot.slane %v1953_v37, 3  ;;  %v2000_v37 = vstv %s3872_s25  ;;  %s5353_s25 = sld [smem:[#allocation5]] }
 0x1ac   : > { %1912 = vrot.lane.b32.xlu0 %v1909_v14, %s4216_s27  ;;  %1910 = vrot.lane.b32.xlu1 %v1907_v53, %s4216_s27  ;;  %v1935_v14 = vsel %vm1626_vm3, %v1933_v34, %v1934_v48 }
 0x1ad   : > { %v1958_v53 = vsel %vm1626_vm3, %v1956_v32, %v1957_v6 }
 0x1ae   : > { %v5230_v54 = vpop.permute.xlu0 %1458  ;;  %v5232_v26 = vpop.permute.xlu1 %1456 }
 0x1af   : > { %8512 = vst [vmem:[#allocation112_spill] sm:$0xff] %v5230_v54  ;;  %8513 = vst [vmem:[#allocation113_spill] sm:$0xff] %v5232_v26  ;;  %v1979_v26 = vmul.f32 %v1977_v38, %v5066_v61  ;;  %v2026_v54 = vstv %s2024_s6  ;;  %s5366_s6 = sld [smem:[#allocation5 + $0x1]] }
 0x1b0   : > { %1936 = vrot.lane.b32.xlu0 %v1933_v34, %s4216_s27  ;;  %1914 = vrot.lane.b32.xlu1 %v1908_v33, %s4216_s27  ;;  %v1982_v34 = vrot.slane %v1978_v24, 3 }
 0x1b2   : > { %v5236_v58 = vpop.permute.xlu0 %1483  ;;  %v5239_v40 = vpop.permute.xlu1 %1481 }
 0x1b3   : > { %8514 = vst [vmem:[#allocation114_spill] sm:$0xff] %v5236_v58  ;;  %8515 = vst [vmem:[#allocation115_spill] sm:$0xff] %v5239_v40  ;;  %v2001_v40 = vmul.f32 %v5006_v4, %v2000_v37 }
 0x1b4   : > { %1940 = vrot.lane.b32.xlu0 %v1934_v48, %s4216_s27  ;;  %1938 = vrot.lane.b32.xlu1 %v1935_v14, %s4216_s27  ;;  %v2002_v48 = vmul.f32 %v2000_v37, %v5090_v10  ;;  %v1983_v14 = vrot.slane %v1979_v26, 3  ;;  %v2027_v26 = vmul.f32 %v4985_v18, %v2026_v54 }
 0x1b5   : > { %v2005_v38 = vrot.slane %v2001_v40, 3 }
 0x1b6   : > { %v5245_v11 = vpop.permute.xlu0 %1511  ;;  %v5248_v33 = vpop.permute.xlu1 %1485 }
 0x1b7   : > { %8516 = vst [vmem:[#allocation116_spill] sm:$0xff] %v5245_v11  ;;  %8517 = vst [vmem:[#allocation117_spill] sm:$0xff] %v5248_v33  ;;  %v2006_v33 = vrot.slane %v2002_v48, 3  ;;  %v2049_v48 = vstv %s3874_s7  ;;  %s2392_s7 = smul.f32 0.25, %s5348_s0  ;;  %s5456_s0 = sld [smem:[#allocation5 + $0x52]] }
 0x1b8   : > { %1961 = vrot.lane.b32.xlu0 %v1958_v53, %s4216_s27  ;;  %1959 = vrot.lane.b32.xlu1 %v1956_v32, %s4216_s27  ;;  %v1984_v53 = vsel %vm1626_vm3, %v1982_v34, %v1983_v14 }
 0x1b9   : > { %v2007_v32 = vsel %vm1626_vm3, %v2005_v38, %v2006_v33 }
 0x1ba   : > { %v5254_v58 = vpop.permute.xlu0 %1515  ;;  %v5256_v11 = vpop.permute.xlu1 %1513 }
 0x1bb   : > { %8518 = vst [vmem:[#allocation118_spill] sm:$0xff] %v5254_v58  ;;  %8519 = vst [vmem:[#allocation119_spill] sm:$0xff] %v5256_v11  ;;  %v2028_v11 = vmul.f32 %v2026_v54, %v5066_v61 }
 0x1bc   : > { %1985 = vrot.lane.b32.xlu0 %v1982_v34, %s4217_s29  ;;  %1963 = vrot.lane.b32.xlu1 %v1957_v6, %s4216_s27  ;;  %v2031_v34 = vrot.slane %v2027_v26, 3 }
 0x1be   : > { %v5260_v24 = vpop.permute.xlu0 %1540  ;;  %v5263_v37 = vpop.permute.xlu1 %1538 }
 0x1bf   : > { %8520 = vst [vmem:[#allocation120_spill] sm:$0xff] %v5260_v24  ;;  %8521 = vst [vmem:[#allocation121_spill] sm:$0xff] %v5263_v37  ;;  %v2050_v37 = vmul.f32 %v5006_v4, %v2049_v48 }
 0x1c0   : > { %1989 = vrot.lane.b32.xlu0 %v1983_v14, %s4217_s29  ;;  %1987 = vrot.lane.b32.xlu1 %v1984_v53, %s4217_s29  ;;  %v2051_v14 = vmul.f32 %v2049_v48, %v5090_v10  ;;  %v2032_v53 = vrot.slane %v2028_v11, 3 }
 0x1c1   : > { %v2054_v61 = vrot.slane %v2050_v37, 3 }
 0x1c2   : > { %v5269_v40 = vpop.permute.xlu0 %1568  ;;  %v5272_v6 = vpop.permute.xlu1 %1542  ;;  %v2055_v54 = vrot.slane %v2051_v14, 3  ;;  %v2033_v10 = vsel %vm1626_vm3, %v2031_v34, %v2032_v53  ;;  %v2079_v14 = vld [vmem:[#allocation2 + $0x48] sm:$0x1] }
 0x1c3   : > { %8522 = vst [vmem:[#allocation122_spill] sm:$0xff] %v5269_v40  ;;  %8523 = vst [vmem:[#allocation123_spill] sm:$0xff] %v5272_v6  ;;  %v2075_v6 = vld [vmem:[#allocation2 + $0x18] sm:$0xfe]  ;;  %v2234_v40 = vstv %s2232_s12  ;;  %s235_s12 = smul.f32 0.25, %s5353_s25  ;;  %s5476_s25 = sld [smem:[#allocation5 + $0xe]] }
 0x1c4   : > { %2010 = vrot.lane.b32.xlu0 %v2007_v32, %s4217_s29  ;;  %2008 = vrot.lane.b32.xlu1 %v2005_v38, %s4217_s29  ;;  %v2235_v38 = vmul.f32 %v2234_v40, %v2075_v6  ;;  %v2056_v11 = vsel %vm1626_vm3, %v2054_v61, %v2055_v54  ;;  %v2237_v48 = vmul.f32 %v5055_v62, %v2234_v40 }
 0x1c5   : > { %v2240_v16 = vmul.f32 %v2234_v40, %v5310_v30 }
 0x1c6   : > { %v5278_v24 = vpop.permute.xlu0 %1572  ;;  %v5280_v58 = vpop.permute.xlu1 %1570  ;;  %v2249_v6 = vrot.slane %v2237_v48, 4  ;;  %v2081_v48 = vld [vmem:[#allocation3 + $0x18] sm:$0xfe] }
 0x1c7   : > { %8524 = vst [vmem:[#allocation124_spill] sm:$0xff] %v5278_v24  ;;  %8525 = vst [vmem:[#allocation125_spill] sm:$0xff] %v5280_v58  ;;  %v5297_v58 = vld [vmem:[#allocation2 + $0x38] sm:$0xff] }
 0x1c8   : > { %2034 = vrot.lane.b32.xlu0 %v2031_v34, %s4217_s29  ;;  %2012 = vrot.lane.b32.xlu1 %v2006_v33, %s4217_s29  ;;  %v5295_v33 = vld [vmem:[#allocation2 + $0x20] sm:$0xfe] }
 0x1ca   : > { %v5284_v26 = vpop.permute.xlu0 %1597  ;;  %v5287_v32 = vpop.permute.xlu1 %1595 }
 0x1cb   : > { %8526 = vst [vmem:[#allocation126_spill] sm:$0xff] %v5284_v26  ;;  %8527 = vst [vmem:[#allocation127_spill] sm:$0xff] %v5287_v32  ;;  %v2239_v26 = vmul.f32 %v2234_v40, %v2079_v14  ;;  %v2284_v14 = vstv %s3880_s16  ;;  %s5384_s16 = sld [smem:[#allocation5 + $0x32]] }
 0x1cc   : > { %2038 = vrot.lane.b32.xlu0 %v2032_v53, %s4217_s29  ;;  %2036 = vrot.lane.b32.xlu1 %v2033_v10, %s4217_s29  ;;  %v2247_v53 = vrot.slane %v2235_v38, 4  ;;  %v2236_v10 = vmul.f32 %v2234_v40, %v5295_v33  ;;  %v2285_v60 = vmul.f32 %v2284_v14, %v2081_v48 }
 0x1cd   : > { %v2253_v38 = vrot.slane %v2239_v26, 4 }
 0x1ce   : > { %v5293_v37 = vpop.permute.xlu0 %1633  ;;  %v5299_v34 = vpop.permute.xlu1 %1599 }
 0x1cf   : > { %8528 = vst [vmem:[#allocation128_spill] sm:$0xff] %v5293_v37  ;;  %8529 = vst [vmem:[#allocation129_spill] sm:$0xff] %v5299_v34  ;;  %v2238_v37 = vmul.f32 %v2234_v40, %v5297_v58  ;;  %v2254_v26 = vsel %vm2100_vm4, %v2249_v6, %v2253_v38  ;;  %v5330_v40 = vld [vmem:[#allocation3 + $0x38] sm:$0xff] }
 0x1d0   : > { %2059 = vrot.lane.b32.xlu0 %v2056_v11, %s4217_s29  ;;  %2057 = vrot.lane.b32.xlu1 %v2054_v61, %s4217_s29  ;;  %v2250_v11 = vsel %vm2100_vm4, %v2247_v53, %v2249_v6 }
 0x1d1   : > { %v2251_v34 = vrot.slane %v2238_v37, 4  ;;  %v2255_v37 = vrot.slane %v2240_v16, 4  ;;  %v291_v43 = vstv %s5384_s16  ;;  %s2563_s16 = smul.f32 0.25, %s5565_s8  ;;  %s6199_s8 = sld [smem:[#allocation5 + $0x58]] }
 0x1d2   : > { %v5303_v32 = vpop.permute.xlu0 %1637  ;;  %v5307_v24 = vpop.permute.xlu1 %1635 }
 0x1d3   : > { %8530 = vst [vmem:[#allocation130_spill] sm:$0xff] %v5303_v32  ;;  %8531 = vst [vmem:[#allocation131_spill] sm:$0xff] %v5307_v24  ;;  %v2248_v32 = vrot.slane %v2236_v10, 4  ;;  %v2256_v16 = vsel %vm2100_vm4, %v2251_v34, %v2255_v37 }
 0x1d4   : > { %2257 = vrot.lane.b32.xlu0 %v2247_v53, %s4211_s14  ;;  %2061 = vrot.lane.b32.xlu1 %v2055_v54, %s4217_s29  ;;  %v2287_v53 = vmul.f32 %v5055_v62, %v2284_v14  ;;  %v2085_v54 = vld [vmem:[#allocation3 + $0x48] sm:$0x1] }
 0x1d5   : > { %v2252_v10 = vsel %vm2100_vm4, %v2248_v32, %v2251_v34  ;;  %v2289_v38 = vmul.f32 %v2284_v14, %v2085_v54  ;;  %v2337_v54 = vstv %s2335_s13  ;;  %s276_s13 = smul.f32 0.25, %s5366_s6 }
 0x1d6   : > { %v5316_v61 = vpop.permute.xlu0 %1641  ;;  %v5319_v24 = vpop.permute.xlu1 %1639  ;;  %v2299_v6 = vrot.slane %v2287_v53, 4  ;;  %s1125_s6 = smul.f32 0.25, %s5476_s25  ;;  %s5846_s25 = sld [smem:[#allocation5 + $0x25]] }
 0x1d7   : > { %8532 = vst [vmem:[#allocation132_spill] sm:$0xff] %v5316_v61  ;;  %8533 = vst [vmem:[#allocation133_spill] sm:$0xff] %v5319_v24  ;;  %v5328_v61 = vld [vmem:[#allocation3 + $0x20] sm:$0xfe]  ;;  %v2303_v53 = vrot.slane %v2289_v38, 4  ;;  %v278_v52 = vstv %s276_s13  ;;  %s5761_s13 = sld [smem:[#allocation5 + $0x54]] }
 0x1d8   : > { %2261 = vrot.lane.b32.xlu0 %v2250_v11, %s4211_s14  ;;  %2259 = vrot.lane.b32.xlu1 %v2248_v32, %s4211_s14  ;;  %v2297_v11 = vrot.slane %v2285_v60, 4  ;;  %v2288_v32 = vmul.f32 %v2284_v14, %v5330_v40  ;;  %v5437_v28 = vmul.f32 %v2421_v31, %v5328_v61  ;;  %v5462_v22 = vmul.f32 %v4037_v55, %v278_v52 }
 0x1d9   : > { %v2304_v38 = vsel %vm2100_vm4, %v2299_v6, %v2303_v53 }
 0x1da   : > { %v5325_v5 = vpop.permute.xlu0 %1675  ;;  %v5332_v24 = vpop.permute.xlu1 %1643  ;;  %v2300_v60 = vsel %vm2100_vm4, %v2297_v11, %v2299_v6  ;;  %v2301_v34 = vrot.slane %v2288_v32, 4 }
 0x1db   : > { %8534 = vst [vmem:[#allocation134_spill] sm:$0xff] %v5325_v5  ;;  %8535 = vst [vmem:[#allocation135_spill] sm:$0xff] %v5332_v24  ;;  %v2286_v5 = vmul.f32 %v2284_v14, %v5328_v61  ;;  %v2339_v24 = vmul.f32 %v2337_v54, %v5297_v58 }
 0x1dc   : > { %2265 = vrot.lane.b32.xlu0 %v2254_v26, %s4211_s14  ;;  %2263 = vrot.lane.b32.xlu1 %v2252_v10, %s4211_s14  ;;  %v5345_v26 = vld [vmem:[#allocation3 + $0x50] sm:$0x1] }
 0x1dd   : > { %v2290_v37 = vmul.f32 %v2284_v14, %v5345_v26  ;;  %v2364_v14 = vstv %s3882_s15  ;;  %v2345_v53 = vrot.slane %v2339_v24, 4  ;;  %s2449_s15 = smul.f32 0.25, %s5391_s30  ;;  %s5694_s30 = sld [smem:[#allocation5 + $0xf]] }
 0x1de   : > { %v5337_v48 = vpop.permute.xlu0 %1679  ;;  %v5342_v49 = vpop.permute.xlu1 %1677  ;;  %v5374_v41 = vmul.f32 %v2364_v14, %v5330_v40 }
 0x1df   : > { %8536 = vst [vmem:[#allocation136_spill] sm:$0xff] %v5337_v48  ;;  %8537 = vst [vmem:[#allocation137_spill] sm:$0xff] %v5342_v49  ;;  %v2298_v48 = vrot.slane %v2286_v5, 4 }
 0x1e0   : > { %2307 = vrot.lane.b32.xlu0 %v2297_v11, %s4211_s14  ;;  %2267 = vrot.lane.b32.xlu1 %v2256_v16, %s4211_s14  ;;  %v2338_v11 = vmul.f32 %v2337_v54, %v5295_v33  ;;  %v2340_v16 = vmul.f32 %v2337_v54, %v5310_v30  ;;  %v2365_v54 = vmul.f32 %v2364_v14, %v5328_v61 }
 0x1e1   : > { %v2302_v32 = vsel %vm2100_vm4, %v2298_v48, %v2301_v34 }
 0x1e2   : > { %v5351_v10 = vpop.permute.xlu0 %1683  ;;  %v5356_v49 = vpop.permute.xlu1 %1681  ;;  %v2344_v6 = vrot.slane %v2338_v11, 4  ;;  %v2371_v11 = vrot.slane %v2365_v54, 4 }
 0x1e3   : > { %8538 = vst [vmem:[#allocation138_spill] sm:$0xff] %v5351_v10  ;;  %8539 = vst [vmem:[#allocation139_spill] sm:$0xff] %v5356_v49  ;;  %v2347_v49 = vrot.slane %v2340_v16, 4  ;;  %v2394_v16 = vstv %s2392_s7 }
 0x1e4   : > { %2311 = vrot.lane.b32.xlu0 %v2300_v60, %s4211_s14  ;;  %2309 = vrot.lane.b32.xlu1 %v2298_v48, %s4211_s14  ;;  %v2305_v60 = vrot.slane %v2290_v37, 4 }
 0x1e5   : > { %v2348_v37 = vsel %vm2100_vm4, %v2345_v53, %v2347_v49  ;;  %v5403_v49 = vmul.f32 %v2394_v16, %v5295_v33 }
 0x1e6   : > { %v5364_v5 = vpop.permute.xlu0 %1720  ;;  %v5369_v10 = vpop.permute.xlu1 %1685  ;;  %v2306_v48 = vsel %vm2100_vm4, %v2301_v34, %v2305_v60  ;;  %v249_v34 = vstv %s235_s12  ;;  %v2346_v60 = vsel %vm2100_vm4, %v2344_v6, %v2345_v53  ;;  %s5609_s12 = sld [smem:[#allocation5 + $0x3f]] }
 0x1e7   : > { %8540 = vst [vmem:[#allocation140_spill] sm:$0xff] %v5364_v5  ;;  %8541 = vst [vmem:[#allocation141_spill] sm:$0xff] %v5369_v10  ;;  %v5421_v13 = vmul.f32 %v5055_v62, %v249_v34  ;;  %v5426_v45 = vmul.f32 %v4037_v55, %v249_v34  ;;  %v5428_v25 = vmul.f32 %v4038_v35, %v249_v34 }
 0x1e8   : > { %2315 = vrot.lane.b32.xlu0 %v2304_v38, %s4211_s14  ;;  %2313 = vrot.lane.b32.xlu1 %v2302_v32, %s4211_s14  ;;  %v2372_v38 = vrot.slane %v5374_v41, 4  ;;  %v262_v32 = vstv %s3820_s28  ;;  %v4033_v41 = vld [vmem:[#allocation3] sm:$0xe0]  ;;  %s5484_s28 = sld [smem:[#allocation5 + $0x22]] }
 0x1e9   : > { %v5405_v54 = vmul.f32 %v4033_v41, %v262_v32  ;;  %v5447_v21 = vmul.f32 %v5006_v4, %v262_v32  ;;  %v5460_v12 = vmul.f32 %v4040_v20, %v262_v32 }
 0x1ea   : > { %v5378_v5 = vpop.permute.xlu0 %1724  ;;  %v5386_v24 = vpop.permute.xlu1 %1722 }
 0x1eb   : > { %8542 = vst [vmem:[#allocation142_spill] sm:$0xff] %v5378_v5  ;;  %8543 = vst [vmem:[#allocation143_spill] sm:$0xff] %v5386_v24  ;;  %v2367_v24 = vmul.f32 %v2364_v14, %v5345_v26  ;;  %v4034_v14 = vld [vmem:[#allocation3 + $0x8] sm:$0xe0] }
 0x1ec   : > { %2349 = vrot.lane.b32.xlu0 %v2344_v6, %s4211_s14  ;;  %2317 = vrot.lane.b32.xlu1 %v2306_v48, %s4211_s14  ;;  %v2373_v48 = vsel %vm2100_vm4, %v2371_v11, %v2372_v38  ;;  %v2397_v6 = vmul.f32 %v2394_v16, %v5310_v30  ;;  %v264_v53 = vmul.f32 %v4034_v14, %v262_v32 }
 0x1ed   : > { %v2374_v39 = vrot.slane %v2367_v24, 4  ;;  %v5440_v24 = vmul.f32 %v2421_v31, %v5330_v40 }
 0x1ee   : > { %v5394_v5 = vpop.permute.xlu0 %1728  ;;  %v5399_v10 = vpop.permute.xlu1 %1726  ;;  %v2404_v29 = vrot.slane %v2397_v6, 4  ;;  %s2506_s7 = smul.f32 0.25, %s5484_s28 }
 0x1ef   : > { %8544 = vst [vmem:[#allocation144_spill] sm:$0xff] %v5394_v5  ;;  %8545 = vst [vmem:[#allocation145_spill] sm:$0xff] %v5399_v10  ;;  %v5409_v5 = vmul.f32 %v2394_v16, %v5297_v58  ;;  %v4035_v10 = vld [vmem:[#allocation2 + $0x8] sm:$0xe0]  ;;  %v5424_v16 = vmul.f32 %v4985_v18, %v249_v34  ;;  %v2375_v19 = vsel %vm2100_vm4, %v2372_v38, %v2374_v39  ;;  %v2429_v39 = vrot.slane %v5440_v24, 4  ;;  %s2778_s28 = smul.f32 0.25, %s5846_s25 }
 0x1f0   : > { %2353 = vrot.lane.b32.xlu0 %v2348_v37, %s4211_s14  ;;  %v5412_v56 = vmul.f32 %v4035_v10, %v249_v34  ;;  %v4036_v37 = vld [vmem:[#allocation2] sm:$0xe0]  ;;  %2351 = vrot.lane.b32.xlu1 %v2346_v60, %s4211_s14  ;;  %v2451_v38 = vstv %s2449_s15  ;;  %v5512_v24 = vmul.f32 %v4040_v20, %v291_v43  ;;  %s1207_s15 = smul.f32 0.25, %s5694_s30  ;;  %s6321_s30 = sld [smem:[#allocation5 + $0x5a]] }
 0x1f1   : > { %v5414_v63 = vmul.f32 %v4036_v37, %v249_v34  ;;  %v2402_v42 = vrot.slane %v5409_v5, 4  ;;  %v5444_v34 = vmul.f32 %v5055_v62, %v262_v32  ;;  %s6447_s25 = sld [smem:[#allocation5 + $0x2f]] }
 0x1f2   : > { %v5417_v15 = vpop.permute.xlu0 %1762  ;;  %v5431_v60 = vpop.permute.xlu1 %1730 }
 0x1f3   : > { %8546 = vst [vmem:[#allocation146_spill] sm:$0xff] %v5417_v15  ;;  %8547 = vst [vmem:[#allocation147_spill] sm:$0xff] %v5431_v60  ;;  %v2401_v15 = vrot.slane %v5403_v49, 4  ;;  %v5449_v60 = vmul.f32 %v4035_v10, %v278_v52  ;;  %v4039_v49 = vld [vmem:[#allocation3 + $0x30] sm:$0x1f]  ;;  %v5465_v10 = vmul.f32 %v4038_v35, %v278_v52  ;;  %v2405_v55 = vsel %vm2100_vm4, %v2402_v42, %v2404_v29 }
 0x1f4   : > { %2378 = vrot.lane.b32.xlu0 %v2373_v48, %s4211_s14  ;;  %v5451_v48 = vmul.f32 %v4036_v37, %v278_v52  ;;  %2376 = vrot.lane.b32.xlu1 %v2371_v11, %s4211_s14  ;;  %v5458_v6 = vmul.f32 %v4039_v49, %v262_v32  ;;  %v5468_v37 = vmul.f32 %v5055_v62, %v278_v52  ;;  %v2428_v35 = vrot.slane %v5437_v28, 4 }
 0x1f5   : > { %v5471_v11 = vmul.f32 %v4985_v18, %v278_v52  ;;  %v5487_v52 = vmul.f32 %v5006_v4, %v291_v43  ;;  %v5489_v18 = vmul.f32 %v4033_v41, %v291_v43  ;;  %v5491_v32 = vmul.f32 %v4034_v14, %v291_v43 }
 0x1f6   : > { %v5454_v5 = vpop.permute.xlu0 %1766  ;;  %v5478_v27 = vpop.permute.xlu1 %1764  ;;  %v373_v28 = vsel %vm332_vm5, %v4712_v57, %v4719_v1  ;;  %v333_v29 = vsel %vm332_vm5, %v4722_v51, %v4729_v50  ;;  %v2403_v4 = vsel %vm2100_vm4, %v2401_v15, %v2402_v42  ;;  %v2424_v41 = vmul.f32 %v2421_v31, %v5345_v26 }
 0x1f7   : > { %8548 = vst [vmem:[#allocation148_spill] sm:$0xff] %v5454_v5  ;;  %v5474_v5 = vmul.f32 %v5055_v62, %v291_v43  ;;  %8549 = vst [vmem:[#allocation149_spill] sm:$0xff] %v5478_v27  ;;  %v5493_v62 = vmul.f32 %v4039_v49, %v291_v43  ;;  %v5507_v14 = vadd.f32 %v4719_v1, %v264_v53 }
 0x1f8   : > { %2406 = vrot.lane.b32.xlu0 %v2401_v15, %s4212_s11  ;;  %2380 = vrot.lane.b32.xlu1 %v2375_v19, %s4211_s14  ;;  %v334_v19 = vsel %vm332_vm5, %v4731_v36, %v4742_v0  ;;  %v2452_v57 = vmul.f32 %v2451_v38, %v5295_v33  ;;  %v335_v51 = vsel %vm332_vm5, %v4737_v3, %v4750_v46  ;;  %v2478_v3 = vstv %s5456_s0  ;;  %s5834_s0 = sld [smem:[#allocation5 + $0x40]] }
 0x1f9   : > { %v2430_v42 = vsel %vm2100_vm4, %v2428_v35, %v2429_v39  ;;  %v2453_v1 = vmul.f32 %v2451_v38, %v5297_v58  ;;  %v2454_v31 = vmul.f32 %v2451_v38, %v5310_v30  ;;  %v5525_v36 = vadd.f32 %v373_v28, %v5405_v54 }
 0x1fa   : > { %v5496_v27 = vpop.permute.xlu0 %1770  ;;  %v5514_v49 = vpop.permute.xlu1 %1768  ;;  %v342_v20 = vadd.f32 %v333_v29, %v5414_v63  ;;  %v343_v43 = vadd.f32 %v4729_v50, %v5412_v56  ;;  %v5535_v53 = vadd.f32 %v334_v19, %v5421_v13  ;;  %v374_v63 = vsel %vm332_vm5, %v4747_v44, %v4758_v7  ;;  %v8557_v19 = vld [vmem:[#allocation67_spill] sm:$0xff] }
 0x1fb   : > { %8550 = vst [vmem:[#allocation150_spill] sm:$0xff] %v5496_v27  ;;  %8551 = vst [vmem:[#allocation151_spill] sm:$0xff] %v5514_v49  ;;  %v2431_v54 = vrot.slane %v2424_v41, 4  ;;  %v5545_v50 = vadd.f32 %v335_v51, %v5426_v45  ;;  %v5549_v56 = vadd.f32 %v4750_v46, %v5428_v25  ;;  %v375_v13 = vsel %vm332_vm5, %v4755_v17, %v4765_v59  ;;  %v5636_v41 = vld [vmem:[#allocation2] sm:$0x80] }
 0x1fc   : > { %2410 = vrot.lane.b32.xlu0 %v2405_v55, %s4212_s11  ;;  %2408 = vrot.lane.b32.xlu1 %v2403_v4, %s4212_s11  ;;  %v5539_v55 = vadd.f32 %v4742_v0, %v5424_v16  ;;  %v2458_v0 = vrot.slane %v2452_v57, 4  ;;  %v2459_v16 = vrot.slane %v2453_v1, 4  ;;  %v2461_v44 = vrot.slane %v2454_v31, 4  ;;  %v8558_v57 = vld [vmem:[#allocation13_spill] sm:$0xff]  ;;  %v5789_v27 = vld [vmem:[#allocation3 + $0x8] sm:$0x80] }
 0x1fd   : > { %v5559_v28 = vmul.f32 %v2478_v3, %v5328_v61  ;;  %v5562_v45 = vmul.f32 %v2478_v3, %v5330_v40  ;;  %v5568_v46 = vadd.f32 %v374_v63, %v5444_v34  ;;  %v5572_v17 = vadd.f32 %v4758_v7, %v5447_v21 }
 0x1fe   : > { %v5531_v15 = vpop.permute.xlu0 %1807  ;;  %v5555_v38 = vpop.permute.xlu1 %1772  ;;  %v5576_v25 = vadd.f32 %v4762_v47, %v5451_v48  ;;  %v5580_v61 = vadd.f32 %v4762_v47, %v5449_v60  ;;  %v5586_v4 = vadd.f32 %v375_v13, %v5458_v6  ;;  %v5590_v34 = vadd.f32 %v4765_v59, %v5460_v12  ;;  %v8560_v13 = vld [vmem:[#allocation14_spill] sm:$0xff] }
 0x1ff   : > { %8552 = vst [vmem:[#allocation152_spill] sm:$0xff] %v5531_v15  ;;  %8553 = vst [vmem:[#allocation153_spill] sm:$0xff] %v5555_v38  ;;  %v5594_v7 = vadd.f32 %v4771_v9, %v5462_v22  ;;  %v2432_v21 = vsel %vm2100_vm4, %v2429_v39, %v2431_v54  ;;  %v5599_v47 = vadd.f32 %v4771_v9, %v5465_v10  ;;  %v1135_v59 = vstv %s1125_s6  ;;  %v8581_v38 = vld [vmem:[#allocation19_spill] sm:$0xff]  ;;  %s6004_s6 = sld [smem:[#allocation5 + $0x56]] }
 0x200   : > { %2435 = vrot.lane.b32.xlu0 %v2430_v42, %s4212_s11  ;;  %2433 = vrot.lane.b32.xlu1 %v2428_v35, %s4212_s11  ;;  %v5603_v60 = vadd.f32 %v4773_v8, %v5468_v37  ;;  %v5607_v48 = vadd.f32 %v4773_v8, %v5471_v11  ;;  %v2462_v22 = vsel %vm2100_vm4, %v2459_v16, %v2461_v44  ;;  %v2485_v9 = vrot.slane %v5559_v28, 4  ;;  %v5650_v42 = vld [vmem:[#allocation2 + $0x20] sm:$0xff]  ;;  %v5681_v44 = vld [vmem:[#allocation2 + $0x38] sm:$0x7f] }
 0x201   : > { %v2486_v6 = vrot.slane %v5562_v45, 4  ;;  %v2508_v10 = vstv %s2506_s7  ;;  %v5619_v37 = vadd.f32 %v4778_v23, %v5474_v5  ;;  %v5623_v8 = vadd.f32 %v4778_v23, %v5487_v52  ;;  %s6070_s7 = sld [smem:[#allocation5 + $0x27]] }
 0x202   : > { %v5583_v29 = vpop.permute.xlu0 %1811  ;;  %v5611_v12 = vpop.permute.xlu1 %1809  ;;  %v5627_v11 = vadd.f32 %v4780_v2, %v5489_v18  ;;  %v5631_v35 = vadd.f32 %v4780_v2, %v5491_v32  ;;  %v1136_v5 = vmul.f32 %v5636_v41, %v1135_v59  ;;  %v5640_v23 = vmul.f32 %v8557_v19, %v1135_v59  ;;  %v5647_v2 = vld [vmem:[#allocation2 + $0x8] sm:$0x80] }
 0x203   : > { %8554 = vst [vmem:[#allocation154_spill] sm:$0xff] %v5583_v29  ;;  %8555 = vst [vmem:[#allocation155_spill] sm:$0xff] %v5611_v12  ;;  %v2460_v52 = vsel %vm2100_vm4, %v2458_v0, %v2459_v16  ;;  %v2481_v18 = vmul.f32 %v2478_v3, %v5345_v26  ;;  %v5645_v51 = vadd.f32 %v8558_v57, %v342_v20  ;;  %v5676_v16 = vld [vmem:[#allocation2 + $0x30] sm:$0x7f]  ;;  %v2573_v49 = vstv %s2563_s16 }
 0x204   : > { %2463 = vrot.lane.b32.xlu0 %v2458_v0, %s4212_s11  ;;  %2437 = vrot.lane.b32.xlu1 %v2432_v21, %s4212_s11  ;;  %v1137_v32 = vmul.f32 %v5647_v2, %v1135_v59  ;;  %v1139_v1 = vmul.f32 %v5650_v42, %v1135_v59  ;;  %v5657_v63 = vmul.f32 %v2508_v10, %v5295_v33  ;;  %v1150_v21 = vrot.slane %v5640_v23, 2  ;;  %v5706_v23 = vld [vmem:[#allocation2 + $0x20] sm:$0xfc]  ;;  %v5781_v12 = vld [vmem:[#allocation2 + $0x50] sm:$0x3] }
 0x205   : > { %v5660_v26 = vadd.f32 %v8558_v57, %v343_v43  ;;  %v2487_v20 = vsel %vm2100_vm4, %v2485_v9, %v2486_v6  ;;  %v5664_v3 = vmul.f32 %v2508_v10, %v5297_v58  ;;  %v2511_v54 = vmul.f32 %v2508_v10, %v5310_v30 }
 0x206   : > { %v5634_v39 = vpop.permute.xlu0 %1815  ;;  %v5653_v31 = vpop.permute.xlu1 %1813  ;;  %v5670_v0 = vadd.f32 %v8560_v13, %v5493_v62  ;;  %v5674_v33 = vadd.f32 %v8560_v13, %v5512_v24  ;;  %v5679_v43 = vmul.f32 %v5676_v16, %v1135_v59  ;;  %v5684_v28 = vmul.f32 %v5681_v44, %v1135_v59  ;;  %v8564_v62 = vld [vmem:[#allocation15_spill] sm:$0xff] }
 0x207   : > { %8556 = vst [vmem:[#allocation156_spill] sm:$0xff] %v5634_v39  ;;  %8559 = vst [vmem:[#allocation67_spill] sm:$0xff] %v5653_v31  ;;  %v5691_v45 = vadd.f32 %v8564_v62, %v5545_v50  ;;  %v1149_v24 = vrot.slane %v1136_v5, 2  ;;  %v1171_v10 = vstv %s5609_s12  ;;  %v1152_v19 = vrot.slane %v1137_v32, 2  ;;  %s6211_s12 = sld [smem:[#allocation5 + $0x29]] }
 0x208   : > { %2467 = vrot.lane.b32.xlu0 %v2462_v22, %s4212_s11  ;;  %8561 = vst [vmem:[#allocation13_spill] sm:$0xff] %v5679_v43  ;;  %8562 = vst [vmem:[#allocation14_spill] sm:$0xff] %v5684_v28  ;;  %2465 = vrot.lane.b32.xlu1 %v2460_v52, %s4212_s11  ;;  %v2488_v22 = vrot.slane %v2481_v18, 4  ;;  %v1153_v57 = vrot.slane %v1139_v1, 2  ;;  %v2515_v59 = vrot.slane %v5657_v63, 4  ;;  %v5703_v52 = vadd.f32 %v8564_v62, %v5549_v56  ;;  %v8566_v18 = vld [vmem:[#allocation16_spill] sm:$0xff] }
 0x209   : > { %v2516_v50 = vrot.slane %v5664_v3, 4  ;;  %v2518_v5 = vrot.slane %v2511_v54, 4  ;;  %v5710_v32 = vadd.f32 %v8566_v18, %v5535_v53  ;;  %v5714_v1 = vadd.f32 %v8566_v18, %v5539_v55  ;;  %v5724_v54 = vld [vmem:[#allocation3] sm:$0xff]  ;;  %v5727_v62 = vld [vmem:[#allocation3 + $0x30] sm:$0x7f] }
 0x20a   : > { %v5687_v30 = vpop.permute.xlu0 %1849  ;;  %v5697_v13 = vpop.permute.xlu1 %1817  ;;  %v5722_v3 = vsel %vm1148_vm2, %v1149_v24, %v1150_v21  ;;  %v1174_v53 = vmul.f32 %v5724_v54, %v1171_v10  ;;  %v5730_v55 = vmul.f32 %v5727_v62, %v1171_v10  ;;  %v2489_v18 = vsel %vm2100_vm4, %v2486_v6, %v2488_v22  ;;  %v5733_v63 = vld [vmem:[#allocation2 + $0x18] sm:$0xfc]  ;;  %v8573_v6 = vld [vmem:[#allocation18_spill] sm:$0xff] }
 0x20b   : > { %8563 = vst [vmem:[#allocation157_spill] sm:$0xff] %v5687_v30  ;;  %8565 = vst [vmem:[#allocation15_spill] sm:$0xff] %v5697_v13  ;;  %v2575_v39 = vmul.f32 %v2573_v49, %v5706_v23  ;;  %v5752_v22 = vadd.f32 %v8573_v6, %v5525_v36  ;;  %v8576_v29 = vrot.slane %v5684_v28, 2  ;;  %v2574_v15 = vmul.f32 %v2573_v49, %v5733_v63 }
 0x20c   : > { %2492 = vrot.lane.b32.xlu0 %v2487_v20, %s4212_s11  ;;  %2490 = vrot.lane.b32.xlu1 %v2485_v9, %s4212_s11  ;;  %8568 = vst [vmem:[#allocation158_spill] sm:$0xff] %v5722_v3  ;;  %8569 = vst [vmem:[#allocation159_spill] sm:$0xff] %v5730_v55  ;;  %v8570_v9 = vld [vmem:[#allocation17_spill] sm:$0xff] }
 0x20d   : > { %v5737_v20 = vadd.f32 %v8570_v9, %v5568_v46  ;;  %v5741_v24 = vadd.f32 %v8570_v9, %v5572_v17  ;;  %v5754_v46 = vld [vmem:[#allocation3] sm:$0x80]  ;;  %v2519_v17 = vsel %vm2100_vm4, %v2516_v50, %v2518_v5  ;;  %v5765_v9 = vadd.f32 %v8573_v6, %v5507_v14  ;;  %s3052_s16 = smul.f32 0.25, %s6211_s12 }
 0x20e   : > { %v5719_v56 = vpop.permute.xlu0 %1853  ;;  %v5746_v30 = vpop.permute.xlu1 %1851  ;;  %v1172_v13 = vmul.f32 %v5754_v46, %v1171_v10  ;;  %v5775_v31 = vsel %vm1148_vm2, %v1153_v57, %v8576_v29  ;;  %v1185_v14 = vrot.slane %v1174_v53, 2  ;;  %v1173_v29 = vmul.f32 %v5789_v27, %v1171_v10 }
 0x20f   : > { %8567 = vst [vmem:[#allocation16_spill] sm:$0xff] %v5719_v56  ;;  %v5744_v56 = vsel %vm1148_vm2, %v1152_v19, %v1153_v57  ;;  %8572 = vst [vmem:[#allocation160_spill] sm:$0xff] %v5746_v30  ;;  %v5759_v19 = vmul.f32 %v2573_v49, %v5297_v58  ;;  %v8574_v30 = vrot.slane %v5679_v43, 2  ;;  %v5792_v57 = vld [vmem:[#allocation3 + $0x20] sm:$0xff]  ;;  %v2579_v43 = vmul.f32 %v2573_v49, %v5781_v12 }
 0x210   : > { %8571 = vst [vmem:[#allocation17_spill] sm:$0xff] %v5744_v56  ;;  %2520 = vrot.lane.b32.xlu0 %v2515_v59, %s4213_s9  ;;  %8577 = vst [vmem:[#allocation161_spill] sm:$0xff] %v5775_v31  ;;  %2494 = vrot.lane.b32.xlu1 %v2489_v18, %s4212_s11  ;;  %v1175_v18 = vmul.f32 %v5792_v57, %v1171_v10  ;;  %v5807_v31 = vadd.f32 %v8581_v38, %v5576_v25 }
 0x211   : > { %v5770_v36 = vsel %vm1148_vm2, %v1150_v21, %v8574_v30  ;;  %v2517_v30 = vsel %vm2100_vm4, %v2515_v59, %v2516_v50  ;;  %v5787_v21 = vmul.f32 %v5724_v54, %v2573_v49  ;;  %v2588_v59 = vrot.slane %v2575_v39, 5  ;;  %v5803_v50 = vld [vmem:[#allocation2 + $0x48] sm:$0x3] }
 0x212   : > { %8575 = vst [vmem:[#allocation18_spill] sm:$0xff] %v5770_v36  ;;  %v5778_v5 = vpop.permute.xlu0 %1857  ;;  %v5800_v6 = vpop.permute.xlu1 %1855  ;;  %v1184_v36 = vrot.slane %v1172_v13, 2  ;;  %v2591_v28 = vrot.slane %v5759_v19, 5  ;;  %v1209_v13 = vstv %s1207_s15  ;;  %v1188_v3 = vrot.slane %v1175_v18, 2 }
 0x213   : > { %8578 = vst [vmem:[#allocation162_spill] sm:$0xff] %v5778_v5  ;;  %v5795_v5 = vld [vmem:[#allocation3 + $0x38] sm:$0x7f]  ;;  %8580 = vst [vmem:[#allocation164_spill] sm:$0xff] %v5800_v6  ;;  %v2589_v19 = vrot.slane %v5787_v21, 5 }
 0x214   : > { %v5798_v53 = vmul.f32 %v5795_v5, %v1171_v10  ;;  %2524 = vrot.lane.b32.xlu0 %v2519_v17, %s4213_s9  ;;  %v5813_v10 = vadd.f32 %v8581_v38, %v5580_v61  ;;  %v8582_v6 = vld [vmem:[#allocation20_spill] sm:$0xff]  ;;  %2522 = vrot.lane.b32.xlu1 %v2517_v30, %s4213_s9  ;;  %v2587_v17 = vrot.slane %v2574_v15, 5  ;;  %v2578_v38 = vmul.f32 %v2573_v49, %v5803_v50  ;;  %v5843_v21 = vld [vmem:[#allocation3 + $0x20] sm:$0xfc] }
 0x215   : > { %v5817_v56 = vadd.f32 %v8582_v6, %v5586_v4  ;;  %v5824_v25 = vadd.f32 %v8582_v6, %v5590_v34  ;;  %v8584_v61 = vrot.slane %v5730_v55, 2  ;;  %v1187_v30 = vrot.slane %v1173_v29, 2  ;;  %v8588_v29 = vld [vmem:[#allocation21_spill] sm:$0xff] }
 0x216   : > { %8579 = vst [vmem:[#allocation163_spill] sm:$0xff] %v5798_v53  ;;  %v5820_v39 = vpop.permute.xlu0 %1887  ;;  %v5840_v34 = vsel %vm1148_vm2, %v1184_v36, %v1185_v14  ;;  %v2592_v49 = vsel %vm2586_vm6, %v2588_v59, %v2591_v28  ;;  %v2595_v6 = vrot.slane %v2579_v43, 5  ;;  %v5850_v18 = vadd.f32 %v8588_v29, %v5594_v7 }
 0x217   : > { %8583 = vst [vmem:[#allocation19_spill] sm:$0xff] %v5820_v39  ;;  %v5831_v4 = vsel %vm1148_vm2, %v1185_v14, %v8584_v61  ;;  %v5836_v39 = vpop.permute.xlu1 %1859  ;;  %8587 = vst [vmem:[#allocation166_spill] sm:$0xff] %v5840_v34  ;;  %v2624_v61 = vstv %s5761_s13  ;;  %v5854_v15 = vadd.f32 %v8588_v29, %v5599_v47  ;;  %v5858_v36 = vmul.f32 %v5724_v54, %v1209_v13  ;;  %v8590_v14 = vld [vmem:[#allocation22_spill] sm:$0xff]  ;;  %v5869_v47 = vld [vmem:[#allocation3 + $0x18] sm:$0xfc]  ;;  %s6331_s13 = sld [smem:[#allocation5 + $0x2d]] }
 0x218   : > { %8585 = vst [vmem:[#allocation20_spill] sm:$0xff] %v5831_v4  ;;  %8586 = vst [vmem:[#allocation165_spill] sm:$0xff] %v5836_v39  ;;  %2599 = vrot.lane.b32.xlu0 %v2588_v59, %s4214_s17  ;;  %v1210_v39 = vmul.f32 %v5636_v41, %v1209_v13  ;;  %2597 = vrot.lane.b32.xlu1 %v2587_v17, %s4214_s17  ;;  %v5865_v59 = vadd.f32 %v8590_v14, %v5603_v60  ;;  %v2593_v34 = vrot.slane %v2578_v38, 5 }
 0x219   : > { %v1211_v7 = vmul.f32 %v5647_v2, %v1209_v13  ;;  %v2590_v55 = vsel %vm2586_vm6, %v2587_v17, %v2589_v19  ;;  %v5873_v41 = vadd.f32 %v8590_v14, %v5607_v48  ;;  %v5876_v29 = vsel %vm1148_vm2, %v1187_v30, %v1188_v3  ;;  %v8594_v17 = vld [vmem:[#allocation23_spill] sm:$0xff] }
 0x21a   : > { %v5861_v43 = vpop.permute.xlu0 %1891  ;;  %8591 = vst [vmem:[#allocation22_spill] sm:$0xff] %v5876_v29  ;;  %v2626_v2 = vmul.f32 %v2624_v61, %v5843_v21  ;;  %v5889_v38 = vadd.f32 %v8594_v17, %v5619_v37  ;;  %v5892_v48 = vmul.f32 %v5650_v42, %v1209_v13  ;;  %v2596_v30 = vsel %vm2586_vm6, %v2591_v28, %v2595_v6  ;;  %v5906_v42 = vld [vmem:[#allocation3 + $0x50] sm:$0x3] }
 0x21b   : > { %8589 = vst [vmem:[#allocation21_spill] sm:$0xff] %v5861_v43  ;;  %v8592_v43 = vrot.slane %v5798_v53, 2  ;;  %v5883_v60 = vpop.permute.xlu1 %1889  ;;  %v5896_v14 = vmul.f32 %v2624_v61, %v5330_v40  ;;  %v2625_v37 = vmul.f32 %v2624_v61, %v5869_v47  ;;  %v5910_v28 = vadd.f32 %v8594_v17, %v5623_v8  ;;  %v5927_v17 = vld [vmem:[#allocation3 + $0x48] sm:$0x3] }
 0x21c   : > { %8593 = vst [vmem:[#allocation167_spill] sm:$0xff] %v5883_v60  ;;  %2603 = vrot.lane.b32.xlu0 %v2592_v49, %s4214_s17  ;;  %v5900_v49 = vmul.f32 %v5676_v16, %v1209_v13  ;;  %2601 = vrot.lane.b32.xlu1 %v2590_v55, %s4214_s17  ;;  %v1225_v6 = vrot.slane %v1211_v7, 2  ;;  %v8597_v16 = vld [vmem:[#allocation24_spill] sm:$0xff]  ;;  %v1244_v53 = vstv %s5834_s0  ;;  %v2638_v8 = vrot.slane %v2626_v2, 5  ;;  %s6434_s0 = sld [smem:[#allocation5 + $0x5e]] }
 0x21d   : > { %v5881_v4 = vsel %vm1148_vm2, %v1188_v3, %v8592_v43  ;;  %v1222_v3 = vrot.slane %v1210_v39, 2  ;;  %v1223_v43 = vrot.slane %v5858_v36, 2  ;;  %v2594_v39 = vsel %vm2586_vm6, %v2589_v19, %v2593_v34  ;;  %s3367_s15 = smul.f32 0.25, %s6331_s13  ;;  %s6763_s13 = sld [smem:[#allocation5 + $0x1d]] }
 0x21e   : > { %8595 = vst [vmem:[#allocation23_spill] sm:$0xff] %v5900_v49  ;;  %v5903_v60 = vpop.permute.xlu0 %1912  ;;  %v5914_v36 = vmul.f32 %v5724_v54, %v2624_v61  ;;  %v5918_v55 = vadd.f32 %v8597_v16, %v5627_v11  ;;  %v5931_v19 = vadd.f32 %v8597_v16, %v5631_v35  ;;  %v1226_v34 = vrot.slane %v5892_v48, 2 }
 0x21f   : > { %8596 = vst [vmem:[#allocation168_spill] sm:$0xff] %v5903_v60  ;;  %v5921_v60 = vmul.f32 %v5681_v44, %v1209_v13  ;;  %v5924_v29 = vpop.permute.xlu1 %1910  ;;  %v2641_v11 = vrot.slane %v5896_v14, 5  ;;  %v2630_v7 = vmul.f32 %v2624_v61, %v5906_v42  ;;  %v8599_v44 = vld [vmem:[#allocation25_spill] sm:$0xff]  ;;  %v2637_v16 = vrot.slane %v2625_v37, 5 }
 0x220   : > { %8598 = vst [vmem:[#allocation24_spill] sm:$0xff] %v5924_v29  ;;  %2607 = vrot.lane.b32.xlu0 %v2596_v30, %s4214_s17  ;;  %v5939_v13 = vadd.f32 %v8599_v44, %v5645_v51  ;;  %v5942_v30 = vsel %vm1148_vm2, %v1222_v3, %v1223_v43  ;;  %2605 = vrot.lane.b32.xlu1 %v2594_v39, %s4214_s17  ;;  %v2639_v29 = vrot.slane %v5914_v36, 5  ;;  %v8604_v3 = vld [vmem:[#allocation26_spill] sm:$0xff] }
 0x221   : > { %8600 = vst [vmem:[#allocation25_spill] sm:$0xff] %v5942_v30  ;;  %v5950_v48 = vadd.f32 %v8599_v44, %v5660_v26  ;;  %v1247_v14 = vmul.f32 %v5724_v54, %v1244_v53  ;;  %v2629_v51 = vmul.f32 %v2624_v61, %v5927_v17  ;;  %v1248_v2 = vmul.f32 %v5792_v57, %v1244_v53 }
 0x222   : > { %v5946_v35 = vpop.permute.xlu0 %1936  ;;  %v5958_v39 = vmul.f32 %v5727_v62, %v1244_v53  ;;  %v5961_v37 = vmul.f32 %v5795_v5, %v1244_v53  ;;  %v1245_v26 = vmul.f32 %v5754_v46, %v1244_v53  ;;  %v2642_v36 = vsel %vm2586_vm6, %v2638_v8, %v2641_v11 }
 0x223   : > { %8601 = vst [vmem:[#allocation169_spill] sm:$0xff] %v5946_v35  ;;  %v5963_v35 = vpop.permute.xlu1 %1914  ;;  %v2645_v61 = vrot.slane %v2630_v7, 5  ;;  %v2780_v44 = vstv %s2778_s28  ;;  %v5970_v30 = vadd.f32 %v8604_v3, %v5670_v0  ;;  %v5973_v62 = vsel %vm1148_vm2, %v1225_v6, %v1226_v34  ;;  %s3481_s28 = smul.f32 0.25, %s6447_s25  ;;  %s6944_s25 = sld [smem:[#allocation5 + $0x4e]] }
 0x224   : > { %8602 = vst [vmem:[#allocation170_spill] sm:$0xff] %v5961_v37  ;;  %8603 = vst [vmem:[#allocation171_spill] sm:$0xff] %v5963_v35  ;;  %2649 = vrot.lane.b32.xlu0 %v2638_v8, %s4214_s17  ;;  %v8606_v5 = vrot.slane %v5900_v49, 2  ;;  %v1246_v35 = vmul.f32 %v5789_v27, %v1244_v53  ;;  %2647 = vrot.lane.b32.xlu1 %v2637_v16, %s4214_s17  ;;  %v5986_v8 = vadd.f32 %v8604_v3, %v5674_v33 }
 0x225   : > { %8605 = vst [vmem:[#allocation26_spill] sm:$0xff] %v5973_v62  ;;  %v1258_v0 = vrot.slane %v1247_v14, 2  ;;  %v2640_v7 = vsel %vm2586_vm6, %v2637_v16, %v2639_v29  ;;  %v2643_v6 = vrot.slane %v2629_v51, 5  ;;  %v1261_v62 = vrot.slane %v1248_v2, 2  ;;  %v8610_v51 = vld [vmem:[#allocation27_spill] sm:$0xff] }
 0x226   : > { %v5978_v57 = vsel %vm1148_vm2, %v1223_v43, %v8606_v5  ;;  %v5982_v46 = vpop.permute.xlu0 %1940  ;;  %v8332_v49 = vrot.slane %v5958_v39, 2  ;;  %v2782_v27 = vmul.f32 %v2780_v44, %v5706_v23  ;;  %v8609_v53 = vrot.slane %v5921_v60, 2 }
 0x227   : > { %8607 = vst [vmem:[#allocation172_spill] sm:$0xff] %v5982_v46  ;;  %v5991_v5 = vpop.permute.xlu1 %1938  ;;  %v1257_v14 = vrot.slane %v1245_v26, 2  ;;  %v2646_v16 = vsel %vm2586_vm6, %v2641_v11, %v2645_v61  ;;  %v6002_v2 = vmul.f32 %v2780_v44, %v5297_v58  ;;  %v6008_v3 = vadd.f32 %v8610_v51, %v5691_v45  ;;  %v8612_v58 = vld [vmem:[#allocation28_spill] sm:$0xff] }
 0x228   : > { %8608 = vst [vmem:[#allocation173_spill] sm:$0xff] %v5991_v5  ;;  %2653 = vrot.lane.b32.xlu0 %v2642_v36, %s4214_s17  ;;  %v5998_v33 = vsel %vm1148_vm2, %v1226_v34, %v8609_v53  ;;  %v6012_v36 = vadd.f32 %v8610_v51, %v5703_v52  ;;  %v1260_v43 = vrot.slane %v1246_v35, 2  ;;  %2651 = vrot.lane.b32.xlu1 %v2640_v7, %s4214_s17  ;;  %v8613_v35 = vld [vmem:[#allocation29_spill] sm:$0xff] }
 0x229   : > { %v2781_v11 = vmul.f32 %v2780_v44, %v5733_v63  ;;  %v6020_v26 = vadd.f32 %v8612_v58, %v5710_v32  ;;  %v6024_v45 = vadd.f32 %v8612_v58, %v5714_v1  ;;  %v2644_v61 = vsel %vm2586_vm6, %v2639_v29, %v2643_v6  ;;  %v8637_v5 = vld [vmem:[#allocation45_spill] sm:$0xff] }
 0x22a   : > { %v6015_v34 = vpop.permute.xlu0 %1961  ;;  %v6028_v52 = vmul.f32 %v5724_v54, %v2780_v44  ;;  %v6032_v7 = vadd.f32 %v8613_v35, %v5737_v20  ;;  %v6037_v63 = vsel %vm1148_vm2, %v1258_v0, %v8332_v49  ;;  %v8614_v32 = vrot.slane %v5961_v37, 2  ;;  %v8616_v49 = vld [vmem:[#allocation30_spill] sm:$0xff] }
 0x22b   : > { %8611 = vst [vmem:[#allocation27_spill] sm:$0xff] %v6015_v34  ;;  %v6044_v1 = vpop.permute.xlu1 %1959  ;;  %v2794_v29 = vrot.slane %v2782_v27, 5  ;;  %v6049_v6 = vadd.f32 %v8613_v35, %v5741_v24  ;;  %v6052_v20 = vsel %vm1148_vm2, %v1257_v14, %v1258_v0  ;;  %v2797_v51 = vrot.slane %v6002_v2, 5  ;;  %v8618_v14 = vld [vmem:[#allocation34_spill] sm:$0xff]  ;;  %v8620_v2 = vld [vmem:[#allocation36_spill] sm:$0xff]  ;;  %v8621_v35 = vld [vmem:[#allocation33_spill] sm:$0xff] }
 0x22c   : > { %v6042_v53 = vsel %vm1148_vm2, %v1261_v62, %v8614_v32  ;;  %8615 = vst [vmem:[#allocation28_spill] sm:$0xff] %v6044_v1  ;;  %2657 = vrot.lane.b32.xlu0 %v2646_v16, %s4214_s17  ;;  %v2786_v58 = vmul.f32 %v2780_v44, %v5781_v12  ;;  %v6058_v32 = vadd.f32 %v8616_v49, %v5752_v22  ;;  %v2793_v0 = vrot.slane %v2781_v11, 5  ;;  %v8619_v16 = vld [vmem:[#allocation31_spill] sm:$0xff]  ;;  %v8622_v11 = vld [vmem:[#allocation32_spill] sm:$0xff] }
 0x22d   : > { %v6062_v1 = vadd.f32 %v8616_v49, %v5765_v9  ;;  %v6065_v27 = vsel %vm1148_vm2, %v1260_v43, %v1261_v62  ;;  %2655 = vrot.lane.b32.xlu1 %v2644_v61, %s4214_s17  ;;  %v624_v22 = vsel %vm623_vm7, %v8619_v16, %v8618_v14  ;;  %v625_v9 = vsel %vm623_vm7, %v8621_v35, %v8620_v2  ;;  %s2938_s17 = smul.f32 0.25, %s6070_s7  ;;  %s6571_s7 = sld [smem:[#allocation5 + $0x1c]] }
 0x22e   : > { %v6068_v24 = vpop.permute.xlu0 %1985  ;;  %v2795_v49 = vrot.slane %v6028_v52, 5  ;;  %v2785_v62 = vmul.f32 %v2780_v44, %v5803_v50  ;;  %v6082_v43 = vadd.f32 %v8619_v16, %v5807_v31  ;;  %v6086_v61 = vadd.f32 %v8622_v11, %v5817_v56  ;;  %v8624_v50 = vld [vmem:[#allocation38_spill] sm:$0xff]  ;;  %v8625_v44 = vld [vmem:[#allocation35_spill] sm:$0xff] }
 0x22f   : > { %8617 = vst [vmem:[#allocation29_spill] sm:$0xff] %v6068_v24  ;;  %v6090_v24 = vadd.f32 %v8622_v11, %v5824_v25  ;;  %v6094_v14 = vadd.f32 %v8621_v35, %v5865_v59  ;;  %v6096_v2 = vpop.permute.xlu1 %1963  ;;  %v626_v31 = vsel %vm623_vm7, %v8625_v44, %v8624_v50  ;;  %v2798_v52 = vsel %vm2586_vm6, %v2794_v29, %v2797_v51  ;;  %v8626_v35 = vld [vmem:[#allocation40_spill] sm:$0xff]  ;;  %v8627_v11 = vld [vmem:[#allocation37_spill] sm:$0xff] }
 0x230   : > { %8623 = vst [vmem:[#allocation30_spill] sm:$0xff] %v6096_v2  ;;  %2805 = vrot.lane.b32.xlu0 %v2794_v29, %s4215_s18  ;;  %v2801_v56 = vrot.slane %v2786_v58, 5  ;;  %v2830_v16 = vstv %s6004_s6  ;;  %v6105_v34 = vadd.f32 %v624_v22, %v5813_v10  ;;  %v6109_v25 = vadd.f32 %v8625_v44, %v5850_v18  ;;  %v8629_v10 = vld [vmem:[#allocation42_spill] sm:$0xff]  ;;  %v8630_v58 = vld [vmem:[#allocation39_spill] sm:$0xff]  ;;  %s6551_s6 = sld [smem:[#allocation5 + $0x60]] }
 0x231   : > { %v6112_v59 = vadd.f32 %v625_v9, %v5873_v41  ;;  %v674_v2 = vsel %vm623_vm7, %v8627_v11, %v8626_v35  ;;  %2803 = vrot.lane.b32.xlu1 %v2793_v0, %s4215_s18  ;;  %v6122_v29 = vadd.f32 %v8627_v11, %v5918_v55  ;;  %v675_v18 = vsel %vm623_vm7, %v8630_v58, %v8629_v10  ;;  %v8631_v35 = vld [vmem:[#allocation44_spill] sm:$0xff] }
 0x232   : > { %v6118_v50 = vpop.permute.xlu0 %1989  ;;  %v2796_v22 = vsel %vm2586_vm6, %v2793_v0, %v2795_v49  ;;  %v2799_v41 = vrot.slane %v2785_v62, 5  ;;  %v6129_v9 = vadd.f32 %v626_v31, %v5854_v15  ;;  %v6133_v44 = vadd.f32 %v8630_v58, %v5889_v38  ;;  %v8634_v15 = vld [vmem:[#allocation46_spill] sm:$0xff]  ;;  %v8635_v62 = vld [vmem:[#allocation43_spill] sm:$0xff] }
 0x233   : > { %8628 = vst [vmem:[#allocation34_spill] sm:$0xff] %v6118_v50  ;;  %v8632_v50 = vld [vmem:[#allocation41_spill] sm:$0xff]  ;;  %v6138_v11 = vpop.permute.xlu1 %1987  ;;  %v2832_v10 = vmul.f32 %v2830_v16, %v5843_v21  ;;  %v6143_v0 = vadd.f32 %v674_v2, %v5931_v19  ;;  %v728_v31 = vsel %vm727_vm8, %v8635_v62, %v8634_v15  ;;  %v2802_v38 = vsel %vm2586_vm6, %v2797_v51, %v2801_v56  ;;  %v8639_v56 = vld [vmem:[#allocation50_spill] sm:$0xff]  ;;  %s2073_s12 = smul.f32 0.25, %s6571_s7  ;;  %s7040_s7 = sld [smem:[#allocation5 + $0x57]] }
 0x234   : > { %v676_v55 = vsel %vm623_vm7, %v8632_v50, %v8631_v35  ;;  %8633 = vst [vmem:[#allocation31_spill] sm:$0xff] %v6138_v11  ;;  %2809 = vrot.lane.b32.xlu0 %v2798_v52, %s4215_s18  ;;  %v6150_v58 = vmul.f32 %v2830_v16, %v5330_v40  ;;  %v6154_v35 = vadd.f32 %v8632_v50, %v5970_v30  ;;  %v8636_v11 = vld [vmem:[#allocation48_spill] sm:$0xff]  ;;  %v8640_v30 = vld [vmem:[#allocation47_spill] sm:$0xff] }
 0x235   : > { %v6157_v52 = vadd.f32 %v675_v18, %v5910_v28  ;;  %v729_v19 = vsel %vm727_vm8, %v8637_v5, %v8636_v11  ;;  %2807 = vrot.lane.b32.xlu1 %v2796_v22, %s4215_s18  ;;  %v2831_v51 = vmul.f32 %v2830_v16, %v5869_v47  ;;  %v6168_v40 = vadd.f32 %v676_v55, %v5986_v8 }
 0x236   : > { %v6163_v2 = vpop.permute.xlu0 %2010  ;;  %v730_v50 = vsel %vm727_vm8, %v8640_v30, %v8639_v56  ;;  %v2800_v28 = vsel %vm2586_vm6, %v2795_v49, %v2799_v41  ;;  %v6175_v18 = vmul.f32 %v5724_v54, %v2830_v16  ;;  %v6178_v5 = vadd.f32 %v728_v31, %v5939_v13  ;;  %v8642_v54 = vld [vmem:[#allocation52_spill] sm:$0xff]  ;;  %v8643_v41 = vld [vmem:[#allocation49_spill] sm:$0xff]  ;;  %v8645_v31 = vld [vmem:[#allocation54_spill] sm:$0xff] }
 0x237   : > { %8638 = vst [vmem:[#allocation36_spill] sm:$0xff] %v6163_v2  ;;  %v6182_v22 = vadd.f32 %v8634_v15, %v5950_v48  ;;  %v6186_v47 = vadd.f32 %v8636_v11, %v6024_v45  ;;  %v6188_v8 = vpop.permute.xlu1 %2008  ;;  %v2844_v55 = vrot.slane %v2832_v10, 5  ;;  %v6192_v49 = vadd.f32 %v729_v19, %v6020_v26  ;;  %v8647_v19 = vld [vmem:[#allocation56_spill] sm:$0xff]  ;;  %v8648_v30 = vld [vmem:[#allocation53_spill] sm:$0xff] }
 0x238   : > { %8641 = vst [vmem:[#allocation33_spill] sm:$0xff] %v6188_v8  ;;  %2813 = vrot.lane.b32.xlu0 %v2802_v38, %s4215_s18  ;;  %v778_v13 = vsel %vm727_vm8, %v8643_v41, %v8642_v54  ;;  %v2847_v62 = vrot.slane %v6150_v58, 5  ;;  %v2836_v48 = vmul.f32 %v2830_v16, %v5906_v42  ;;  %v6202_v45 = vadd.f32 %v730_v50, %v6008_v3  ;;  %v8646_v38 = vld [vmem:[#allocation51_spill] sm:$0xff]  ;;  %v8649_v41 = vld [vmem:[#allocation58_spill] sm:$0xff] }
 0x239   : > { %v6206_v11 = vadd.f32 %v8639_v56, %v6012_v36  ;;  %2811 = vrot.lane.b32.xlu1 %v2800_v28, %s4215_s18  ;;  %v2843_v10 = vrot.slane %v2831_v51, 5  ;;  %v2940_v15 = vstv %s2938_s17  ;;  %v779_v58 = vsel %vm727_vm8, %v8646_v38, %v8645_v31  ;;  %v8650_v38 = vld [vmem:[#allocation55_spill] sm:$0xff]  ;;  %v8659_v8 = vld [vmem:[#allocation66_spill] sm:$0xff]  ;;  %s6605_s17 = sld [smem:[#allocation5 + $0x53]] }
 0x23a   : > { %v6209_v26 = vpop.permute.xlu0 %2034  ;;  %v780_v3 = vsel %vm727_vm8, %v8648_v30, %v8647_v19  ;;  %v2845_v50 = vrot.slane %v6175_v18, 5  ;;  %v2835_v36 = vmul.f32 %v2830_v16, %v5927_v17  ;;  %v6222_v56 = vadd.f32 %v778_v13, %v6058_v32 }
 0x23b   : > { %8644 = vst [vmem:[#allocation32_spill] sm:$0xff] %v6209_v26  ;;  %v6226_v51 = vadd.f32 %v8642_v54, %v6062_v1  ;;  %v6230_v28 = vadd.f32 %v8645_v31, %v6049_v6  ;;  %v831_v2 = vsel %vm727_vm8, %v8650_v38, %v8649_v41  ;;  %v6235_v30 = vpop.permute.xlu1 %2012  ;;  %v2848_v17 = vsel %vm2586_vm6, %v2844_v55, %v2847_v62  ;;  %v6242_v1 = vld [vmem:[#allocation2 + $0x38] sm:$0xff]  ;;  %v8654_v38 = vld [vmem:[#allocation57_spill] sm:$0xff] }
 0x23c   : > { %8651 = vst [vmem:[#allocation38_spill] sm:$0xff] %v6235_v30  ;;  %2855 = vrot.lane.b32.xlu0 %v2844_v55, %s4215_s18  ;;  %v2851_v32 = vrot.slane %v2836_v48, 5  ;;  %v6240_v16 = vmul.f32 %v2940_v15, %v5706_v23  ;;  %v6245_v18 = vmul.f32 %v6242_v1, %v2940_v15  ;;  %v789_v6 = vadd.f32 %v779_v58, %v6032_v7  ;;  %v8653_v31 = vld [vmem:[#allocation60_spill] sm:$0xff]  ;;  %v8655_v58 = vld [vmem:[#allocation62_spill] sm:$0xff] }
 0x23d   : > { %v6249_v54 = vadd.f32 %v780_v3, %v6086_v61  ;;  %v6253_v13 = vadd.f32 %v8647_v19, %v6090_v24  ;;  %v6257_v55 = vadd.f32 %v8649_v41, %v6105_v34  ;;  %2853 = vrot.lane.b32.xlu1 %v2843_v10, %s4215_s18  ;;  %v832_v7 = vsel %vm727_vm8, %v8654_v38, %v8653_v31  ;;  %v8656_v61 = vld [vmem:[#allocation59_spill] sm:$0xff]  ;;  %v8657_v41 = vld [vmem:[#allocation64_spill] sm:$0xff] }
 0x23e   : > { %v6260_v48 = vpop.permute.xlu0 %2038  ;;  %v833_v3 = vsel %vm727_vm8, %v8656_v61, %v8655_v58  ;;  %v2846_v24 = vsel %vm2586_vm6, %v2843_v10, %v2845_v50  ;;  %v2849_v19 = vrot.slane %v2835_v36, 5  ;;  %v840_v30 = vadd.f32 %v831_v2, %v6082_v43  ;;  %v8660_v38 = vld [vmem:[#allocation63_spill] sm:$0xff] }
 0x23f   : > { %8652 = vst [vmem:[#allocation35_spill] sm:$0xff] %v6260_v48  ;;  %v6272_v34 = vadd.f32 %v8653_v31, %v6112_v59  ;;  %v8658_v48 = vld [vmem:[#allocation61_spill] sm:$0xff]  ;;  %v882_v46 = vsel %vm727_vm8, %v8660_v38, %v8659_v8  ;;  %v6280_v37 = vpop.permute.xlu1 %2036  ;;  %v2852_v10 = vsel %vm2586_vm6, %v2847_v62, %v2851_v32  ;;  %v2947_v43 = vrot.slane %v6240_v16, 5  ;;  %v8667_v38 = vld [vmem:[#allocation71_spill] sm:$0xff] }
 0x240   : > { %v881_v26 = vsel %vm727_vm8, %v8658_v48, %v8657_v41  ;;  %2859 = vrot.lane.b32.xlu0 %v2848_v17, %s4215_s18  ;;  %v2948_v2 = vrot.slane %v6245_v18, 5  ;;  %v2967_v59 = vstv %s6199_s8  ;;  %v842_v36 = vadd.f32 %v832_v7, %v6094_v14  ;;  %v8661_v32 = vld [vmem:[#allocation69_spill] sm:$0xff]  ;;  %v8663_v7 = vld [vmem:[#allocation68_spill] sm:$0xff]  ;;  %s6634_s8 = sld [smem:[#allocation5 + $0x24]] }
 0x241   : > { %v844_v31 = vadd.f32 %v833_v3, %v6109_v25  ;;  %v845_v48 = vadd.f32 %v8655_v58, %v6129_v9  ;;  %v6293_v61 = vadd.f32 %v8657_v41, %v6143_v0  ;;  %2857 = vrot.lane.b32.xlu1 %v2846_v24, %s4215_s18  ;;  %v890_v62 = vadd.f32 %v881_v26, %v6122_v29  ;;  %v8662_v16 = vld [vmem:[#allocation65_spill] sm:$0xff] }
 0x242   : > { %v6296_v17 = vpop.permute.xlu0 %2059  ;;  %v883_v14 = vsel %vm727_vm8, %v8662_v16, %v8661_v32  ;;  %v2850_v25 = vsel %vm2586_vm6, %v2845_v50, %v2849_v19  ;;  %v2943_v18 = vmul.f32 %v2940_v15, %v5781_v12  ;;  %v892_v9 = vadd.f32 %v882_v46, %v6133_v44  ;;  %v6317_v15 = vld [vmem:[#allocation3 + $0x38] sm:$0xff]  ;;  %v8669_v16 = vld [vmem:[#allocation73_spill] sm:$0xff] }
 0x243   : > { %v893_v0 = vadd.f32 %v8659_v8, %v6157_v52  ;;  %v920_v58 = vadd.f32 %v8663_v7, %v6178_v5  ;;  %v6310_v3 = vpop.permute.xlu1 %2057  ;;  %v2968_v29 = vmul.f32 %v2967_v59, %v5843_v21  ;;  %v921_v26 = vadd.f32 %v8663_v7, %v6182_v22  ;;  %v8665_v8 = vld [vmem:[#allocation70_spill] sm:$0xff] }
 0x244   : > { %8664 = vst [vmem:[#allocation40_spill] sm:$0xff] %v6310_v3  ;;  %2863 = vrot.lane.b32.xlu0 %v2852_v10, %s4215_s18  ;;  %v2949_v50 = vsel %vm2586_vm6, %v2947_v43, %v2948_v2  ;;  %v2969_v46 = vmul.f32 %v6317_v15, %v2967_v59  ;;  %v2970_v44 = vmul.f32 %v2967_v59, %v5906_v42  ;;  %v3054_v19 = vstv %s3052_s16  ;;  %v8668_v59 = vld [vmem:[#allocation72_spill] sm:$0xff]  ;;  %s6656_s16 = sld [smem:[#allocation5 + $0x4d]]  ;;  %v7091_v3 = vld [vmem:[#allocation3 + $0x50] sm:$0x3] }
 0x245   : > { %v894_v52 = vadd.f32 %v883_v14, %v6154_v35  ;;  %v895_v5 = vadd.f32 %v8661_v32, %v6168_v40  ;;  %v924_v24 = vadd.f32 %v8665_v8, %v6202_v45  ;;  %2861 = vrot.lane.b32.xlu1 %v2850_v25, %s4215_s18  ;;  %v925_v41 = vadd.f32 %v8665_v8, %v6206_v11 }
 0x246   : > { %v6329_v22 = vpop.permute.xlu0 %2257  ;;  %v922_v10 = vadd.f32 %v8667_v38, %v6192_v49  ;;  %v923_v35 = vadd.f32 %v8667_v38, %v6186_v47  ;;  %v2950_v40 = vrot.slane %v2943_v18, 5  ;;  %v949_v32 = vadd.f32 %v8668_v59, %v789_v6  ;;  %v8675_v38 = vld [vmem:[#allocation77_spill] sm:$0xff] }
 0x247   : > { %8666 = vst [vmem:[#allocation37_spill] sm:$0xff] %v6329_v22  ;;  %v950_v45 = vadd.f32 %v8668_v59, %v6230_v28  ;;  %v947_v14 = vadd.f32 %v8669_v16, %v6222_v56  ;;  %v6344_v25 = vpop.permute.xlu1 %2061  ;;  %v2974_v11 = vrot.slane %v2968_v29, 5  ;;  %v2975_v7 = vrot.slane %v2969_v46, 5  ;;  %v8671_v28 = vld [vmem:[#allocation74_spill] sm:$0xff]  ;;  %v8676_v59 = vld [vmem:[#allocation80_spill] sm:$0xff] }
 0x248   : > { %8670 = vst [vmem:[#allocation42_spill] sm:$0xff] %v6344_v25  ;;  %2954 = vrot.lane.b32.xlu0 %v2949_v50, %s4216_s27  ;;  %v2977_v8 = vrot.slane %v2970_v44, 5  ;;  %v6348_v49 = vmul.f32 %v3054_v19, %v5706_v23  ;;  %v6351_v47 = vmul.f32 %v6242_v1, %v3054_v19  ;;  %v948_v6 = vadd.f32 %v8669_v16, %v6226_v51  ;;  %v8672_v50 = vld [vmem:[#allocation75_spill] sm:$0xff]  ;;  %v8674_v51 = vld [vmem:[#allocation76_spill] sm:$0xff] }
 0x249   : > { %v977_v18 = vadd.f32 %v8671_v28, %v840_v30  ;;  %v6358_v56 = vadd.f32 %v8671_v28, %v6257_v55  ;;  %v6362_v29 = vadd.f32 %v8672_v50, %v6249_v54  ;;  %2952 = vrot.lane.b32.xlu1 %v2947_v43, %s4216_s27  ;;  %v6369_v46 = vadd.f32 %v8672_v50, %v6253_v13 }
 0x24a   : > { %v6365_v23 = vpop.permute.xlu0 %2261  ;;  %v6372_v44 = vadd.f32 %v8674_v51, %v844_v31  ;;  %v6375_v30 = vadd.f32 %v8674_v51, %v845_v48  ;;  %v2951_v55 = vsel %vm2586_vm6, %v2948_v2, %v2950_v40  ;;  %v6379_v54 = vadd.f32 %v8675_v38, %v842_v36  ;;  %v8678_v40 = vld [vmem:[#allocation78_spill] sm:$0xff] }
 0x24b   : > { %8673 = vst [vmem:[#allocation39_spill] sm:$0xff] %v6365_v23  ;;  %v6383_v43 = vadd.f32 %v8675_v38, %v6272_v34  ;;  %v1034_v16 = vadd.f32 %v8676_v59, %v920_v58  ;;  %v1035_v13 = vadd.f32 %v8676_v59, %v921_v26  ;;  %v6387_v28 = vpop.permute.xlu1 %2259  ;;  %v2978_v31 = vsel %vm2586_vm6, %v2975_v7, %v2977_v8  ;;  %v8679_v58 = vld [vmem:[#allocation79_spill] sm:$0xff]  ;;  %v8680_v26 = vld [vmem:[#allocation82_spill] sm:$0xff] }
 0x24c   : > { %8677 = vst [vmem:[#allocation44_spill] sm:$0xff] %v6387_v28  ;;  %2979 = vrot.lane.b32.xlu0 %v2974_v11, %s4216_s27  ;;  %v3061_v2 = vrot.slane %v6348_v49, 5  ;;  %v3062_v36 = vrot.slane %v6351_v47, 5  ;;  %v3081_v48 = vstv %s6321_s30  ;;  %v6395_v50 = vadd.f32 %v8678_v40, %v892_v9  ;;  %v8682_v47 = vld [vmem:[#allocation158_spill] sm:$0xff]  ;;  %s2675_s30 = smul.f32 0.25, %s6634_s8 }
 0x24d   : > { %v6398_v34 = vadd.f32 %v8678_v40, %v893_v0  ;;  %v6401_v51 = vadd.f32 %v8679_v58, %v890_v62  ;;  %v1038_v38 = vadd.f32 %v8680_v26, %v924_v24  ;;  %2956 = vrot.lane.b32.xlu1 %v2951_v55, %s4216_s27  ;;  %v6410_v8 = vadd.f32 %v8679_v58, %v6293_v61  ;;  %v8683_v40 = vld [vmem:[#allocation81_spill] sm:$0xff] }
 0x24e   : > { %v6405_v59 = vpop.permute.xlu0 %2265  ;;  %v1039_v9 = vadd.f32 %v8680_v26, %v925_v41  ;;  %v2976_v49 = vsel %vm2586_vm6, %v2974_v11, %v2975_v7  ;;  %v3057_v0 = vmul.f32 %v3054_v19, %v5781_v12  ;;  %v6416_v62 = vadd.f32 %v8682_v47, %v1034_v16  ;;  %v8685_v41 = vld [vmem:[#allocation17_spill] sm:$0xff]  ;;  %v8688_v16 = vld [vmem:[#allocation83_spill] sm:$0xff] }
 0x24f   : > { %8681 = vst [vmem:[#allocation41_spill] sm:$0xff] %v6405_v59  ;;  %v6419_v24 = vadd.f32 %v8683_v40, %v894_v52  ;;  %v6422_v55 = vadd.f32 %v8683_v40, %v895_v5  ;;  %v6424_v23 = vpop.permute.xlu1 %2263  ;;  %v3082_v61 = vmul.f32 %v3081_v48, %v5843_v21  ;;  %v6429_v58 = vadd.f32 %v8685_v41, %v1035_v13  ;;  %v8686_v52 = vld [vmem:[#allocation13_spill] sm:$0xff]  ;;  %v8691_v41 = vld [vmem:[#allocation14_spill] sm:$0xff] }
 0x250   : > { %8684 = vst [vmem:[#allocation46_spill] sm:$0xff] %v6424_v23  ;;  %2983 = vrot.lane.b32.xlu0 %v2978_v31, %s4216_s27  ;;  %v3063_v12 = vsel %vm2586_vm6, %v3061_v2, %v3062_v36  ;;  %v3083_v19 = vmul.f32 %v6317_v15, %v3081_v48  ;;  %v3084_v11 = vmul.f32 %v3081_v48, %v5906_v42  ;;  %v8687_v5 = vrot.slane %v8686_v52, 2  ;;  %v6445_v13 = vld [vmem:[#allocation2 + $0x20] sm:$0xf8]  ;;  %v8690_v42 = vld [vmem:[#allocation84_spill] sm:$0xff] }
 0x251   : > { %v1036_v26 = vadd.f32 %v8688_v16, %v922_v10  ;;  %v1037_v31 = vadd.f32 %v8688_v16, %v923_v35  ;;  %2981 = vrot.lane.b32.xlu1 %v2976_v49, %s4216_s27  ;;  %v3369_v47 = vstv %s3367_s15  ;;  %v1063_v48 = vadd.f32 %v8690_v42, %v949_v32  ;;  %v8694_v16 = vld [vmem:[#allocation86_spill] sm:$0xff]  ;;  %s6850_s15 = sld [smem:[#allocation5 + $0x55]] }
 0x252   : > { %v6438_v7 = vadd.f32 %v8687_v5, %v1038_v38  ;;  %v6443_v21 = vpop.permute.xlu0 %2307  ;;  %v1064_v40 = vadd.f32 %v8690_v42, %v950_v45  ;;  %v8692_v38 = vrot.slane %v8691_v41, 2  ;;  %v3064_v10 = vrot.slane %v3057_v0, 5  ;;  %v8693_v5 = vld [vmem:[#allocation85_spill] sm:$0xff]  ;;  %v8696_v0 = vld [vmem:[#allocation18_spill] sm:$0xff] }
 0x253   : > { %8689 = vst [vmem:[#allocation43_spill] sm:$0xff] %v6443_v21  ;;  %v1061_v35 = vadd.f32 %v8693_v5, %v947_v14  ;;  %v1062_v49 = vadd.f32 %v8693_v5, %v948_v6  ;;  %v1091_v23 = vadd.f32 %v8694_v16, %v977_v18  ;;  %v6458_v59 = vpop.permute.xlu1 %2267  ;;  %v3088_v22 = vrot.slane %v3082_v61, 5  ;;  %v8697_v6 = vld [vmem:[#allocation87_spill] sm:$0xff]  ;;  %v8698_v41 = vld [vmem:[#allocation161_spill] sm:$0xff] }
 0x254   : > { %v6453_v52 = vadd.f32 %v8692_v38, %v1039_v9  ;;  %8695 = vst [vmem:[#allocation48_spill] sm:$0xff] %v6458_v59  ;;  %3068 = vrot.lane.b32.xlu0 %v3063_v12, %s4217_s29  ;;  %v3089_v28 = vrot.slane %v3083_v19, 5  ;;  %v3091_v32 = vrot.slane %v3084_v11, 5  ;;  %v6462_v45 = vmul.f32 %v3369_v47, %v6445_v13  ;;  %v8701_v19 = vld [vmem:[#allocation20_spill] sm:$0xff] }
 0x255   : > { %v6465_v9 = vmul.f32 %v6242_v1, %v3369_v47  ;;  %v6468_v42 = vadd.f32 %v8696_v0, %v1036_v26  ;;  %v1092_v14 = vadd.f32 %v8694_v16, %v6358_v56  ;;  %v1065_v18 = vadd.f32 %v8697_v6, %v6362_v29  ;;  %3066 = vrot.lane.b32.xlu1 %v3061_v2, %s4217_s29  ;;  %v8702_v29 = vld [vmem:[#allocation166_spill] sm:$0xff] }
 0x256   : > { %v6475_v12 = vadd.f32 %v8698_v41, %v1037_v31  ;;  %v6478_v61 = vpop.permute.xlu0 %2311  ;;  %v6481_v11 = vadd.f32 %v8701_v19, %v1063_v48  ;;  %v1066_v26 = vadd.f32 %v8697_v6, %v6369_v46  ;;  %v6486_v38 = vadd.f32 %v5881_v4, %v1064_v40  ;;  %v8703_v31 = vld [vmem:[#allocation88_spill] sm:$0xff]  ;;  %v8704_v16 = vld [vmem:[#allocation22_spill] sm:$0xff]  ;;  %v8705_v41 = vld [vmem:[#allocation25_spill] sm:$0xff] }
 0x257   : > { %8700 = vst [vmem:[#allocation50_spill] sm:$0xff] %v6478_v61  ;;  %v3065_v56 = vsel %vm2586_vm6, %v3062_v36, %v3064_v10  ;;  %v6490_v5 = vadd.f32 %v8702_v29, %v1061_v35  ;;  %v1095_v2 = vadd.f32 %v8703_v31, %v6372_v44  ;;  %v6495_v0 = vadd.f32 %v8704_v16, %v1062_v49  ;;  %v6500_v19 = vpop.permute.xlu1 %2309  ;;  %v6503_v4 = vld [vmem:[#allocation2 + $0x50] sm:$0x7]  ;;  %v6508_v44 = vld [vmem:[#allocation3 + $0x20] sm:$0xf8]  ;;  %v8709_v29 = vld [vmem:[#allocation26_spill] sm:$0xff] }
 0x258   : > { %8699 = vst [vmem:[#allocation45_spill] sm:$0xff] %v6475_v12  ;;  %v6498_v48 = vadd.f32 %v8705_v41, %v1091_v23  ;;  %8706 = vst [vmem:[#allocation47_spill] sm:$0xff] %v6500_v19  ;;  %3093 = vrot.lane.b32.xlu0 %v3088_v22, %s4217_s29  ;;  %v3092_v46 = vsel %vm2586_vm6, %v3089_v28, %v3091_v32  ;;  %v3376_v36 = vrot.slane %v6462_v45, 6  ;;  %v3377_v40 = vrot.slane %v6465_v9, 6  ;;  %v8707_v35 = vld [vmem:[#allocation159_spill] sm:$0xff]  ;;  %v8711_v9 = vld [vmem:[#allocation89_spill] sm:$0xff] }
 0x259   : > { %v3396_v10 = vstv %s6434_s0  ;;  %v8708_v49 = vrot.slane %v8707_v35, 2  ;;  %v1096_v6 = vadd.f32 %v8703_v31, %v6375_v30  ;;  %v6518_v16 = vadd.f32 %v8709_v29, %v1092_v14  ;;  %3070 = vrot.lane.b32.xlu1 %v3065_v56, %s4217_s29  ;;  %v6523_v45 = vld [vmem:[#allocation3 + $0x50] sm:$0x7]  ;;  %v8714_v31 = vld [vmem:[#allocation90_spill] sm:$0xff]  ;;  %s2159_s0 = smul.f32 0.25, %s6763_s13  ;;  %s7272_s13 = sld [smem:[#allocation5 + $0x5d]] }
 0x25a   : > { %v6521_v32 = vpop.permute.xlu0 %2315  ;;  %v1093_v41 = vadd.f32 %v8711_v9, %v6379_v54  ;;  %v8712_v35 = vld [vmem:[#allocation163_spill] sm:$0xff]  ;;  %v3090_v30 = vsel %vm2586_vm6, %v3088_v22, %v3089_v28  ;;  %v3372_v14 = vmul.f32 %v3369_v47, %v6503_v4  ;;  %v1094_v56 = vadd.f32 %v8711_v9, %v6383_v43 }
 0x25b   : > { %v6513_v23 = vadd.f32 %v8708_v49, %v1065_v18  ;;  %8710 = vst [vmem:[#allocation52_spill] sm:$0xff] %v6521_v32  ;;  %v8713_v18 = vrot.slane %v8712_v35, 2  ;;  %v1120_v29 = vadd.f32 %v8714_v31, %v6395_v50  ;;  %v8715_v61 = vld [vmem:[#allocation23_spill] sm:$0xff]  ;;  %v6542_v32 = vpop.permute.xlu1 %2313  ;;  %v3397_v54 = vmul.f32 %v3396_v10, %v6508_v44 }
 0x25c   : > { %v8716_v59 = vrot.slane %v8715_v61, 2  ;;  %8717 = vst [vmem:[#allocation49_spill] sm:$0xff] %v6542_v32  ;;  %3097 = vrot.lane.b32.xlu0 %v3092_v46, %s4217_s29  ;;  %v1121_v22 = vadd.f32 %v8714_v31, %v6398_v34  ;;  %v3378_v28 = vsel %vm3132_vm9, %v3376_v36, %v3377_v40  ;;  %v3398_v43 = vmul.f32 %v6317_v15, %v3396_v10  ;;  %v8718_v50 = vld [vmem:[#allocation91_spill] sm:$0xff]  ;;  %v8736_v32 = vld [vmem:[#allocation100_spill] sm:$0xff] }
 0x25d   : > { %v6530_v49 = vadd.f32 %v8713_v18, %v1066_v26  ;;  %v3399_v47 = vmul.f32 %v3396_v10, %v6523_v45  ;;  %v1119_v61 = vadd.f32 %v8718_v50, %v6410_v8  ;;  %v8719_v26 = vld [vmem:[#allocation93_spill] sm:$0xff]  ;;  %3095 = vrot.lane.b32.xlu1 %v3090_v30, %s4217_s29  ;;  %v3483_v46 = vstv %s3481_s28  ;;  %v8722_v18 = vld [vmem:[#allocation95_spill] sm:$0xff]  ;;  %s6950_s28 = sld [smem:[#allocation5 + $0x26]] }
 0x25e   : > { %v6540_v12 = vadd.f32 %v8716_v59, %v1095_v2  ;;  %v1118_v59 = vadd.f32 %v8718_v50, %v6401_v51  ;;  %v1122_v2 = vadd.f32 %v8719_v26, %v6419_v24  ;;  %v6560_v34 = vpop.permute.xlu0 %2349  ;;  %v1123_v9 = vadd.f32 %v8719_v26, %v6422_v55  ;;  %v8723_v24 = vld [vmem:[#allocation92_spill] sm:$0xff] }
 0x25f   : > { %8720 = vst [vmem:[#allocation54_spill] sm:$0xff] %v6560_v34  ;;  %v8721_v10 = vrot.slane %v5921_v60, 2  ;;  %v6569_v51 = vadd.f32 %v5978_v57, %v1093_v41  ;;  %v3379_v8 = vrot.slane %v3372_v14, 6  ;;  %v1317_v30 = vsel %vm332_vm5, %v8723_v24, %v8722_v18  ;;  %v6582_v55 = vpop.permute.xlu1 %2317  ;;  %v8734_v24 = vld [vmem:[#allocation98_spill] sm:$0xff]  ;;  %v8776_v34 = vld [vmem:[#allocation119_spill] sm:$0xff] }
 0x260   : > { %v6577_v31 = vadd.f32 %v5998_v33, %v1094_v56  ;;  %v6580_v50 = vadd.f32 %v6037_v63, %v1120_v29  ;;  %8724 = vst [vmem:[#allocation51_spill] sm:$0xff] %v6582_v55  ;;  %3383 = vrot.lane.b32.xlu0 %v3378_v28, %s4211_s14  ;;  %v3403_v60 = vrot.slane %v3397_v54, 6  ;;  %v3404_v57 = vrot.slane %v3398_v43, 6  ;;  %v8727_v28 = vld [vmem:[#allocation97_spill] sm:$0xff]  ;;  %v8728_v43 = vld [vmem:[#allocation94_spill] sm:$0xff] }
 0x261   : > { %v6566_v35 = vadd.f32 %v8721_v10, %v1096_v6  ;;  %v3406_v6 = vrot.slane %v3399_v47, 6  ;;  %v6586_v41 = vmul.f32 %v3483_v46, %v6445_v13  ;;  %v6589_v14 = vmul.f32 %v6242_v1, %v3483_v46  ;;  %3381 = vrot.lane.b32.xlu1 %v3376_v36, %s4211_s14  ;;  %v8731_v47 = vld [vmem:[#allocation170_spill] sm:$0xff]  ;;  %v8733_v10 = vld [vmem:[#allocation101_spill] sm:$0xff] }
 0x262   : > { %v1276_v26 = vadd.f32 %v6042_v53, %v1121_v22  ;;  %v6593_v33 = vadd.f32 %v6052_v20, %v1118_v59  ;;  %v6596_v63 = vadd.f32 %v6065_v27, %v1119_v61  ;;  %v8725_v56 = vrot.slane %v5958_v39, 2  ;;  %v6603_v54 = vpop.permute.xlu0 %2353  ;;  %v8729_v20 = vld [vmem:[#allocation99_spill] sm:$0xff]  ;;  %v8730_v22 = vld [vmem:[#allocation96_spill] sm:$0xff] }
 0x263   : > { %8726 = vst [vmem:[#allocation56_spill] sm:$0xff] %v6603_v54  ;;  %v1318_v53 = vsel %vm332_vm5, %v8728_v43, %v8727_v28  ;;  %v1319_v27 = vsel %vm332_vm5, %v8730_v22, %v8729_v20  ;;  %v8732_v59 = vrot.slane %v8731_v47, 2  ;;  %v3380_v61 = vsel %vm3132_vm9, %v3377_v40, %v3379_v8  ;;  %v8735_v43 = vld [vmem:[#allocation103_spill] sm:$0xff]  ;;  %v6627_v22 = vpop.permute.xlu1 %2351  ;;  %v8741_v47 = vld [vmem:[#allocation102_spill] sm:$0xff] }
 0x264   : > { %v6600_v29 = vadd.f32 %v8725_v56, %v1122_v2  ;;  %v1326_v36 = vadd.f32 %v1317_v30, %v6416_v62  ;;  %v1327_v2 = vadd.f32 %v8722_v18, %v6429_v58  ;;  %v1367_v56 = vsel %vm332_vm5, %v8734_v24, %v8733_v10  ;;  %8737 = vst [vmem:[#allocation53_spill] sm:$0xff] %v6627_v22  ;;  %v4062_v22 = vld [vmem:[#allocation2 + $0x18] sm:$0xfc] }
 0x265   : > { %v6615_v39 = vadd.f32 %v8732_v59, %v1123_v9  ;;  %v1368_v28 = vsel %vm332_vm5, %v8736_v32, %v8735_v43  ;;  %3408 = vrot.lane.b32.xlu0 %v3403_v60, %s4211_s14  ;;  %v3407_v40 = vsel %vm3132_vm9, %v3404_v57, %v3406_v6  ;;  %v3490_v62 = vrot.slane %v6586_v41, 6  ;;  %3385 = vrot.lane.b32.xlu1 %v3380_v61, %s4211_s14  ;;  %v8745_v59 = vld [vmem:[#allocation106_spill] sm:$0xff] }
 0x266   : > { %v3491_v9 = vrot.slane %v6589_v14, 6  ;;  %v3510_v58 = vstv %s6551_s6  ;;  %v6637_v8 = vadd.f32 %v1318_v53, %v6468_v42  ;;  %v1330_v18 = vadd.f32 %v1319_v27, %v6438_v7  ;;  %v6647_v6 = vpop.permute.xlu0 %2378  ;;  %v8740_v14 = vld [vmem:[#allocation105_spill] sm:$0xff]  ;;  %s2881_s6 = smul.f32 0.25, %s6950_s28  ;;  %s7447_s28 = sld [smem:[#allocation5 + $0x30]] }
 0x267   : > { %v1331_v32 = vadd.f32 %v8729_v20, %v6453_v52  ;;  %v6644_v30 = vadd.f32 %v8733_v10, %v6495_v0  ;;  %8739 = vst [vmem:[#allocation55_spill] sm:$0xff] %v6647_v6  ;;  %v6650_v41 = vadd.f32 %v1367_v56, %v6490_v5  ;;  %v1369_v42 = vsel %vm332_vm5, %v8741_v47, %v8740_v14  ;;  %v8743_v5 = vld [vmem:[#allocation104_spill] sm:$0xff]  ;;  %v6671_v27 = vpop.permute.xlu1 %2376 }
 0x268   : > { %8738 = vst [vmem:[#allocation58_spill] sm:$0xff] %v6637_v8  ;;  %v3405_v7 = vsel %vm3132_vm9, %v3403_v60, %v3404_v57  ;;  %v3486_v52 = vmul.f32 %v3483_v46, %v6503_v4  ;;  %v6661_v0 = vadd.f32 %v1368_v28, %v6481_v11  ;;  %v6665_v53 = vadd.f32 %v8735_v43, %v6486_v38 }
 0x269   : > { %v6669_v20 = vadd.f32 %v8743_v5, %v6498_v48  ;;  %8744 = vst [vmem:[#allocation57_spill] sm:$0xff] %v6671_v27  ;;  %3412 = vrot.lane.b32.xlu0 %v3407_v40, %s4211_s14  ;;  %v6675_v60 = vmul.f32 %v3510_v58, %v6508_v44  ;;  %v6679_v46 = vadd.f32 %v8743_v5, %v6518_v16  ;;  %v2535_v10 = vstv %s6605_s17  ;;  %v8748_v40 = vld [vmem:[#allocation108_spill] sm:$0xff]  ;;  %s7073_s17 = sld [smem:[#allocation5 + $0x28]] }
 0x26a   : > { %8742 = vst [vmem:[#allocation60_spill] sm:$0xff] %v6665_v53  ;;  %v3492_v11 = vsel %vm3132_vm9, %v3490_v62, %v3491_v9  ;;  %v3512_v38 = vmul.f32 %v6317_v15, %v3510_v58  ;;  %v3513_v57 = vmul.f32 %v3510_v58, %v6523_v45  ;;  %v6685_v48 = vadd.f32 %v1369_v42, %v6513_v23  ;;  %v6696_v16 = vpop.permute.xlu0 %2406  ;;  %v8747_v23 = vld [vmem:[#allocation107_spill] sm:$0xff] }
 0x26b   : > { %v6689_v28 = vadd.f32 %v8740_v14, %v6530_v49  ;;  %v6693_v61 = vadd.f32 %v8745_v59, %v6540_v12  ;;  %3410 = vrot.lane.b32.xlu1 %v3405_v7, %s4211_s14  ;;  %8746 = vst [vmem:[#allocation62_spill] sm:$0xff] %v6696_v16  ;;  %v6701_v24 = vadd.f32 %v8745_v59, %v6566_v35  ;;  %v6707_v49 = vstv %s2073_s12  ;;  %v6720_v35 = vpop.permute.xlu1 %2380  ;;  %v6724_v7 = vld [vmem:[#allocation3 + $0x20] sm:$0xfe]  ;;  %v6797_v16 = vld [vmem:[#allocation3 + $0x18] sm:$0xfe]  ;;  %s7159_s12 = sld [smem:[#allocation5 + $0x59]] }
 0x26c   : > { %v6705_v56 = vadd.f32 %v8747_v23, %v6569_v51  ;;  %v3493_v43 = vrot.slane %v3486_v52, 6  ;;  %v6711_v12 = vadd.f32 %v8747_v23, %v6577_v31  ;;  %v6715_v58 = vadd.f32 %v8748_v40, %v6580_v50  ;;  %8749 = vst [vmem:[#allocation59_spill] sm:$0xff] %v6720_v35  ;;  %v8754_v23 = vld [vmem:[#allocation111_spill] sm:$0xff] }
 0x26d   : > { %v6718_v14 = vadd.f32 %v8748_v40, %v1276_v26  ;;  %3497 = vrot.lane.b32.xlu0 %v3492_v11, %s4212_s11  ;;  %v3517_v51 = vrot.slane %v6675_v60, 6  ;;  %v3518_v47 = vrot.slane %v3512_v38, 6  ;;  %v3520_v42 = vrot.slane %v3513_v57, 6  ;;  %v8750_v26 = vld [vmem:[#allocation109_spill] sm:$0xff]  ;;  %v8751_v60 = vld [vmem:[#allocation110_spill] sm:$0xff] }
 0x26e   : > { %v6727_v31 = vmul.f32 %v6724_v7, %v2535_v10  ;;  %v6730_v50 = vmul.f32 %v6317_v15, %v2535_v10  ;;  %v6735_v52 = vadd.f32 %v8750_v26, %v6593_v33  ;;  %v6739_v5 = vadd.f32 %v8750_v26, %v6596_v63  ;;  %v6744_v38 = vld [vmem:[#allocation2 + $0x18] sm:$0xfe]  ;;  %v6751_v59 = vpop.permute.xlu0 %2410 }
 0x26f   : > { %v6742_v11 = vadd.f32 %v8751_v60, %v1326_v36  ;;  %v6748_v57 = vmul.f32 %v6744_v38, %v6707_v49  ;;  %3495 = vrot.lane.b32.xlu1 %v3490_v62, %s4212_s11  ;;  %8753 = vst [vmem:[#allocation61_spill] sm:$0xff] %v6751_v59  ;;  %v6754_v33 = vadd.f32 %v8751_v60, %v1327_v2  ;;  %v6761_v40 = vstv %s6656_s16  ;;  %v8755_v62 = vld [vmem:[#allocation112_spill] sm:$0xff]  ;;  %v6776_v60 = vld [vmem:[#allocation2 + $0x20] sm:$0xfe]  ;;  %v6782_v59 = vpop.permute.xlu1 %2408  ;;  %s2995_s8 = smul.f32 0.25, %s7073_s17  ;;  %s7188_s16 = sld [smem:[#allocation5 + $0x2c]] }
 0x270   : > { %v6758_v63 = vadd.f32 %v8754_v23, %v6600_v29  ;;  %v3494_v36 = vsel %vm3132_vm9, %v3491_v9, %v3493_v43  ;;  %v6768_v26 = vadd.f32 %v8754_v23, %v6615_v39  ;;  %v6771_v8 = vadd.f32 %v8755_v62, %v1330_v18  ;;  %8757 = vst [vmem:[#allocation63_spill] sm:$0xff] %v6782_v59  ;;  %v6791_v23 = vld [vmem:[#allocation3] sm:$0xff]  ;;  %s3538_s17 = smul.f32 0.25, %s7447_s28 }
 0x271   : > { %8752 = vst [vmem:[#allocation64_spill] sm:$0xff] %v6748_v57  ;;  %v6774_v2 = vadd.f32 %v8755_v62, %v1331_v32  ;;  %v6780_v29 = vmul.f32 %v6776_v60, %v6707_v49  ;;  %3522 = vrot.lane.b32.xlu0 %v3517_v51, %s4212_s11  ;;  %v3521_v9 = vsel %vm3132_vm9, %v3518_v47, %v3520_v42  ;;  %v2542_v39 = vrot.slane %v6727_v31, 4  ;;  %v6803_v42 = vld [vmem:[#allocation3 + $0x48] sm:$0x1] }
 0x272   : > { %v2543_v18 = vrot.slane %v6730_v50, 4  ;;  %v6788_v43 = vstv %s2675_s30  ;;  %v6795_v62 = vmul.f32 %v6791_v23, %v6707_v49  ;;  %v6801_v59 = vmul.f32 %v6797_v16, %v6761_v40  ;;  %v6808_v50 = vpop.permute.xlu0 %2435  ;;  %v6810_v32 = vld [vmem:[#allocation2 + $0x48] sm:$0x1] }
 0x273   : > { %8756 = vst [vmem:[#allocation66_spill] sm:$0xff] %v6780_v29  ;;  %v2128_v31 = vmul.f32 %v6803_v42, %v6761_v40  ;;  %3499 = vrot.lane.b32.xlu1 %v3494_v36, %s4212_s11  ;;  %8760 = vst [vmem:[#allocation68_spill] sm:$0xff] %v6808_v50  ;;  %v6814_v53 = vmul.f32 %v6810_v32, %v6707_v49  ;;  %v6818_v57 = vmul.f32 %v6791_v23, %v6761_v40  ;;  %v8763_v36 = vld [vmem:[#allocation114_spill] sm:$0xff] }
 0x274   : > { %8758 = vst [vmem:[#allocation69_spill] sm:$0xff] %v6795_v62  ;;  %8759 = vst [vmem:[#allocation65_spill] sm:$0xff] %v6801_v59  ;;  %v3519_v55 = vsel %vm3132_vm9, %v3517_v51, %v3518_v47  ;;  %v6821_v62 = vld [vmem:[#allocation3 + $0x50] sm:$0x1]  ;;  %v6826_v27 = vadd.f32 %v8763_v36, %v6661_v0  ;;  %v6831_v6 = vmul.f32 %v6242_v1, %v6707_v49 }
 0x275   : > { %8761 = vst [vmem:[#allocation70_spill] sm:$0xff] %v6814_v53  ;;  %8762 = vst [vmem:[#allocation71_spill] sm:$0xff] %v6818_v57  ;;  %v2538_v35 = vmul.f32 %v6821_v62, %v2535_v10  ;;  %v6833_v53 = vpop.permute.xlu1 %2433  ;;  %3526 = vrot.lane.b32.xlu0 %v3521_v9, %s4212_s11  ;;  %v2678_v51 = vmul.f32 %v4062_v22, %v6788_v43  ;;  %v8767_v10 = vld [vmem:[#allocation115_spill] sm:$0xff]  ;;  %v2544_v50 = vsel %vm2100_vm4, %v2542_v39, %v2543_v18  ;;  %v8768_v9 = vld [vmem:[#allocation116_spill] sm:$0xff]  ;;  %s3264_s30 = smul.f32 0.25, %s7188_s16 }
 0x276   : > { %8764 = vst [vmem:[#allocation72_spill] sm:$0xff] %v6826_v27  ;;  %8765 = vst [vmem:[#allocation73_spill] sm:$0xff] %v6831_v6  ;;  %v6839_v47 = vadd.f32 %v8767_v10, %v6650_v41  ;;  %v6843_v0 = vadd.f32 %v8767_v10, %v6644_v30  ;;  %v6848_v27 = vmul.f32 %v6791_v23, %v6788_v43  ;;  %v2142_v30 = vrot.slane %v2128_v31, 4  ;;  %v6862_v10 = vpop.permute.xlu0 %2463  ;;  %v8770_v6 = vld [vmem:[#allocation117_spill] sm:$0xff] }
 0x277   : > { %8766 = vst [vmem:[#allocation74_spill] sm:$0xff] %v6833_v53  ;;  %v6854_v36 = vadd.f32 %v8768_v9, %v6669_v20  ;;  %v6858_v22 = vadd.f32 %v8768_v9, %v6679_v46  ;;  %3524 = vrot.lane.b32.xlu1 %v3519_v55, %s4212_s11  ;;  %8769 = vst [vmem:[#allocation75_spill] sm:$0xff] %v6862_v10  ;;  %v6866_v29 = vadd.f32 %v8770_v6, %v6685_v48  ;;  %v8771_v9 = vld [vmem:[#allocation118_spill] sm:$0xff] }
 0x278   : > { %v6870_v53 = vadd.f32 %v8770_v6, %v6689_v28  ;;  %v2545_v46 = vrot.slane %v2538_v35, 4  ;;  %v6876_v41 = vadd.f32 %v8771_v9, %v6693_v61  ;;  %v6880_v55 = vmul.f32 %v6724_v7, %v6761_v40  ;;  %v4063_v35 = vld [vmem:[#allocation2 + $0x50] sm:$0x1]  ;;  %v4064_v10 = vld [vmem:[#allocation2 + $0x48] sm:$0x3] }
 0x279   : > { %v6884_v48 = vmul.f32 %v6317_v15, %v6761_v40  ;;  %v6886_v31 = vpop.permute.xlu1 %2437  ;;  %2549 = vrot.lane.b32.xlu0 %v2544_v50, %s4213_s9  ;;  %v2690_v6 = vrot.slane %v2678_v51, 5  ;;  %v6891_v28 = vadd.f32 %v8771_v9, %v6701_v24  ;;  %v6894_v61 = vmul.f32 %v4063_v35, %v6707_v49 }
 0x27a   : > { %8772 = vst [vmem:[#allocation76_spill] sm:$0xff] %v6880_v55  ;;  %8774 = vst [vmem:[#allocation80_spill] sm:$0xff] %v6886_v31  ;;  %v2692_v20 = vrot.slane %v6848_v27, 5  ;;  %v2682_v54 = vmul.f32 %v4064_v10, %v6788_v43  ;;  %v6900_v21 = vadd.f32 %v8776_v34, %v6705_v56  ;;  %v6904_v50 = vadd.f32 %v8776_v34, %v6711_v12  ;;  %v6912_v49 = vpop.permute.xlu0 %2467  ;;  %v6914_v27 = vld [vmem:[#allocation2 + $0x20] sm:$0xfc]  ;;  %v8780_v10 = vld [vmem:[#allocation120_spill] sm:$0xff] }
 0x27b   : > { %8773 = vst [vmem:[#allocation77_spill] sm:$0xff] %v6884_v48  ;;  %8775 = vst [vmem:[#allocation78_spill] sm:$0xff] %v6894_v61  ;;  %v8777_v24 = vrot.slane %v6818_v57, 4  ;;  %2547 = vrot.lane.b32.xlu1 %v2542_v39, %s4213_s9  ;;  %v2679_v56 = vmul.f32 %v6914_v27, %v6788_v43  ;;  %v6920_v9 = vadd.f32 %v8780_v10, %v6715_v58  ;;  %v2161_v34 = vstv %s2159_s0  ;;  %s7399_s0 = sld [smem:[#allocation5 + $0x5f]] }
 0x27c   : > { %8779 = vst [vmem:[#allocation82_spill] sm:$0xff] %v6912_v49  ;;  %v2546_v12 = vsel %vm2100_vm4, %v2543_v18, %v2545_v46  ;;  %v6929_v39 = vadd.f32 %v8780_v10, %v6718_v14  ;;  %v2693_v14 = vsel %vm2586_vm6, %v2690_v6, %v2692_v20  ;;  %v2696_v46 = vrot.slane %v2682_v54, 5  ;;  %v6967_v49 = vld [vmem:[#allocation2 + $0x50] sm:$0x3] }
 0x27d   : > { %v6909_v51 = vsel %vm2100_vm4, %v8777_v24, %v2142_v30  ;;  %v6925_v30 = vmul.f32 %v6242_v1, %v6788_v43  ;;  %v8781_v24 = vld [vmem:[#allocation121_spill] sm:$0xff]  ;;  %v6937_v61 = vpop.permute.xlu1 %2465  ;;  %2700 = vrot.lane.b32.xlu0 %v2690_v6, %s4215_s18  ;;  %v6948_v10 = vstv %s6850_s15  ;;  %v6957_v58 = vmul.f32 %v6744_v38, %v2161_v34  ;;  %s7361_s15 = sld [smem:[#allocation5 + $0x2b]] }
 0x27e   : > { %8778 = vst [vmem:[#allocation79_spill] sm:$0xff] %v6909_v51  ;;  %v6933_v57 = vadd.f32 %v8781_v24, %v6735_v52  ;;  %8782 = vst [vmem:[#allocation158_spill] sm:$0xff] %v6937_v61  ;;  %v6942_v18 = vadd.f32 %v8781_v24, %v6739_v5  ;;  %v8783_v52 = vld [vmem:[#allocation122_spill] sm:$0xff]  ;;  %v2129_v5 = vmul.f32 %v6821_v62, %v6761_v40  ;;  %v6962_v24 = vpop.permute.xlu0 %2492  ;;  %v2691_v6 = vrot.slane %v2679_v56, 5 }
 0x27f   : > { %v6954_v31 = vadd.f32 %v8783_v52, %v6742_v11  ;;  %2551 = vrot.lane.b32.xlu1 %v2546_v12, %s4213_s9  ;;  %8784 = vst [vmem:[#allocation81_spill] sm:$0xff] %v6962_v24  ;;  %v2164_v54 = vmul.f32 %v6791_v23, %v2161_v34  ;;  %v2166_v51 = vmul.f32 %v6810_v32, %v2161_v34  ;;  %v2694_v61 = vrot.slane %v6925_v30, 5  ;;  %v4067_v32 = vld [vmem:[#allocation3 + $0x18] sm:$0xfc]  ;;  %v8786_v24 = vld [vmem:[#allocation123_spill] sm:$0xff] }
 0x280   : > { %v2683_v11 = vmul.f32 %v6967_v49, %v6788_v43  ;;  %v6973_v38 = vadd.f32 %v8783_v52, %v6754_v33  ;;  %v6976_v40 = vmul.f32 %v6242_v1, %v2161_v34  ;;  %v2167_v12 = vmul.f32 %v4063_v35, %v2161_v34 }
 0x281   : > { %v6978_v56 = vpop.permute.xlu1 %2490  ;;  %2704 = vrot.lane.b32.xlu0 %v2693_v14, %s4215_s18  ;;  %v2728_v30 = vmul.f32 %v4067_v32, %v6948_v10  ;;  %v6984_v19 = vadd.f32 %v8786_v24, %v6758_v63  ;;  %v6987_v43 = vmul.f32 %v6776_v60, %v2161_v34  ;;  %v2697_v33 = vsel %vm2586_vm6, %v2692_v20, %v2696_v46  ;;  %v8787_v14 = vld [vmem:[#allocation124_spill] sm:$0xff] }
 0x282   : > { %8785 = vst [vmem:[#allocation17_spill] sm:$0xff] %v6978_v56  ;;  %v6992_v52 = vmul.f32 %v6791_v23, %v6948_v10  ;;  %v6996_v35 = vadd.f32 %v8786_v24, %v6768_v26  ;;  %v7000_v32 = vadd.f32 %v8787_v14, %v6771_v8  ;;  %v2144_v56 = vrot.slane %v2129_v5, 4  ;;  %v7004_v60 = vpop.permute.xlu0 %2520 }
 0x283   : > { %2702 = vrot.lane.b32.xlu1 %v2691_v6, %s4215_s18  ;;  %8789 = vst [vmem:[#allocation83_spill] sm:$0xff] %v7004_v60  ;;  %v2176_v20 = vrot.slane %v2164_v54, 4  ;;  %v2180_v34 = vrot.slane %v2166_v51, 4  ;;  %v2695_v46 = vsel %vm2586_vm6, %v2691_v6, %v2694_v61  ;;  %v2698_v25 = vrot.slane %v2683_v11, 5  ;;  %v4068_v54 = vld [vmem:[#allocation3 + $0x48] sm:$0x3] }
 0x284   : > { %8788 = vst [vmem:[#allocation13_spill] sm:$0xff] %v7000_v32  ;;  %v7009_v26 = vadd.f32 %v8787_v14, %v6774_v2  ;;  %v2178_v8 = vrot.slane %v6976_v40, 4  ;;  %v2182_v24 = vrot.slane %v2167_v12, 4  ;;  %v2740_v5 = vrot.slane %v2728_v30, 5  ;;  %v8792_v2 = vld [vmem:[#allocation127_spill] sm:$0xff] }
 0x285   : > { %v7012_v32 = vpop.permute.xlu1 %2494  ;;  %2708 = vrot.lane.b32.xlu0 %v2697_v33, %s4215_s18  ;;  %v2196_v60 = vstv %s6944_s25  ;;  %v2742_v51 = vrot.slane %v6992_v52, 5  ;;  %v2732_v6 = vmul.f32 %v4068_v54, %v6948_v10  ;;  %v7022_v11 = vadd.f32 %v8792_v2, %v6839_v47  ;;  %v7036_v52 = vld [vmem:[#allocation3 + $0x20] sm:$0xfc] }
 0x286   : > { %8790 = vst [vmem:[#allocation84_spill] sm:$0xff] %v7009_v26  ;;  %8791 = vst [vmem:[#allocation14_spill] sm:$0xff] %v7012_v32  ;;  %v7026_v40 = vadd.f32 %v8792_v2, %v6843_v0  ;;  %v8793_v12 = vrot.slane %v6884_v48, 4  ;;  %v7034_v33 = vpop.permute.xlu0 %2524  ;;  %v2729_v14 = vmul.f32 %v7036_v52, %v6948_v10  ;;  %v7043_v47 = vsel %vm2100_vm4, %v2176_v20, %v2180_v34 }
 0x287   : > { %2706 = vrot.lane.b32.xlu1 %v2695_v46, %s4215_s18  ;;  %8795 = vst [vmem:[#allocation86_spill] sm:$0xff] %v7034_v33  ;;  %v8796_v0 = vrot.slane %v6957_v58, 4  ;;  %v7053_v46 = vmul.f32 %v6317_v15, %v6948_v10  ;;  %v7056_v2 = vsel %vm2100_vm4, %v2178_v8, %v2182_v24  ;;  %v7062_v34 = vmul.f32 %v6724_v7, %v2196_v60 }
 0x288   : > { %v7031_v30 = vsel %vm2100_vm4, %v8793_v12, %v2144_v56  ;;  %v2699_v56 = vsel %vm2586_vm6, %v2694_v61, %v2698_v25  ;;  %v7059_v12 = vmul.f32 %v6797_v16, %v2196_v60  ;;  %v2199_v63 = vmul.f32 %v6791_v23, %v2196_v60  ;;  %v8800_v25 = vld [vmem:[#allocation128_spill] sm:$0xff] }
 0x289   : > { %8794 = vst [vmem:[#allocation85_spill] sm:$0xff] %v7031_v30  ;;  %v7048_v54 = vsel %vm2100_vm4, %v8796_v0, %v2176_v20  ;;  %8798 = vst [vmem:[#allocation87_spill] sm:$0xff] %v7062_v34  ;;  %v7065_v33 = vpop.permute.xlu1 %2522  ;;  %2750 = vrot.lane.b32.xlu0 %v2740_v5, %s4215_s18  ;;  %v7070_v61 = vadd.f32 %v8800_v25, %v6854_v36  ;;  %v2743_v20 = vsel %vm2586_vm6, %v2740_v5, %v2742_v51  ;;  %v8802_v36 = vld [vmem:[#allocation129_spill] sm:$0xff] }
 0x28a   : > { %8797 = vst [vmem:[#allocation18_spill] sm:$0xff] %v7059_v12  ;;  %8799 = vst [vmem:[#allocation161_spill] sm:$0xff] %v7065_v33  ;;  %v2746_v24 = vrot.slane %v2732_v6, 5  ;;  %v2883_v0 = vstv %s2881_s6  ;;  %v2200_v16 = vmul.f32 %v6317_v15, %v2196_v60  ;;  %v2201_v7 = vmul.f32 %v6803_v42, %v2196_v60  ;;  %v7079_v33 = vpop.permute.xlu0 %2599  ;;  %s7482_s6 = sld [smem:[#allocation5 + $0x61]] }
 0x28b   : > { %v2202_v48 = vmul.f32 %v6821_v62, %v2196_v60  ;;  %2710 = vrot.lane.b32.xlu1 %v2699_v56, %s4215_s18  ;;  %8801 = vst [vmem:[#allocation20_spill] sm:$0xff] %v7079_v33  ;;  %v2741_v26 = vrot.slane %v2729_v14, 5  ;;  %v7083_v30 = vadd.f32 %v8802_v36, %v6866_v29  ;;  %v8803_v5 = vrot.slane %v6987_v43, 4  ;;  %v8806_v56 = vld [vmem:[#allocation131_spill] sm:$0xff] }
 0x28c   : > { %v2744_v32 = vrot.slane %v7053_v46, 5  ;;  %v2733_v62 = vmul.f32 %v7091_v3, %v6948_v10  ;;  %v2211_v14 = vrot.slane %v2199_v63, 4  ;;  %v1645_v46 = vsel %vm623_vm7, %v8800_v25, %v8806_v56  ;;  %v8808_v25 = vld [vmem:[#allocation130_spill] sm:$0xff] }
 0x28d   : > { %v7088_v6 = vsel %vm2100_vm4, %v8803_v5, %v2178_v8  ;;  %v7097_v29 = vpop.permute.xlu1 %2597  ;;  %2754 = vrot.lane.b32.xlu0 %v2743_v20, %s4215_s18  ;;  %v2884_v8 = vmul.f32 %v6914_v27, %v2883_v0  ;;  %v2747_v5 = vsel %vm2586_vm6, %v2742_v51, %v2746_v24  ;;  %v2885_v10 = vmul.f32 %v6242_v1, %v2883_v0 }
 0x28e   : > { %8804 = vst [vmem:[#allocation166_spill] sm:$0xff] %v7088_v6  ;;  %8805 = vst [vmem:[#allocation88_spill] sm:$0xff] %v7097_v29  ;;  %v2886_v33 = vmul.f32 %v6967_v49, %v2883_v0  ;;  %v2213_v42 = vrot.slane %v2200_v16, 4  ;;  %v2215_v6 = vrot.slane %v2201_v7, 4  ;;  %v2217_v60 = vrot.slane %v2202_v48, 4  ;;  %v7108_v63 = vpop.permute.xlu0 %2603  ;;  %v8809_v48 = vld [vmem:[#allocation133_spill] sm:$0xff] }
 0x28f   : > { %2752 = vrot.lane.b32.xlu1 %v2741_v26, %s4215_s18  ;;  %8807 = vst [vmem:[#allocation22_spill] sm:$0xff] %v7108_v63  ;;  %v2910_v20 = vstv %s7040_s7  ;;  %v7113_v29 = vadd.f32 %v8802_v36, %v6870_v53  ;;  %v7117_v51 = vadd.f32 %v8808_v25, %v6900_v21  ;;  %v2745_v24 = vsel %vm2586_vm6, %v2741_v26, %v2744_v32  ;;  %s7494_s7 = sld [smem:[#allocation5 + $0x5c]] }
 0x290   : > { %v2748_v0 = vrot.slane %v2733_v62, 5  ;;  %v7121_v16 = vadd.f32 %v1645_v46, %v6858_v22  ;;  %v1646_v7 = vsel %vm623_vm7, %v8808_v25, %v8809_v48  ;;  %v8810_v56 = vrot.slane %v7059_v12, 4  ;;  %v8812_v46 = vld [vmem:[#allocation132_spill] sm:$0xff] }
 0x291   : > { %v7131_v53 = vpop.permute.xlu1 %2601  ;;  %2758 = vrot.lane.b32.xlu0 %v2747_v5, %s4215_s18  ;;  %v2890_v21 = vrot.slane %v2884_v8, 5  ;;  %v2891_v36 = vrot.slane %v2885_v10, 5  ;;  %v2893_v26 = vrot.slane %v2886_v33, 5  ;;  %v7135_v62 = vmul.f32 %v7036_v52, %v2910_v20  ;;  %v8818_v10 = vld [vmem:[#allocation135_spill] sm:$0xff] }
 0x292   : > { %v7129_v63 = vsel %vm2100_vm4, %v8810_v56, %v2211_v14  ;;  %8811 = vst [vmem:[#allocation25_spill] sm:$0xff] %v7131_v53  ;;  %v7138_v22 = vmul.f32 %v6317_v15, %v2910_v20  ;;  %v7143_v25 = vadd.f32 %v8812_v46, %v6876_v41  ;;  %v8813_v48 = vrot.slane %v7062_v34, 4  ;;  %v7157_v5 = vpop.permute.xlu0 %2607  ;;  %v8820_v34 = vld [vmem:[#allocation134_spill] sm:$0xff] }
 0x293   : > { %v7151_v8 = vsel %vm2100_vm4, %v2211_v14, %v2215_v6  ;;  %v7154_v33 = vsel %vm2100_vm4, %v2213_v42, %v2217_v60  ;;  %2756 = vrot.lane.b32.xlu1 %v2745_v24, %s4215_s18  ;;  %8817 = vst [vmem:[#allocation163_spill] sm:$0xff] %v7157_v5  ;;  %v1657_v41 = vadd.f32 %v1646_v7, %v6904_v50  ;;  %v8821_v60 = vld [vmem:[#allocation139_spill] sm:$0xff]  ;;  %v8822_v24 = vld [vmem:[#allocation136_spill] sm:$0xff]  ;;  %v8824_v50 = vld [vmem:[#allocation138_spill] sm:$0xff] }
 0x294   : > { %v7148_v56 = vsel %vm2100_vm4, %v8813_v48, %v2213_v42  ;;  %8815 = vst [vmem:[#allocation26_spill] sm:$0xff] %v7151_v8  ;;  %8816 = vst [vmem:[#allocation89_spill] sm:$0xff] %v7154_v33  ;;  %v1647_v53 = vsel %vm623_vm7, %v8812_v46, %v8818_v10  ;;  %v8819_v48 = vld [vmem:[#allocation137_spill] sm:$0xff]  ;;  %v2749_v14 = vsel %vm2586_vm6, %v2744_v32, %v2748_v0  ;;  %v8825_v8 = vld [vmem:[#allocation143_spill] sm:$0xff]  ;;  %v2997_v0 = vstv %s2995_s8  ;;  %s3813_s8 = sshll.u32 %s4361_s10, 4 }
 0x295   : > { %8814 = vst [vmem:[#allocation159_spill] sm:$0xff] %v7148_v56  ;;  %v1687_v6 = vsel %vm623_vm7, %v8820_v34, %v8819_v48  ;;  %v7171_v42 = vadd.f32 %v8820_v34, %v6933_v57  ;;  %v1688_v5 = vsel %vm623_vm7, %v8822_v24, %v8821_v60  ;;  %v8823_v33 = vld [vmem:[#allocation141_spill] sm:$0xff]  ;;  %v8826_v46 = vld [vmem:[#allocation140_spill] sm:$0xff]  ;;  %v7182_v12 = vpop.permute.xlu1 %2605  ;;  %2895 = vrot.lane.b32.xlu0 %v2890_v21, %s4216_s27  ;;  %v2917_v57 = vrot.slane %v7135_v62, 5 }
 0x296   : > { %v1689_v7 = vsel %vm623_vm7, %v8824_v50, %v8823_v33  ;;  %v1732_v10 = vsel %vm727_vm8, %v8826_v46, %v8825_v8  ;;  %8827 = vst [vmem:[#allocation90_spill] sm:$0xff] %v7182_v12  ;;  %v2894_v32 = vsel %vm2586_vm6, %v2891_v36, %v2893_v26  ;;  %v2918_v34 = vrot.slane %v7138_v22, 5  ;;  %v7199_v26 = vpop.permute.xlu0 %2649  ;;  %v8828_v22 = vld [vmem:[#allocation149_spill] sm:$0xff]  ;;  %v8829_v12 = vld [vmem:[#allocation146_spill] sm:$0xff] }
 0x297   : > { %v1659_v48 = vadd.f32 %v1647_v53, %v6891_v28  ;;  %v1698_v33 = vadd.f32 %v8822_v24, %v6920_v9  ;;  %v1697_v60 = vadd.f32 %v1687_v6, %v6942_v18  ;;  %v7196_v46 = vadd.f32 %v8824_v50, %v6984_v19  ;;  %2760 = vrot.lane.b32.xlu1 %v2749_v14, %s4215_s18  ;;  %v8833_v14 = vld [vmem:[#allocation144_spill] sm:$0xff] }
 0x298   : > { %v1699_v62 = vadd.f32 %v1688_v5, %v6929_v39  ;;  %v1774_v56 = vsel %vm727_vm8, %v8829_v12, %v8828_v22  ;;  %v2892_v28 = vsel %vm2586_vm6, %v2890_v21, %v2891_v36  ;;  %v2913_v9 = vmul.f32 %v7091_v3, %v2910_v20  ;;  %v8830_v5 = vld [vmem:[#allocation153_spill] sm:$0xff]  ;;  %v8831_v12 = vld [vmem:[#allocation150_spill] sm:$0xff] }
 0x299   : > { %v1701_v18 = vadd.f32 %v1689_v7, %v6996_v35  ;;  %v1741_v19 = vadd.f32 %v1732_v10, %v6954_v31  ;;  %v1742_v53 = vadd.f32 %v8825_v8, %v6973_v38  ;;  %v7211_v6 = vpop.permute.xlu1 %2647  ;;  %2899 = vrot.lane.b32.xlu0 %v2894_v32, %s4216_s27  ;;  %v2998_v39 = vmul.f32 %v6914_v27, %v2997_v0  ;;  %v8832_v31 = vld [vmem:[#allocation147_spill] sm:$0xff]  ;;  %v8837_v7 = vld [vmem:[#allocation152_spill] sm:$0xff] }
 0x29a   : > { %v1776_v21 = vsel %vm727_vm8, %v8831_v12, %v8830_v5  ;;  %v2919_v20 = vsel %vm2586_vm6, %v2917_v57, %v2918_v34  ;;  %v2999_v36 = vmul.f32 %v6242_v1, %v2997_v0  ;;  %v3000_v35 = vmul.f32 %v6967_v49, %v2997_v0  ;;  %v7230_v24 = vpop.permute.xlu0 %2653  ;;  %v8836_v49 = vld [vmem:[#allocation155_spill] sm:$0xff]  ;;  %v8839_v0 = vld [vmem:[#allocation154_spill] sm:$0xff] }
 0x29b   : > { %v7224_v38 = vsel %vm727_vm8, %v8833_v14, %v8832_v31  ;;  %v1783_v8 = vadd.f32 %v1774_v56, %v7022_v11  ;;  %v1784_v27 = vadd.f32 %v8828_v22, %v7026_v40  ;;  %2897 = vrot.lane.b32.xlu1 %v2892_v28, %s4216_s27  ;;  %8835 = vst [vmem:[#allocation91_spill] sm:$0xff] %v7230_v24  ;;  %v3024_v50 = vstv %s7159_s12  ;;  %v8838_v32 = vld [vmem:[#allocation67_spill] sm:$0xff]  ;;  %v8841_v28 = vld [vmem:[#allocation156_spill] sm:$0xff]  ;;  %s156_s12 = scalar_lea.vmem [#allocation9], %s3813_s8 }
 0x29c   : > { %8834 = vst [vmem:[#allocation23_spill] sm:$0xff] %v7224_v38  ;;  %v1788_v1 = vadd.f32 %v8830_v5, %v7113_v29  ;;  %v1819_v10 = vsel %vm727_vm8, %v8837_v7, %v8836_v49  ;;  %v1820_v11 = vsel %vm727_vm8, %v8839_v0, %v8838_v32  ;;  %v2920_v56 = vrot.slane %v2913_v9, 5  ;;  %v8840_v22 = vld [vmem:[#allocation15_spill] sm:$0xff]  ;;  %v8842_v14 = vld [vmem:[#allocation160_spill] sm:$0xff]  ;;  %v8843_v38 = vld [vmem:[#allocation157_spill] sm:$0xff]  ;;  %s3720_s16 = sshll.u32 %s156_s12, 4  ;;  %s8150_s16 = int_to_ptr.vmem [resolvable:$true] %s3720_s16 }
 0x29d   : > { %v1787_v40 = vadd.f32 %v1776_v21, %v7083_v30  ;;  %v1821_v12 = vsel %vm727_vm8, %v8841_v28, %v8840_v22  ;;  %v1861_v31 = vsel %vm727_vm8, %v8843_v38, %v8842_v14  ;;  %v7248_v29 = vpop.permute.xlu1 %2651  ;;  %2924 = vrot.lane.b32.xlu0 %v2919_v20, %s4216_s27  ;;  %v3004_v5 = vrot.slane %v2998_v39, 5 }
 0x29e   : > { %v3005_v7 = vrot.slane %v2999_v36, 5  ;;  %v3007_v24 = vrot.slane %v3000_v35, 5  ;;  %v7252_v0 = vmul.f32 %v7036_v52, %v3024_v50  ;;  %v7255_v30 = vmul.f32 %v6317_v15, %v3024_v50  ;;  %v7264_v39 = vpop.permute.xlu0 %2657  ;;  %v8844_v15 = vld [vmem:[#allocation164_spill] sm:$0xff] }
 0x29f   : > { %v1828_v9 = vadd.f32 %v1819_v10, %v7070_v61  ;;  %v1829_v21 = vadd.f32 %v8836_v49, %v7121_v16  ;;  %v1830_v38 = vadd.f32 %v1820_v11, %v7117_v51  ;;  %v1831_v28 = vadd.f32 %v8838_v32, %v1657_v41  ;;  %2922 = vrot.lane.b32.xlu1 %v2917_v57, %s4216_s27  ;;  %v8845_v36 = vld [vmem:[#allocation16_spill] sm:$0xff]  ;;  %v8846_v57 = vld [vmem:[#allocation165_spill] sm:$0xff]  ;;  %v8847_v49 = vld [vmem:[#allocation162_spill] sm:$0xff] }
 0x2a0   : > { %v1832_v52 = vadd.f32 %v1821_v12, %v7143_v25  ;;  %v1833_v20 = vadd.f32 %v8840_v22, %v1659_v48  ;;  %v1862_v35 = vsel %vm727_vm8, %v8845_v36, %v8844_v15  ;;  %v2921_v61 = vsel %vm2586_vm6, %v2918_v34, %v2920_v56  ;;  %v7286_v11 = vld [vmem:[#allocation2 + $0x18] sm:$0xf8] }
 0x2a1   : > { %v1870_v51 = vadd.f32 %v1861_v31, %v7171_v42  ;;  %v1871_v16 = vadd.f32 %v8842_v14, %v1697_v60  ;;  %v1873_v41 = vadd.f32 %v8844_v15, %v1699_v62  ;;  %v1863_v25 = vsel %vm727_vm8, %v8847_v49, %v8846_v57  ;;  %v7280_v10 = vpop.permute.xlu1 %2655  ;;  %3009 = vrot.lane.b32.xlu0 %v3004_v5, %s4217_s29  ;;  %v8849_v31 = vld [vmem:[#allocation19_spill] sm:$0xff]  ;;  %v8852_v14 = vld [vmem:[#allocation24_spill] sm:$0xff]  ;;  %v7302_v15 = vld [vmem:[#allocation2 + $0x48] sm:$0x7] }
 0x2a2   : > { %8848 = vst [vmem:[#allocation93_spill] sm:$0xff] %v7280_v10  ;;  %v3008_v48 = vsel %vm2586_vm6, %v3005_v7, %v3007_v24  ;;  %v3031_v34 = vrot.slane %v7252_v0, 5  ;;  %v3032_v32 = vrot.slane %v7255_v30, 5  ;;  %v3266_v42 = vstv %s3264_s30  ;;  %v7296_v12 = vpop.permute.xlu0 %2805  ;;  %s3929_s30 = sshll.u32 %s4196_s22, 8  ;;  %s3707_s22 = scalar_lea.sflag [#allocation8], %s4361_s10 }
 0x2a3   : > { %v1872_v60 = vadd.f32 %v1862_v35, %v1698_v33  ;;  %v7289_v62 = vadd.f32 %v8849_v31, %v1741_v19  ;;  %v1897_v56 = vadd.f32 %v8849_v31, %v1742_v53  ;;  %v7293_v22 = vadd.f32 %v8846_v57, %v1701_v18  ;;  %2926 = vrot.lane.b32.xlu1 %v2921_v61, %s4216_s27  ;;  %v8853_v53 = vld [vmem:[#allocation169_spill] sm:$0xff]  ;;  %s7330_s27 = sld [smem:[#allocation5 + $0x2e]]  ;;  %v7333_v31 = vld [vmem:[#allocation3 + $0x18] sm:$0xf8] }
 0x2a4   : > { %8851 = vst [vmem:[#allocation92_spill] sm:$0xff] %v7296_v12  ;;  %v1874_v24 = vadd.f32 %v1863_v25, %v7196_v46  ;;  %v1919_v0 = vadd.f32 %v8852_v14, %v1783_v8  ;;  %v3006_v30 = vsel %vm2586_vm6, %v3004_v5, %v3005_v7  ;;  %v3027_v33 = vmul.f32 %v7091_v3, %v3024_v50  ;;  %v8855_v5 = vld [vmem:[#allocation171_spill] sm:$0xff]  ;;  %v8856_v7 = vld [vmem:[#allocation172_spill] sm:$0xff] }
 0x2a5   : > { %8850 = vst [vmem:[#allocation95_spill] sm:$0xff] %v7289_v62  ;;  %v1920_v19 = vadd.f32 %v8852_v14, %v1784_v27  ;;  %v7306_v36 = vadd.f32 %v8853_v53, %v1828_v9  ;;  %v7308_v18 = vpop.permute.xlu1 %2803  ;;  %3013 = vrot.lane.b32.xlu0 %v3008_v48, %s4217_s29  ;;  %v3267_v35 = vmul.f32 %v3266_v42, %v7286_v11  ;;  %v7327_v25 = vld [vmem:[#allocation2 + $0x38] sm:$0xff]  ;;  %8860 = vst [vmem:[#allocation170_spill] sm:$0xff] %v7333_v31  ;;  %v8862_v62 = vld [vmem:[#allocation27_spill] sm:$0xff] }
 0x2a6   : > { %8854 = vst [vmem:[#allocation94_spill] sm:$0xff] %v7308_v18  ;;  %v3269_v46 = vmul.f32 %v6791_v23, %v3266_v42  ;;  %v1946_v8 = vadd.f32 %v8853_v53, %v1829_v21  ;;  %v7315_v3 = vadd.f32 %v8855_v5, %v1787_v40  ;;  %v7318_v50 = vadd.f32 %v8855_v5, %v1788_v1  ;;  %v7324_v57 = vpop.permute.xlu0 %2809  ;;  %v8859_v1 = vld [vmem:[#allocation173_spill] sm:$0xff] }
 0x2a7   : > { %v3033_v27 = vsel %vm2586_vm6, %v3031_v34, %v3032_v32  ;;  %v1949_v9 = vadd.f32 %v8856_v7, %v1832_v52  ;;  %v1950_v61 = vadd.f32 %v8856_v7, %v1833_v20  ;;  %3011 = vrot.lane.b32.xlu1 %v3006_v30, %s4217_s29  ;;  %8857 = vst [vmem:[#allocation99_spill] sm:$0xff] %v7324_v57  ;;  %8858 = vst [vmem:[#allocation96_spill] sm:$0xff] %v7327_v25  ;;  %v8863_v57 = vld [vmem:[#allocation28_spill] sm:$0xff] }
 0x2a8   : > { %v3271_v49 = vmul.f32 %v3266_v42, %v7302_v15  ;;  %v3270_v40 = vmul.f32 %v7327_v25, %v3266_v42  ;;  %v1947_v21 = vadd.f32 %v8859_v1, %v1830_v38  ;;  %v3034_v48 = vrot.slane %v3027_v33, 5 }
 0x2a9   : > { %v7336_v52 = vstv %s7272_s13  ;;  %v3272_v20 = vmul.f32 %v3266_v42, %v6503_v4  ;;  %v7340_v14 = vadd.f32 %v8859_v1, %v1831_v28  ;;  %v7342_v30 = vpop.permute.xlu1 %2807  ;;  %3038 = vrot.lane.b32.xlu0 %v3033_v27, %s4217_s29  ;;  %v3279_v53 = vrot.slane %v3267_v35, 6  ;;  %v7359_v1 = vld [vmem:[#allocation3 + $0x48] sm:$0x7]  ;;  %s3424_s25 = smul.f32 0.25, %s7330_s27 }
 0x2aa   : > { %8861 = vst [vmem:[#allocation101_spill] sm:$0xff] %v7342_v30  ;;  %v3281_v5 = vrot.slane %v3269_v46, 6  ;;  %v3268_v7 = vmul.f32 %v3266_v42, %v6445_v13  ;;  %v7347_v38 = vadd.f32 %v8862_v62, %v1872_v60  ;;  %v7350_v33 = vadd.f32 %v8862_v62, %v1873_v41  ;;  %8864 = vst [vmem:[#allocation98_spill] sm:$0xff] %v7359_v1  ;;  %v7367_v13 = vpop.permute.xlu0 %2813  ;;  %v8866_v60 = vld [vmem:[#allocation29_spill] sm:$0xff] }
 0x2ab   : > { %v7353_v18 = vadd.f32 %v8863_v57, %v1870_v51  ;;  %v7357_v28 = vmul.f32 %v6791_v23, %v7336_v52  ;;  %v7364_v35 = vadd.f32 %v8863_v57, %v1871_v16  ;;  %3036 = vrot.lane.b32.xlu1 %v3031_v34, %s4217_s29  ;;  %8865 = vst [vmem:[#allocation103_spill] sm:$0xff] %v7367_v13  ;;  %v3285_v41 = vrot.slane %v3271_v49, 6  ;;  %v8868_v46 = vld [vmem:[#allocation33_spill] sm:$0xff] }
 0x2ac   : > { %v3283_v42 = vrot.slane %v3270_v40, 6  ;;  %v7371_v51 = vmul.f32 %v7336_v52, %v7333_v31  ;;  %v7374_v62 = vadd.f32 %v8866_v60, %v1897_v56  ;;  %v2017_v27 = vadd.f32 %v8868_v46, %v1919_v0  ;;  %v8870_v56 = vld [vmem:[#allocation30_spill] sm:$0xff] }
 0x2ad   : > { %v3035_v30 = vsel %vm2586_vm6, %v3032_v32, %v3034_v48  ;;  %v3287_v12 = vrot.slane %v3272_v20, 6  ;;  %v2018_v16 = vadd.f32 %v8868_v46, %v1920_v19  ;;  %v7379_v57 = vpop.permute.xlu1 %2811  ;;  %3289 = vrot.lane.b32.xlu0 %v3279_v53, %s4211_s14  ;;  %v3282_v34 = vsel %vm3132_vm9, %v3279_v53, %v3281_v5  ;;  %v7393_v19 = vld [vmem:[#allocation3 + $0x38] sm:$0xff] }
 0x2ae   : > { %8867 = vst [vmem:[#allocation100_spill] sm:$0xff] %v7374_v62  ;;  %8869 = vst [vmem:[#allocation105_spill] sm:$0xff] %v7379_v57  ;;  %v3280_v49 = vrot.slane %v3268_v7, 6  ;;  %v3321_v40 = vmul.f32 %v7336_v52, %v7359_v1  ;;  %v7386_v62 = vadd.f32 %v8870_v56, %v1874_v24  ;;  %v3331_v0 = vrot.slane %v7357_v28, 6  ;;  %v7406_v24 = vpop.permute.xlu0 %2855  ;;  %v8875_v57 = vld [vmem:[#allocation32_spill] sm:$0xff] }
 0x2af   : > { %v7391_v32 = vmul.f32 %v7336_v52, %v6508_v44  ;;  %8871 = vst [vmem:[#allocation102_spill] sm:$0xff] %v7393_v19  ;;  %v7397_v48 = vmul.f32 %v7393_v19, %v7336_v52  ;;  %v7403_v20 = vadd.f32 %v8870_v56, %v7293_v22  ;;  %3040 = vrot.lane.b32.xlu1 %v3035_v30, %s4217_s29  ;;  %8872 = vst [vmem:[#allocation104_spill] sm:$0xff] %v7406_v24  ;;  %v8876_v24 = vld [vmem:[#allocation35_spill] sm:$0xff]  ;;  %s3191_s29 = smul.f32 0.25, %s7361_s15  ;;  %s8156_s15 = scalar_lea.hbm %s8208_s2, %s3929_s30 }
 0x2b0   : > { %v3286_v53 = vsel %vm3132_vm9, %v3281_v5, %v3285_v41  ;;  %v3284_v7 = vsel %vm3132_vm9, %v3280_v49, %v3283_v42  ;;  %v3329_v28 = vrot.slane %v7371_v51, 6  ;;  %v8873_v46 = vrot.slane %v6801_v59, 4  ;;  %v7590_v59 = vld [vmem:[#allocation3 + $0x20] sm:$0xf8] }
 0x2b1   : > { %v2043_v22 = vadd.f32 %v8875_v57, %v7306_v36  ;;  %v2044_v56 = vadd.f32 %v8875_v57, %v1946_v8  ;;  %v3288_v30 = vsel %vm3132_vm9, %v3283_v42, %v3287_v12  ;;  %v2047_v13 = vadd.f32 %v8876_v24, %v1949_v9  ;;  %v7426_v10 = vpop.permute.xlu1 %2853  ;;  %3293 = vrot.lane.b32.xlu0 %v3282_v34, %s4211_s14 }
 0x2b2   : > { %v7414_v60 = vadd.f32 %v8873_v46, %v2017_v27  ;;  %v2048_v5 = vadd.f32 %v8876_v24, %v1950_v61  ;;  %v8877_v41 = vrot.slane %v6880_v55, 4  ;;  %v3335_v27 = vrot.slane %v3321_v40, 6  ;;  %v8879_v46 = vld [vmem:[#allocation38_spill] sm:$0xff]  ;;  %8898 = vst [vmem:[#allocation116_spill] sm:$0xff] %v7590_v59 }
 0x2b3   : > { %v7431_v36 = vadd.f32 %v8879_v46, %v7315_v3  ;;  %v3332_v8 = vsel %vm3132_vm9, %v3329_v28, %v3331_v0  ;;  %v3330_v12 = vrot.slane %v7391_v32, 6  ;;  %v3333_v9 = vrot.slane %v7397_v48, 6  ;;  %3291 = vrot.lane.b32.xlu1 %v3280_v49, %s4211_s14 }
 0x2b4   : > { %8874 = vst [vmem:[#allocation106_spill] sm:$0xff] %v7414_v60  ;;  %v7424_v51 = vadd.f32 %v8877_v41, %v2018_v16  ;;  %v7439_v61 = vadd.f32 %v8879_v46, %v7318_v50  ;;  %v2045_v42 = vadd.f32 %v6280_v37, %v1947_v21  ;;  %v7443_v16 = vpop.permute.xlu0 %2859  ;;  %v3426_v57 = vstv %s3424_s25  ;;  %s4219_s25 = smov [#allocation9]  }
 0x2b5   : > { %8880 = vst [vmem:[#allocation108_spill] sm:$0xff] %v7431_v36  ;;  %v3322_v3 = vmul.f32 %v7336_v52, %v6523_v45  ;;  %v8882_v34 = vrot.slane %v6957_v58, 4  ;;  %v8883_v50 = vrot.slane %v6987_v43, 4  ;;  %v3428_v21 = vmul.f32 %v7327_v25, %v3426_v57  ;;  %v7467_v58 = vpop.permute.xlu1 %2857  ;;  %3297 = vrot.lane.b32.xlu0 %v3286_v53, %s4211_s14 }
 0x2b6   : > { %8878 = vst [vmem:[#allocation107_spill] sm:$0xff] %v7424_v51  ;;  %8881 = vst [vmem:[#allocation109_spill] sm:$0xff] %v7439_v61  ;;  %v3429_v49 = vmul.f32 %v3426_v57, %v6503_v4  ;;  %v2046_v24 = vadd.f32 %v6280_v37, %v7340_v14  ;;  %v7462_v41 = vadd.f32 %v7043_v47, %v2047_v13  ;;  %v7476_v4 = vld [vmem:[#allocation2 + $0x20] sm:$0xf8]  ;;  %v3453_v47 = vstv %s7399_s0  ;;  %s4120_s0 = scalar_lea.vmem %s8150_s16, 256 }
 0x2b7   : > { %v7451_v40 = vadd.f32 %v8882_v34, %v2043_v22  ;;  %v7455_v48 = vadd.f32 %v8883_v50, %v2044_v56  ;;  %v7465_v45 = vadd.f32 %v7056_v2, %v2048_v5  ;;  %v3336_v43 = vsel %vm3132_vm9, %v3331_v0, %v3335_v27  ;;  %8884 = vst [vmem:[#allocation110_spill] sm:$0xff] %v7476_v4  ;;  %v8885_v56 = vld [vmem:[#allocation40_spill] sm:$0xff]  ;;  %p4121_p11 = scmp.ne.s32.totalorder %s8150_s16, %s4120_s0 }
 0x2b8   : > { %v7474_v52 = vsel %vm3132_vm9, %v3330_v12, %v3333_v9  ;;  %v7479_v37 = vmul.f32 %v7476_v4, %v3426_v57  ;;  %v3193_v14 = vstv %s3191_s29  ;;  %v2068_v2 = vadd.f32 %v6296_v17, %v7347_v38  ;;  %3295 = vrot.lane.b32.xlu1 %v3284_v7, %s4211_s14  ;;  %v7492_v53 = vpop.permute.xlu0 %2863  ;;  %v8886_v57 = vld [vmem:[#allocation166_spill] sm:$0xff]  ;;  %s4124_s29 = sshll.u32 %s4219_s25, 4  ;;  %s4125_s29 = int_to_ptr.vmem [resolvable:$false] %s4124_s29 }
 0x2b9   : > { %v2069_v13 = vadd.f32 %v6296_v17, %v7350_v33  ;;  %v7489_v0 = vadd.f32 %v7048_v54, %v2045_v42  ;;  %v3337_v22 = vrot.slane %v3322_v3, 6  ;;  %v2066_v5 = vadd.f32 %v8885_v56, %v7353_v18  ;;  %v7503_v54 = vpop.permute.xlu1 %2861  ;;  %3339 = vrot.lane.b32.xlu0 %v3329_v28, %s4211_s14  ;;  %v8889_v28 = vld [vmem:[#allocation159_spill] sm:$0xff]  ;;  %p4122_p0 = pnand %p4121_p11, %p9030_p12  ;;  %s4126_s28 = scalar_lea.vmem %s4125_s29, 512 }
 0x2ba   : > { %v2067_v27 = vadd.f32 %v8885_v56, %v7364_v35  ;;  %v3434_v38 = vrot.slane %v3428_v21, 6  ;;  %v3436_v46 = vrot.slane %v3429_v49, 6  ;;  %v7501_v17 = vadd.f32 %v8886_v57, %v2046_v24  ;;  %v8888_v35 = vld [vmem:[#allocation42_spill] sm:$0xff]  ;;  %p4127_p9 = scmp.lt.s32.totalorder %s8150_s16, %s4125_s29  ;;  %p4128_p2 = scmp.lt.s32.totalorder %s4126_s28, %s4120_s0 }
 0x2bb   : > { %v7507_v33 = vmul.f32 %v3453_v47, %v6508_v44  ;;  %v7510_v7 = vmul.f32 %v7393_v19, %v3453_v47  ;;  %v7513_v18 = vmul.f32 %v3193_v14, %v7286_v11  ;;  %v2070_v42 = vadd.f32 %v8888_v35, %v7386_v62  ;;  %v8890_v49 = vld [vmem:[#allocation18_spill] sm:$0xff]  ;;  %p4123_p3 = pneg %p4122_p0 }
 0x2bc   : > { %v2071_v3 = vadd.f32 %v8888_v35, %v7403_v20  ;;  %v3433_v34 = vrot.slane %v7479_v37, 6  ;;  %v7521_v50 = vmul.f32 %v7476_v4, %v3193_v14  ;;  %v7524_v44 = vadd.f32 %v7129_v63, %v2068_v2  ;;  %3299 = vrot.lane.b32.xlu1 %v3288_v30, %s4211_s14  ;;  %v7530_v11 = vpop.permute.xlu0 %2954  ;;  %v8892_v63 = vld [vmem:[#allocation87_spill] sm:$0xff]  ;;  %v8894_v35 = vld [vmem:[#allocation26_spill] sm:$0xff]  ;;  %p4129_p5 = por %p4128_p2, %p4127_p9 }
 0x2bd   : > { %8887 = vst [vmem:[#allocation111_spill] sm:$0xff] %v7513_v18  ;;  %v7527_v21 = vadd.f32 %v8889_v28, %v2069_v13  ;;  %v3338_v62 = vsel %vm3132_vm9, %v3333_v9, %v3337_v22  ;;  %v7535_v20 = vmul.f32 %v6791_v23, %v3193_v14  ;;  %v8891_v24 = vrot.slane %v8890_v49, 4  ;;  %v7551_v9 = vpop.permute.xlu1 %2952  ;;  %3343 = vrot.lane.b32.xlu0 %v3332_v8, %s4211_s14 }
 0x2be   : > { %v8893_v2 = vrot.slane %v8892_v63, 4  ;;  %v7546_v13 = vsel %vm3132_vm9, %v3434_v38, %v3436_v46  ;;  %v7549_v30 = vsel %vm3132_vm9, %v3433_v34, %v3434_v38  ;;  %v8398_v22 = vrot.slane %v7507_v33, 6  ;;  %v8895_v46 = vld [vmem:[#allocation89_spill] sm:$0xff]  ;;  %v7571_v63 = vld [vmem:[#allocation3 + $0x50] sm:$0x7]  ;;  %p4130_p8 = pnand %p4129_p5, %p4123_p3 }
 0x2bf   : > { %v7539_v37 = vadd.f32 %v8891_v24, %v2066_v5  ;;  %v3461_v5 = vrot.slane %v7510_v7, 6  ;;  %v3197_v57 = vmul.f32 %v7327_v25, %v3193_v14  ;;  %v7559_v28 = vadd.f32 %v8894_v35, %v2070_v42  ;;  %8896 = vst [vmem:[#allocation112_spill] sm:$0xff] %v7571_v63 }
 0x2c0   : > { %v7543_v56 = vadd.f32 %v8893_v2, %v2067_v27  ;;  %v7562_v49 = vadd.f32 %v8895_v46, %v2071_v3  ;;  %v3567_v24 = vstv %s7482_s6  ;;  %3341 = vrot.lane.b32.xlu1 %v3330_v12, %s4211_s14  ;;  %v7569_v8 = vpop.permute.xlu0 %2979  ;;  %v3540_v7 = vstv %s3538_s17  ;;  %v7577_v46 = vld [vmem:[#allocation2 + $0x50] sm:$0x7] }
 0x2c1   : > { %v3456_v2 = vmul.f32 %v7571_v63, %v3453_v47  ;;  %v3208_v42 = vrot.slane %v7535_v20, 6  ;;  %v3228_v35 = vstv %s7494_s7  ;;  %v3542_v3 = vmul.f32 %v7327_v25, %v3540_v7  ;;  %8897 = vst [vmem:[#allocation115_spill] sm:$0xff] %v7577_v46  ;;  %v7582_v12 = vpop.permute.xlu1 %2956  ;;  %3347 = vrot.lane.b32.xlu0 %v3336_v43, %s4211_s14 }
 0x2c2   : > { %v3543_v38 = vmul.f32 %v7577_v46, %v3540_v7  ;;  %v3198_v27 = vmul.f32 %v3193_v14, %v7302_v15  ;;  %v3199_v32 = vmul.f32 %v7577_v46, %v3193_v14  ;;  %v7588_v47 = vsel %vm3132_vm9, %v8398_v22, %v3461_v5 }
 0x2c3   : > { %v3210_v20 = vrot.slane %v3197_v57, 6  ;;  %v7593_v25 = vmul.f32 %v7590_v59, %v3567_v24  ;;  %v3569_v55 = vmul.f32 %v7393_v19, %v3567_v24  ;;  %v7597_v15 = vmul.f32 %v7476_v4, %v3540_v7 }
 0x2c4   : > { %v3231_v14 = vmul.f32 %v6791_v23, %v3228_v35  ;;  %v3233_v43 = vmul.f32 %v3228_v35, %v7359_v1  ;;  %v3570_v46 = vmul.f32 %v7571_v63, %v3567_v24  ;;  %3345 = vrot.lane.b32.xlu1 %v7474_v52, %s4211_s14  ;;  %v7604_v57 = vpop.permute.xlu0 %2983  ;;  %v3463_v22 = vrot.slane %v3456_v2, 6 }
 0x2c5   : > { %v8899_v61 = vrot.slane %v7513_v18, 6  ;;  %v7612_v7 = vmul.f32 %v3228_v35, %v7333_v31  ;;  %v7615_v23 = vmul.f32 %v7590_v59, %v3228_v35  ;;  %v3548_v1 = vrot.slane %v3542_v3, 6  ;;  %v7617_v60 = vpop.permute.xlu1 %2981  ;;  %3438 = vrot.lane.b32.xlu0 %v3433_v34, %s4212_s11 }
 0x2c6   : > { %v3550_v4 = vrot.slane %v3543_v38, 6  ;;  %v3212_v24 = vrot.slane %v3198_v27, 6  ;;  %v3214_v51 = vrot.slane %v3199_v32, 6  ;;  %v3575_v2 = vrot.slane %v3569_v55, 6 }
 0x2c7   : > { %v7609_v36 = vsel %vm3132_vm9, %v8899_v61, %v3208_v42  ;;  %v7622_v61 = vmul.f32 %v7393_v19, %v3228_v35  ;;  %v7625_v31 = vmul.f32 %v7571_v63, %v3228_v35  ;;  %v3547_v59 = vrot.slane %v7597_v15, 6  ;;  %v8915_v19 = vld [vmem:[#allocation75_spill] sm:$0xff] }
 0x2c8   : > { %v3243_v18 = vrot.slane %v3231_v14, 6  ;;  %v3247_v3 = vrot.slane %v3233_v43, 6  ;;  %v3577_v38 = vrot.slane %v3570_v46, 6  ;;  %3349 = vrot.lane.b32.xlu1 %v3338_v62, %s4211_s14  ;;  %v7629_v27 = vpop.permute.xlu0 %3068  ;;  %v3464_v34 = vsel %vm3132_vm9, %v3461_v5, %v3463_v22  ;;  %v8903_v5 = vld [vmem:[#allocation47_spill] sm:$0xff]  ;;  %s3903_s14 = sld [smem:[#allocation5 + $0x2a]] }
 0x2c9   : > { %v8900_v32 = vrot.slane %v7521_v50, 6  ;;  %v8405_v52 = vrot.slane %v7612_v7, 6  ;;  %v7640_v15 = vsel %vm3132_vm9, %v3548_v1, %v3550_v4  ;;  %v7643_v46 = vsel %vm3132_vm9, %v3547_v59, %v3548_v1  ;;  %v8904_v14 = vld [vmem:[#allocation43_spill] sm:$0xff]  ;;  %3442 = vrot.lane.b32.xlu0 %v7546_v13, %s4212_s11 }
 0x2ca   : > { %v7646_v62 = vsel %vm3132_vm9, %v3208_v42, %v3212_v24  ;;  %v7649_v22 = vsel %vm3132_vm9, %v3210_v20, %v3214_v51  ;;  %v7654_v43 = vsel %vm332_vm5, %v8904_v14, %v8903_v5  ;;  %v8906_v4 = vrot.slane %v7593_v25, 6  ;;  %v8910_v42 = vld [vmem:[#allocation56_spill] sm:$0xff]  ;;  %v8918_v5 = vld [vmem:[#allocation81_spill] sm:$0xff] }
 0x2cb   : > { %v7635_v55 = vsel %vm3132_vm9, %v8900_v32, %v3210_v20  ;;  %8901 = vst [vmem:[#allocation117_spill] sm:$0xff] %v7646_v62  ;;  %8902 = vst [vmem:[#allocation118_spill] sm:$0xff] %v7649_v22  ;;  %v7656_v32 = vpop.permute.xlu1 %3066  ;;  %v8907_v20 = vld [vmem:[#allocation54_spill] sm:$0xff]  ;;  %v7670_v14 = vsel %vm3132_vm9, %v3243_v18, %v3247_v3  ;;  %v7675_v35 = vsel %vm3132_vm9, %v8405_v52, %v3243_v18  ;;  %v8911_v3 = vld [vmem:[#allocation53_spill] sm:$0xff] }
 0x2cc   : > { %8905 = vst [vmem:[#allocation119_spill] sm:$0xff] %v7654_v43  ;;  %v7663_v1 = vsel %vm3132_vm9, %v8906_v4, %v3575_v2  ;;  %v2358_v24 = vadd.f32 %v8907_v20, %v7451_v40  ;;  %8908 = vst [vmem:[#allocation120_spill] sm:$0xff] %v7670_v14  ;;  %v7678_v13 = vsel %vm3132_vm9, %v3575_v2, %v3577_v38  ;;  %3440 = vrot.lane.b32.xlu1 %v7549_v30, %s4212_s11  ;;  %v7690_v18 = vpop.permute.xlu0 %3093  ;;  %v8912_v38 = vld [vmem:[#allocation55_spill] sm:$0xff]  ;;  %v8922_v14 = vld [vmem:[#allocation25_spill] sm:$0xff] }
 0x2cd   : > { %8909 = vst [vmem:[#allocation121_spill] sm:$0xff] %v7675_v35  ;;  %v2359_v4 = vadd.f32 %v8907_v20, %v7455_v48  ;;  %v2362_v51 = vadd.f32 %v8910_v42, %v7462_v41  ;;  %v2363_v40 = vadd.f32 %v8910_v42, %v7465_v45  ;;  %v2360_v63 = vadd.f32 %v8911_v3, %v7489_v0  ;;  %v8913_v20 = vld [vmem:[#allocation57_spill] sm:$0xff]  ;;  %v8914_v42 = vld [vmem:[#allocation59_spill] sm:$0xff]  ;;  %v8921_v35 = vld [vmem:[#allocation22_spill] sm:$0xff] }
 0x2ce   : > { %v2361_v2 = vadd.f32 %v8911_v3, %v7501_v17  ;;  %v2387_v48 = vadd.f32 %v8912_v38, %v7524_v44  ;;  %v2388_v41 = vadd.f32 %v8912_v38, %v7527_v21  ;;  %v2385_v45 = vadd.f32 %v8913_v20, %v7539_v37  ;;  %3467 = vrot.lane.b32.xlu0 %v7588_v47, %s4212_s11  ;;  %v8916_v21 = vld [vmem:[#allocation82_spill] sm:$0xff] }
 0x2cf   : > { %v2386_v0 = vadd.f32 %v8913_v20, %v7543_v56  ;;  %v2389_v30 = vadd.f32 %v8914_v42, %v7559_v28  ;;  %v2390_v52 = vadd.f32 %v8914_v42, %v7562_v49  ;;  %v2472_v17 = vadd.f32 %v8915_v19, %v2358_v24  ;;  %v7707_v3 = vpop.permute.xlu1 %3070  ;;  %v8917_v56 = vld [vmem:[#allocation158_spill] sm:$0xff]  ;;  %v8919_v49 = vld [vmem:[#allocation20_spill] sm:$0xff] }
 0x2d0   : > { %v2473_v44 = vadd.f32 %v8915_v19, %v2359_v4  ;;  %v2476_v37 = vadd.f32 %v8916_v21, %v2362_v51  ;;  %v2477_v38 = vadd.f32 %v8916_v21, %v2363_v40  ;;  %v2474_v20 = vadd.f32 %v8917_v56, %v2360_v63  ;;  %v8920_v42 = vld [vmem:[#allocation88_spill] sm:$0xff]  ;;  %v7726_v51 = vpop.permute.xlu0 %3097  ;;  %v8924_v4 = vld [vmem:[#allocation17_spill] sm:$0xff]  ;;  %v8926_v21 = vld [vmem:[#allocation90_spill] sm:$0xff] }
 0x2d1   : > { %v2475_v28 = vadd.f32 %v8917_v56, %v2361_v2  ;;  %v2501_v43 = vadd.f32 %v8918_v5, %v2387_v48  ;;  %v2609_v24 = vsel %vm623_vm7, %v8920_v42, %v8919_v49  ;;  %v2610_v47 = vsel %vm623_vm7, %v8922_v14, %v8921_v35  ;;  %v8925_v48 = vld [vmem:[#allocation163_spill] sm:$0xff]  ;;  %v8927_v49 = vld [vmem:[#allocation14_spill] sm:$0xff] }
 0x2d2   : > { %v8923_v19 = vrot.slane %v7507_v33, 6  ;;  %v2502_v63 = vadd.f32 %v8918_v5, %v2388_v41  ;;  %v2499_v40 = vadd.f32 %v8924_v4, %v2385_v45  ;;  %v2500_v2 = vadd.f32 %v8924_v4, %v2386_v0  ;;  %3552 = vrot.lane.b32.xlu0 %v3547_v59, %s4213_s9  ;;  %v8928_v41 = vld [vmem:[#allocation91_spill] sm:$0xff] }
 0x2d3   : > { %v2611_v56 = vsel %vm623_vm7, %v8926_v21, %v8925_v48  ;;  %v2503_v22 = vadd.f32 %v8927_v49, %v2389_v30  ;;  %v2504_v35 = vadd.f32 %v8927_v49, %v2390_v52  ;;  %v2618_v62 = vadd.f32 %v8920_v42, %v2472_v17  ;;  %v8929_v42 = vld [vmem:[#allocation93_spill] sm:$0xff]  ;;  %v8931_v48 = vld [vmem:[#allocation94_spill] sm:$0xff] }
 0x2d4   : > { %3465 = vrot.lane.b32.xlu1 %v8923_v19, %s4212_s11  ;;  %v2659_v33 = vsel %vm623_vm7, %v7211_v6, %v7199_v26  ;;  %v7740_v19 = vpop.permute.xlu1 %3095  ;;  %v2620_v5 = vadd.f32 %v8922_v14, %v2474_v20  ;;  %v2660_v45 = vsel %vm623_vm7, %v7248_v29, %v8928_v41  ;;  %v2619_v0 = vadd.f32 %v2609_v24, %v2473_v44  ;;  %v7753_v59 = vpop.permute.xlu0 %3383  ;;  %v8930_v20 = vld [vmem:[#allocation92_spill] sm:$0xff]  ;;  %v8933_v24 = vld [vmem:[#allocation101_spill] sm:$0xff] }
 0x2d5   : > { %v2621_v30 = vadd.f32 %v2610_v47, %v2475_v28  ;;  %v2622_v52 = vadd.f32 %v8926_v21, %v2476_v37  ;;  %v2668_v17 = vadd.f32 %v7211_v6, %v2499_v40  ;;  %v2661_v26 = vsel %vm623_vm7, %v8929_v42, %v7264_v39  ;;  %v8932_v28 = vld [vmem:[#allocation99_spill] sm:$0xff]  ;;  %v8935_v39 = vld [vmem:[#allocation105_spill] sm:$0xff] }
 0x2d6   : > { %v2623_v4 = vadd.f32 %v2611_v56, %v2477_v38  ;;  %v2670_v14 = vadd.f32 %v7248_v29, %v2501_v43  ;;  %v2815_v44 = vsel %vm727_vm8, %v8931_v48, %v8930_v20  ;;  %v2816_v37 = vsel %vm727_vm8, %v8933_v24, %v8932_v28  ;;  %v8934_v40 = vld [vmem:[#allocation103_spill] sm:$0xff]  ;;  %3556 = vrot.lane.b32.xlu0 %v7640_v15, %s4213_s9 }
 0x2d7   : > { %v2669_v6 = vadd.f32 %v2659_v33, %v2500_v2  ;;  %v2672_v47 = vadd.f32 %v8929_v42, %v2503_v22  ;;  %v2817_v38 = vsel %vm727_vm8, %v8935_v39, %v8934_v40  ;;  %v2671_v29 = vadd.f32 %v2660_v45, %v2502_v63 }
 0x2d8   : > { %3469 = vrot.lane.b32.xlu1 %v3464_v34, %s4212_s11  ;;  %v8936_v34 = vld [vmem:[#allocation104_spill] sm:$0xff]  ;;  %v3382_v43 = vpop.permute.xlu1 %3381  ;;  %v2825_v56 = vadd.f32 %v8930_v20, %v2619_v0  ;;  %v2866_v2 = vsel %vm727_vm8, %v7467_v58, %v7443_v16  ;;  %v2673_v22 = vadd.f32 %v2661_v26, %v2504_v35  ;;  %v2867_v49 = vsel %vm727_vm8, %v7503_v54, %v7492_v53  ;;  %v3409_v15 = vpop.permute.xlu0 %3408  ;;  %s3904_s11 = sld [smem:[#allocation5 + $0x5b]] }
 0x2d9   : > { %v2865_v21 = vsel %vm727_vm8, %v7426_v10, %v8936_v34  ;;  %v2824_v33 = vadd.f32 %v2815_v44, %v2618_v62  ;;  %v2827_v41 = vadd.f32 %v8932_v28, %v2621_v30  ;;  %v2826_v10 = vadd.f32 %v2816_v37, %v2620_v5 }
 0x2da   : > { %v2829_v63 = vadd.f32 %v8934_v40, %v2623_v4  ;;  %v2828_v45 = vadd.f32 %v2817_v38, %v2622_v52  ;;  %v2875_v0 = vadd.f32 %v8936_v34, %v2669_v6  ;;  %v2874_v42 = vadd.f32 %v2865_v21, %v2668_v17  ;;  %3581 = vrot.lane.b32.xlu0 %v7663_v1, %s4213_s9  ;;  %v8942_v21 = vld [vmem:[#allocation111_spill] sm:$0xff] }
 0x2db   : > { %v2877_v58 = vadd.f32 %v7443_v16, %v2671_v29  ;;  %v2876_v35 = vadd.f32 %v2866_v2, %v2670_v14  ;;  %v2879_v26 = vadd.f32 %v7492_v53, %v2673_v22  ;;  %v2878_v54 = vadd.f32 %v2867_v49, %v2672_v47 }
 0x2dc   : > { %3554 = vrot.lane.b32.xlu1 %v7643_v46, %s4213_s9  ;;  %v2963_v62 = vadd.f32 %v7530_v11, %v2826_v10  ;;  %v3386_v30 = vpop.permute.xlu1 %3385  ;;  %v2961_v5 = vadd.f32 %v7551_v9, %v2824_v33  ;;  %v2962_v46 = vadd.f32 %v7551_v9, %v2825_v56  ;;  %v2988_v52 = vadd.f32 %v7569_v8, %v2874_v42  ;;  %v3413_v1 = vpop.permute.xlu0 %3412 }
 0x2dd   : > { %v2989_v17 = vadd.f32 %v7569_v8, %v2875_v0  ;;  %v2964_v16 = vadd.f32 %v7530_v11, %v2827_v41  ;;  %v2965_v4 = vadd.f32 %v7582_v12, %v2828_v45  ;;  %v2966_v53 = vadd.f32 %v7582_v12, %v2829_v63 }
 0x2de   : > { %v3077_v14 = vadd.f32 %v7629_v27, %v2963_v62  ;;  %v8937_v20 = vrot.slane %v7593_v25, 6  ;;  %v3075_v48 = vadd.f32 %v7656_v32, %v2961_v5  ;;  %v3076_v9 = vadd.f32 %v7656_v32, %v2962_v46 }
 0x2df   : > { %v3102_v44 = vadd.f32 %v7690_v18, %v2988_v52  ;;  %v3103_v8 = vadd.f32 %v7690_v18, %v2989_v17  ;;  %v2992_v11 = vadd.f32 %v7604_v57, %v2878_v54  ;;  %v2993_v28 = vadd.f32 %v7604_v57, %v2879_v26  ;;  %v8949_v26 = vld [vmem:[#allocation120_spill] sm:$0xff] }
 0x2e0   : > { %3579 = vrot.lane.b32.xlu1 %v8937_v20, %s4213_s9  ;;  %v3078_v12 = vadd.f32 %v7629_v27, %v2964_v16  ;;  %v3079_v24 = vadd.f32 %v7707_v3, %v2965_v4  ;;  %v3411_v37 = vpop.permute.xlu1 %3410  ;;  %v2990_v25 = vadd.f32 %v7617_v60, %v2876_v35  ;;  %v2991_v6 = vadd.f32 %v7617_v60, %v2877_v58  ;;  %v8950_v16 = vld [vmem:[#allocation121_spill] sm:$0xff] }
 0x2e1   : > { %v8938_v47 = vrot.slane %v7625_v31, 6  ;;  %v8939_v32 = vrot.slane %v7622_v61, 6  ;;  %v8941_v39 = vrot.slane %v7615_v23, 6  ;;  %v3080_v27 = vadd.f32 %v7707_v3, %v2966_v53  ;;  %v3498_v31 = vpop.permute.xlu0 %3497 }
 0x2e2   : > { %v3106_v38 = vadd.f32 %v7726_v51, %v2992_v11  ;;  %v3107_v34 = vadd.f32 %v7726_v51, %v2993_v28  ;;  %v3224_v60 = vadd.f32 %v7609_v36, %v3077_v14  ;;  %v8943_v29 = vrot.slane %v8942_v21, 6  ;;  %v8956_v21 = vld [vmem:[#allocation95_spill] sm:$0xff] }
 0x2e3   : > { %v3250_v40 = vsel %vm3132_vm9, %v8939_v32, %v8938_v47  ;;  %v8940_v18 = vmov %v8939_v32  ;;  %v8944_v61 = vrot.slane %v7521_v50, 6  ;;  %v8945_v22 = vrot.slane %v7612_v7, 6  ;;  %v8948_v7 = vld [vmem:[#allocation118_spill] sm:$0xff]  ;;  %v8953_v32 = vld [vmem:[#allocation119_spill] sm:$0xff] }
 0x2e4   : > { %v3246_v57 = vsel %vm3132_vm9, %v8941_v39, %v8940_v18  ;;  %3583 = vrot.lane.b32.xlu1 %v7678_v13, %s4213_s9  ;;  %v3222_v56 = vadd.f32 %v8943_v29, %v3075_v48  ;;  %v8946_v3 = vmov %v8941_v39  ;;  %v3104_v51 = vadd.f32 %v7740_v19, %v2990_v25  ;;  %v8947_v13 = vld [vmem:[#allocation117_spill] sm:$0xff]  ;;  %v3496_v63 = vpop.permute.xlu1 %3495  ;;  %v8955_v18 = vld [vmem:[#allocation47_spill] sm:$0xff]  ;;  %s3109_s9 = smul.f32 0.25, %s3903_s14 }
 0x2e5   : > { %v3223_v2 = vadd.f32 %v8944_v61, %v3076_v9  ;;  %v3257_v49 = vadd.f32 %v8945_v22, %v3102_v44  ;;  %v3258_v33 = vadd.f32 %v8946_v3, %v3103_v8  ;;  %v3105_v36 = vadd.f32 %v7740_v19, %v2991_v6  ;;  %v3523_v62 = vpop.permute.xlu0 %3522  ;;  %v8957_v29 = vld [vmem:[#allocation29_spill] sm:$0xff]  ;;  %v8958_v61 = vld [vmem:[#allocation108_spill] sm:$0xff] }
 0x2e6   : > { %v3225_v41 = vadd.f32 %v7635_v55, %v3078_v12  ;;  %v3226_v10 = vadd.f32 %v8947_v13, %v3079_v24  ;;  %v3390_v45 = vadd.f32 %v3382_v43, %v3222_v56  ;;  %v3392_v58 = vadd.f32 %v7753_v59, %v3224_v60  ;;  %v8951_v12 = vld [vmem:[#allocation69_spill] sm:$0xff] }
 0x2e7   : > { %v3391_v0 = vadd.f32 %v3382_v43, %v3223_v2  ;;  %v3417_v42 = vadd.f32 %v3409_v15, %v3257_v49  ;;  %v3418_v50 = vadd.f32 %v3409_v15, %v3258_v33  ;;  %v3227_v35 = vadd.f32 %v8948_v7, %v3080_v27  ;;  %v8959_v2 = vld [vmem:[#allocation79_spill] sm:$0xff]  ;;  %v8960_v49 = vld [vmem:[#allocation109_spill] sm:$0xff]  ;;  %v8967_v7 = vld [vmem:[#allocation100_spill] sm:$0xff] }
 0x2e8   : > { %v3261_v23 = vadd.f32 %v8949_v26, %v3106_v38  ;;  %v3262_v54 = vadd.f32 %v3250_v40, %v3107_v34  ;;  %v3504_v5 = vadd.f32 %v3496_v63, %v3390_v45  ;;  %v3394_v55 = vadd.f32 %v3386_v30, %v3226_v10  ;;  %v3500_v43 = vpop.permute.xlu1 %3499  ;;  %v8954_v40 = vld [vmem:[#allocation107_spill] sm:$0xff]  ;;  %v8961_v3 = vld [vmem:[#allocation85_spill] sm:$0xff] }
 0x2e9   : > { %v3505_v46 = vadd.f32 %v3496_v63, %v3391_v0  ;;  %v3531_v19 = vadd.f32 %v3523_v62, %v3417_v42  ;;  %v3532_v52 = vadd.f32 %v3523_v62, %v3418_v50  ;;  %v3395_v17 = vadd.f32 %v3386_v30, %v3227_v35  ;;  %v3527_v28 = vpop.permute.xlu0 %3526  ;;  %v8952_v30 = vld [vmem:[#allocation106_spill] sm:$0xff]  ;;  %v8965_v42 = vld [vmem:[#allocation84_spill] sm:$0xff]  ;;  %v8966_v50 = vld [vmem:[#allocation147_spill] sm:$0xff] }
 0x2ea   : > { %v3259_v4 = vadd.f32 %v8950_v16, %v3104_v51  ;;  %v3260_v53 = vadd.f32 %v3246_v57, %v3105_v36  ;;  %v3421_v14 = vadd.f32 %v3413_v1, %v3261_v23  ;;  %v3422_v15 = vadd.f32 %v3413_v1, %v3262_v54  ;;  %v8962_v51 = vld [vmem:[#allocation51_spill] sm:$0xff]  ;;  %v8963_v36 = vld [vmem:[#allocation52_spill] sm:$0xff]  ;;  %v8968_v35 = vld [vmem:[#allocation66_spill] sm:$0xff] }
 0x2eb   : > { %v3600_v20 = vadd.f32 %v3531_v19, %v3504_v5  ;;  %v3601_v48 = vadd.f32 %v3532_v52, %v3505_v46  ;;  %v3393_v9 = vadd.f32 %v7753_v59, %v3225_v41  ;;  %v3508_v11 = vadd.f32 %v3500_v43, %v3394_v55  ;;  %v8970_v54 = vld [vmem:[#allocation44_spill] sm:$0xff]  ;;  %v8971_v62 = vld [vmem:[#allocation37_spill] sm:$0xff] }
 0x2ec   : > { %v3419_v44 = vadd.f32 %v3411_v37, %v3259_v4  ;;  %v3420_v8 = vadd.f32 %v3411_v37, %v3260_v53  ;;  %v2103_v24 = vrot.slane %v8951_v12, 4  ;;  %v3509_v25 = vadd.f32 %v3500_v43, %v3395_v17  ;;  %v3525_v37 = vpop.permute.xlu1 %3524  ;;  %v8972_v52 = vld [vmem:[#allocation73_spill] sm:$0xff]  ;;  %v8974_v43 = vld [vmem:[#allocation23_spill] sm:$0xff]  ;;  %v9018_v12 = vld [vmem:[#allocation46_spill] sm:$0xff] }
 0x2ed   : > { %v3535_v6 = vadd.f32 %v3527_v28, %v3421_v14  ;;  %v3536_v47 = vadd.f32 %v3527_v28, %v3422_v15  ;;  %3614 = vrot.lane.b32.xlu1 %v3601_v48, %s4215_s18  ;;  %3612 = vrot.lane.b32.xlu0 %v3600_v20, %s4215_s18  ;;  %v2328_v1 = vadd.f32 %v8953_v32, %v8952_v30  ;;  %v7858_v13 = vpop.permute.xlu0 %2549  ;;  %v8969_v26 = vrot.slane %v8968_v35, 4  ;;  %v8973_v53 = vld [vmem:[#allocation13_spill] sm:$0xff]  ;;  %v8976_v48 = vld [vmem:[#allocation64_spill] sm:$0xff] }
 0x2ee   : > { %v2329_v39 = vadd.f32 %v8955_v18, %v8954_v40  ;;  %v3506_v59 = vadd.f32 %v3498_v31, %v3392_v58  ;;  %v3507_v57 = vadd.f32 %v3498_v31, %v3393_v9  ;;  %v3533_v34 = vadd.f32 %v3525_v37, %v3419_v44  ;;  %v8964_v31 = vld [vmem:[#allocation74_spill] sm:$0xff]  ;;  %v8975_v15 = vld [vmem:[#allocation21_spill] sm:$0xff]  ;;  %v8980_v30 = vld [vmem:[#allocation80_spill] sm:$0xff] }
 0x2ef   : > { %v3604_v27 = vadd.f32 %v3535_v6, %v3508_v11  ;;  %v3605_v38 = vadd.f32 %v3536_v47, %v3509_v25  ;;  %v3534_v60 = vadd.f32 %v3525_v37, %v3420_v8  ;;  %v1994_v56 = vadd.f32 %v8957_v29, %v8956_v21  ;;  %v8978_v8 = vld [vmem:[#allocation78_spill] sm:$0xff]  ;;  %v8981_v40 = vld [vmem:[#allocation60_spill] sm:$0xff] }
 0x2f0   : > { %v2156_v22 = vadd.f32 %v8959_v2, %v8958_v61  ;;  %v2157_v33 = vadd.f32 %v8961_v3, %v8960_v49  ;;  %v2321_v41 = vsel %vm332_vm5, %v8963_v36, %v8962_v51  ;;  %v2442_v10 = vadd.f32 %v8964_v31, %v2328_v1  ;;  %v2548_v19 = vpop.permute.xlu1 %2547  ;;  %v8979_v25 = vld [vmem:[#allocation70_spill] sm:$0xff]  ;;  %v8986_v36 = vld [vmem:[#allocation45_spill] sm:$0xff] }
 0x2f1   : > { %v2443_v63 = vadd.f32 %v8964_v31, %v2329_v39  ;;  %v3602_v45 = vadd.f32 %v3533_v34, %v3506_v59  ;;  %v3603_v0 = vadd.f32 %v3534_v60, %v3507_v57  ;;  %v1746_v58 = vadd.f32 %v8966_v50, %v8965_v42  ;;  %v2701_v28 = vpop.permute.xlu0 %2700  ;;  %v8982_v18 = vld [vmem:[#allocation114_spill] sm:$0xff]  ;;  %v8992_v50 = vld [vmem:[#allocation113_spill] sm:$0xff] }
 0x2f2   : > { %v2118_v23 = vadd.f32 %v8969_v26, %v8967_v7  ;;  %v2269_v5 = vsel %vm332_vm5, %v8971_v62, %v8970_v54  ;;  %v2333_v46 = vadd.f32 %v8962_v51, %v2157_v33  ;;  %v2105_v55 = vrot.slane %v8972_v52, 4  ;;  %v8983_v57 = vld [vmem:[#allocation34_spill] sm:$0xff]  ;;  %v8993_v7 = vld [vmem:[#allocation72_spill] sm:$0xff] }
 0x2f3   : > { %v2332_v17 = vadd.f32 %v2321_v41, %v2156_v22  ;;  %v7872_v16 = vadd.f32 %v2548_v19, %v2442_v10  ;;  %v7874_v4 = vadd.f32 %v2548_v19, %v2443_v63  ;;  %3616 = vrot.lane.b32.xlu0 %v3602_v45, %s4215_s18  ;;  %3618 = vrot.lane.b32.xlu1 %v3603_v0, %s4215_s18  ;;  %v8977_v9 = vrot.slane %v8976_v48, 4  ;;  %v8984_v21 = vld [vmem:[#allocation62_spill] sm:$0xff]  ;;  %v8987_v41 = vld [vmem:[#allocation97_spill] sm:$0xff]  ;;  %v8988_v10 = vld [vmem:[#allocation151_spill] sm:$0xff] }
 0x2f4   : > { %v1745_v14 = vadd.f32 %v8974_v43, %v8973_v53  ;;  %v1901_v20 = vadd.f32 %v8975_v15, %v1746_v58  ;;  %v2109_v11 = vrot.slane %v8978_v8, 4  ;;  %v2107_v6 = vrot.slane %v8979_v25, 4  ;;  %v2552_v60 = vpop.permute.xlu1 %2551  ;;  %v8985_v2 = vld [vmem:[#allocation126_spill] sm:$0xff]  ;;  %v8989_v63 = vld [vmem:[#allocation148_spill] sm:$0xff]  ;;  %v8990_v45 = vld [vmem:[#allocation83_spill] sm:$0xff] }
 0x2f5   : > { %v2117_v44 = vadd.f32 %v8977_v9, %v1994_v56  ;;  %v2279_v47 = vadd.f32 %v8970_v54, %v2118_v23  ;;  %v2446_v32 = vadd.f32 %v8980_v30, %v2332_v17  ;;  %v2447_v1 = vadd.f32 %v8980_v30, %v2333_v46  ;;  %v2705_v51 = vpop.permute.xlu0 %2704  ;;  %v8991_v42 = vld [vmem:[#allocation58_spill] sm:$0xff]  ;;  %v8994_v46 = vld [vmem:[#allocation48_spill] sm:$0xff]  ;;  %v8995_v19 = vld [vmem:[#allocation41_spill] sm:$0xff] }
 0x2f6   : > { %v1493_v39 = vadd.f32 %v8982_v18, %v8981_v40  ;;  %v1900_v59 = vadd.f32 %v8975_v15, %v1745_v14  ;;  %v1999_v37 = vadd.f32 %v8983_v57, %v1901_v20  ;;  %v2110_v3 = vsel %vm2100_vm4, %v2105_v55, %v2109_v11  ;;  %v8996_v8 = vld [vmem:[#allocation145_spill] sm:$0xff]  ;;  %v8997_v11 = vld [vmem:[#allocation142_spill] sm:$0xff] }
 0x2f7   : > { %v2278_v34 = vadd.f32 %v2269_v5, %v2117_v44  ;;  %v2416_v29 = vadd.f32 %v8984_v21, %v2279_v47  ;;  %v7893_v56 = vadd.f32 %v2552_v60, %v2446_v32  ;;  %v7895_v61 = vadd.f32 %v2552_v60, %v2447_v1  ;;  %3620 = vrot.lane.b32.xlu0 %v3604_v27, %s4215_s18  ;;  %v8999_v32 = vld [vmem:[#allocation125_spill] sm:$0xff]  ;;  %v9003_v60 = vld [vmem:[#allocation76_spill] sm:$0xff] }
 0x2f8   : > { %3622 = vrot.lane.b32.xlu1 %v3605_v38, %s4215_s18  ;;  %v1607_v22 = vadd.f32 %v8985_v2, %v1493_v39  ;;  %v1998_v49 = vadd.f32 %v8983_v57, %v1900_v59  ;;  %v1329_v31 = vadd.f32 %v8987_v41, %v8986_v36  ;;  %v1775_v27 = vsel %vm727_vm8, %v8989_v63, %v8988_v10  ;;  %v2703_v62 = vpop.permute.xlu1 %2702  ;;  %v9000_v59 = vld [vmem:[#allocation36_spill] sm:$0xff]  ;;  %s4218_s18 = smov 3  }
 0x2f9   : > { %v2415_v33 = vadd.f32 %v8984_v21, %v2278_v34  ;;  %v2108_v38 = vsel %vm2100_vm4, %v2103_v24, %v2107_v6  ;;  %v2530_v0 = vadd.f32 %v8990_v45, %v2416_v29  ;;  %v1465_v58 = vadd.f32 %v8992_v50, %v8991_v42  ;;  %v2709_v44 = vpop.permute.xlu0 %2708  ;;  %v8998_v6 = vld [vmem:[#allocation168_spill] sm:$0xff] }
 0x2fa   : > { %v1606_v26 = vadd.f32 %v8985_v2, %v8993_v7  ;;  %v1786_v23 = vadd.f32 %v8988_v10, %v1607_v22  ;;  %v2122_v5 = vadd.f32 %v2110_v3, %v1999_v37  ;;  %v2271_v17 = vsel %vm332_vm5, %v8995_v19, %v8994_v46  ;;  %v9001_v37 = vld [vmem:[#allocation77_spill] sm:$0xff]  ;;  %v9006_v10 = vld [vmem:[#allocation71_spill] sm:$0xff] }
 0x2fb   : > { %v2529_v54 = vadd.f32 %v8990_v45, %v2415_v33  ;;  %v2712_v53 = vsel %vm727_vm8, %v2701_v28, %v2703_v62  ;;  %v7924_v43 = vadd.f32 %v2703_v62, %v2530_v0  ;;  %v1466_v14 = vadd.f32 %v8992_v50, %v1329_v31  ;;  %v9005_v2 = vld [vmem:[#allocation61_spill] sm:$0xff]  ;;  %v9010_v0 = vld [vmem:[#allocation86_spill] sm:$0xff]  ;;  %v9011_v50 = vld [vmem:[#allocation167_spill] sm:$0xff] }
 0x2fc   : > { %v1785_v15 = vadd.f32 %v1775_v27, %v1606_v26  ;;  %v2121_v20 = vadd.f32 %v2108_v38, %v1998_v49  ;;  %v1733_v25 = vsel %vm727_vm8, %v8997_v11, %v8996_v8  ;;  %v1922_v47 = vadd.f32 %v8998_v6, %v1786_v23  ;;  %v2707_v39 = vpop.permute.xlu1 %2706  ;;  %v9008_v27 = vld [vmem:[#allocation65_spill] sm:$0xff]  ;;  %v9013_v62 = vld [vmem:[#allocation50_spill] sm:$0xff] }
 0x2fd   : > { %v7927_v9 = vadd.f32 %v2712_v53, %v2529_v54  ;;  %v2283_v30 = vadd.f32 %v8994_v46, %v2122_v5  ;;  %v1579_v1 = vadd.f32 %v8999_v32, %v1465_v58  ;;  %v1580_v28 = vadd.f32 %v8999_v32, %v1466_v14  ;;  %v2751_v31 = vpop.permute.xlu0 %2750  ;;  %v9012_v54 = vld [vmem:[#allocation49_spill] sm:$0xff] }
 0x2fe   : > { %v1921_v40 = vadd.f32 %v8998_v6, %v1785_v15  ;;  %v2282_v18 = vadd.f32 %v2271_v17, %v2121_v20  ;;  %v2020_v57 = vadd.f32 %v9000_v59, %v1922_v47  ;;  %v9002_v34 = vrot.slane %v9001_v37, 4  ;;  %v9014_v15 = vld [vmem:[#allocation31_spill] sm:$0xff] }
 0x2ff   : > { %v9004_v21 = vrot.slane %v9003_v60, 4  ;;  %v2420_v22 = vadd.f32 %v9005_v2, %v2283_v30  ;;  %v2713_v49 = vsel %vm727_vm8, %v2705_v51, %v2707_v39  ;;  %v1743_v3 = vadd.f32 %v1733_v25, %v1579_v1  ;;  %v9017_v1 = vld [vmem:[#allocation68_spill] sm:$0xff] }
 0x300   : > { %v1744_v33 = vadd.f32 %v8996_v8, %v1580_v28  ;;  %v2019_v36 = vadd.f32 %v9000_v59, %v1921_v40  ;;  %v2419_v41 = vadd.f32 %v9005_v2, %v2282_v18  ;;  %v9007_v63 = vrot.slane %v9006_v10, 4  ;;  %v2711_v26 = vpop.permute.xlu1 %2710  ;;  %v9019_v59 = vld [vmem:[#allocation39_spill] sm:$0xff] }
 0x301   : > { %v2141_v29 = vsel %vm2100_vm4, %v9004_v21, %v9002_v34  ;;  %v9009_v38 = vrot.slane %v9008_v27, 4  ;;  %v2534_v42 = vadd.f32 %v9010_v0, %v2420_v22  ;;  %v1898_v58 = vadd.f32 %v9011_v50, %v1743_v3  ;;  %v2755_v14 = vpop.permute.xlu0 %2754 }
 0x302   : > { %v1899_v51 = vadd.f32 %v9011_v50, %v1744_v33  ;;  %v2533_v7 = vadd.f32 %v9010_v0, %v2419_v41  ;;  %v2155_v23 = vadd.f32 %v2141_v29, %v2020_v57  ;;  %v2320_v5 = vsel %vm332_vm5, %v9013_v62, %v9012_v54 }
 0x303   : > { %v2139_v45 = vsel %vm2100_vm4, %v9009_v38, %v9007_v63  ;;  %v2714_v46 = vsel %vm727_vm8, %v2709_v44, %v2711_v26  ;;  %v2726_v19 = vadd.f32 %v2711_v26, %v2534_v42  ;;  %v1996_v20 = vadd.f32 %v9014_v15, %v1898_v58 }
 0x304   : > { %v2154_v17 = vadd.f32 %v2139_v45, %v2019_v36  ;;  %v2725_v53 = vadd.f32 %v2714_v46, %v2533_v7  ;;  %v1997_v8 = vadd.f32 %v9014_v15, %v1899_v51  ;;  %v2331_v11 = vadd.f32 %v9012_v54, %v2155_v23  ;;  %v2753_v32 = vpop.permute.xlu1 %2752 }
 0x305   : > { %v9015_v25 = vrot.slane %v8976_v48, 4  ;;  %v9016_v44 = vrot.slane %v8968_v35, 4  ;;  %v2762_v40 = vsel %vm727_vm8, %v2751_v31, %v2753_v32  ;;  %v7977_v18 = vadd.f32 %v2753_v32, %v7874_v4  ;;  %v2759_v35 = vpop.permute.xlu0 %2758  ;;  %v9021_v31 = vld [vmem:[#allocation161_spill] sm:$0xff] }
 0x306   : > { %v2330_v30 = vadd.f32 %v2320_v5, %v2154_v17  ;;  %v2445_v28 = vadd.f32 %v9017_v1, %v2331_v11  ;;  %v2270_v48 = vsel %vm332_vm5, %v9019_v59, %v9018_v12  ;;  %v7984_v52 = vadd.f32 %v2762_v40, %v7872_v16  ;;  %v9020_v16 = vld [vmem:[#allocation63_spill] sm:$0xff]  ;;  %v4078_v32 = vld [vmem:[#allocation3] sm:$0xff]  ;;  %v9022_v59 = vld [vmem:[#allocation170_spill] sm:$0xff] }
 0x307   : > { %v2104_v6 = vsel %vm2100_vm4, %v9015_v25, %v2103_v24  ;;  %v2106_v47 = vsel %vm2100_vm4, %v9016_v44, %v2105_v55  ;;  %v3119_v25 = vstv %s3109_s9 }
 0x308   : > { %v2444_v24 = vadd.f32 %v9017_v1, %v2330_v30  ;;  %v2119_v55 = vadd.f32 %v2104_v6, %v1996_v20  ;;  %v2120_v57 = vadd.f32 %v2106_v47, %v1997_v8  ;;  %v2559_v37 = vadd.f32 %v7858_v13, %v2445_v28  ;;  %v2757_v60 = vpop.permute.xlu1 %2756  ;;  %v4077_v47 = vld [vmem:[#allocation2 + $0x18] sm:$0xf8]  ;;  %v4079_v28 = vld [vmem:[#allocation2 + $0x48] sm:$0x7] }
 0x309   : > { %v2763_v29 = vsel %vm727_vm8, %v2755_v14, %v2757_v60  ;;  %v7994_v3 = vpop.permute.xlu0 %2895  ;;  %v3155_v6 = vstv %s3904_s11  ;;  %v3120_v30 = vmul.f32 %v4077_v47, %v3119_v25  ;;  %v3122_v1 = vmul.f32 %v4078_v32, %v3119_v25 }
 0x30a   : > { %v2558_v34 = vadd.f32 %v7858_v13, %v2444_v24  ;;  %v2280_v21 = vadd.f32 %v2270_v48, %v2119_v55  ;;  %v2281_v4 = vadd.f32 %v9018_v12, %v2120_v57  ;;  %v7990_v2 = vadd.f32 %v2757_v60, %v2559_v37  ;;  %v9024_v57 = vld [vmem:[#allocation115_spill] sm:$0xff] }
 0x30b   : > { %v3124_v40 = vmul.f32 %v4079_v28, %v3119_v25  ;;  %v8054_v48 = vmul.f32 %v3155_v6, %v9022_v59  ;;  %v3158_v24 = vmul.f32 %v4078_v32, %v3155_v6  ;;  %v3125_v37 = vmul.f32 %v9024_v57, %v3119_v25  ;;  %v9029_v28 = vld [vmem:[#allocation112_spill] sm:$0xff] }
 0x30c   : > { %v7992_v22 = vadd.f32 %v2763_v29, %v2558_v34  ;;  %v2417_v33 = vadd.f32 %v9020_v16, %v2280_v21  ;;  %v2418_v36 = vadd.f32 %v9020_v16, %v2281_v4  ;;  %v2761_v41 = vpop.permute.xlu1 %2760  ;;  %v9025_v34 = vld [vmem:[#allocation116_spill] sm:$0xff]  ;;  %v9026_v21 = vld [vmem:[#allocation102_spill] sm:$0xff]  ;;  %v3161_v59 = vmul.f32 %v9029_v28, %v3155_v6 }
 0x30d   : > { %v2764_v63 = vsel %vm727_vm8, %v2759_v35, %v2761_v41  ;;  %v8002_v27 = vadd.f32 %v2761_v41, %v7895_v61  ;;  %v2900_v45 = vpop.permute.xlu0 %2899  ;;  %v9023_v35 = vld [vmem:[#allocation96_spill] sm:$0xff]  ;;  %v8059_v60 = vmul.f32 %v9025_v34, %v3155_v6  ;;  %v3159_v4 = vmul.f32 %v9026_v21, %v3155_v6  ;;  %v9027_v16 = vld [vmem:[#allocation110_spill] sm:$0xff] }
 0x30e   : > { %v2531_v10 = vadd.f32 %v9021_v31, %v2417_v33  ;;  %v2532_v13 = vadd.f32 %v9021_v31, %v2418_v36  ;;  %v8005_v38 = vadd.f32 %v2764_v63, %v7893_v56  ;;  %v8007_v50 = vadd.f32 %v2900_v45, %v2725_v53 }
 0x30f   : > { %v8009_v58 = vadd.f32 %v2900_v45, %v2726_v19  ;;  %v3123_v55 = vmul.f32 %v9023_v35, %v3119_v25  ;;  %v3121_v33 = vmul.f32 %v9027_v16, %v3119_v25  ;;  %v3133_v36 = vrot.slane %v3120_v30, 6 }
 0x310   : > { %v2723_v0 = vadd.f32 %v2713_v49, %v2531_v10  ;;  %v2724_v42 = vadd.f32 %v2707_v39, %v2532_v13  ;;  %v2898_v51 = vpop.permute.xlu1 %2897  ;;  %v3135_v41 = vrot.slane %v3122_v1, 6  ;;  %v3139_v31 = vrot.slane %v3124_v40, 6 }
 0x311   : > { %v8015_v23 = vpop.permute.xlu0 %2924  ;;  %v3168_v13 = vrot.slane %v8054_v48, 6  ;;  %v3170_v63 = vrot.slane %v3158_v24, 6  ;;  %v3137_v45 = vrot.slane %v3123_v55, 6  ;;  %v3169_v47 = vrot.slane %v8059_v60, 6 }
 0x312   : > { %v8011_v7 = vadd.f32 %v2898_v51, %v2723_v0  ;;  %v8013_v26 = vadd.f32 %v2898_v51, %v2724_v42  ;;  %v3141_v0 = vrot.slane %v3125_v37, 6  ;;  %v9028_v42 = vld [vmem:[#allocation98_spill] sm:$0xff]  ;;  %v3172_v32 = vrot.slane %v3159_v4, 6 }
 0x313   : > { %v3160_v51 = vmul.f32 %v3155_v6, %v9028_v42  ;;  %v3134_v25 = vrot.slane %v3121_v33, 6  ;;  %v3140_v30 = vsel %vm3132_vm9, %v3135_v41, %v3139_v31  ;;  %v3136_v1 = vsel %vm3132_vm9, %v3133_v36, %v3135_v41 }
 0x314   : > { %v8017_v54 = vpop.permute.xlu1 %2922  ;;  %v2904_v48 = vadd.f32 %v7994_v3, %v7927_v9  ;;  %v3171_v24 = vsel %vm3132_vm9, %v3168_v13, %v3170_v63  ;;  %v3142_v57 = vsel %vm3132_vm9, %v3137_v45, %v3141_v0  ;;  %v2905_v6 = vadd.f32 %v7994_v3, %v7924_v43 }
 0x315   : > { %v8019_v61 = vpop.permute.xlu0 %3009  ;;  %v3138_v55 = vsel %vm3132_vm9, %v3134_v25, %v3137_v45  ;;  %v3174_v37 = vrot.slane %v3160_v51, 6  ;;  %v3173_v34 = vsel %vm3132_vm9, %v3169_v47, %v3172_v32  ;;  %v3176_v60 = vrot.slane %v3161_v59, 6 }
 0x316   : > { %v2933_v4 = vadd.f32 %v8015_v23, %v7992_v22  ;;  %v2934_v9 = vadd.f32 %v8015_v23, %v7990_v2  ;;  %v2931_v16 = vadd.f32 %v8017_v54, %v7984_v52  ;;  %v3018_v33 = vadd.f32 %v8019_v61, %v2904_v48 }
 0x317   : > { %v2932_v41 = vadd.f32 %v8017_v54, %v7977_v18  ;;  %v3019_v43 = vadd.f32 %v8019_v61, %v2905_v6  ;;  %v3177_v0 = vsel %vm3132_vm9, %v3172_v32, %v3176_v60 }
 0x318   : > { %v8021_v56 = vpop.permute.xlu1 %2926  ;;  %v3149_v45 = vadd.f32 %v3133_v36, %v3018_v33 }
 0x319   : > { %v8023_v62 = vpop.permute.xlu0 %3013  ;;  %v2935_v2 = vadd.f32 %v8021_v56, %v8005_v38  ;;  %v2936_v54 = vadd.f32 %v8021_v56, %v8002_v27  ;;  %v3150_v42 = vadd.f32 %v3134_v25, %v3019_v43 }
 0x31a   : > { %v3022_v3 = vadd.f32 %v8023_v62, %v8007_v50  ;;  %v3023_v31 = vadd.f32 %v8023_v62, %v8009_v58  ;;  %v3175_v58 = vsel %vm3132_vm9, %v3170_v63, %v3174_v37 }
 0x31c   : > { %v8025_v39 = vpop.permute.xlu1 %3011  ;;  %v3154_v51 = vadd.f32 %v3142_v57, %v3023_v31 }
 0x31d   : > { %v8027_v49 = vpop.permute.xlu0 %3038  ;;  %v3020_v52 = vadd.f32 %v8025_v39, %v8011_v7  ;;  %v3021_v23 = vadd.f32 %v8025_v39, %v8013_v26  ;;  %v3153_v26 = vadd.f32 %v3140_v30, %v3022_v3 }
 0x31e   : > { %v3047_v18 = vadd.f32 %v8027_v49, %v2933_v4  ;;  %v3048_v50 = vadd.f32 %v8027_v49, %v2934_v9 }
 0x31f   : > { %v3151_v56 = vadd.f32 %v3136_v1, %v3020_v52  ;;  %v3152_v28 = vadd.f32 %v3138_v55, %v3021_v23 }
 0x320   : > { %v8029_v5 = vpop.permute.xlu1 %3036  ;;  %v3186_v49 = vadd.f32 %v3171_v24, %v3047_v18  ;;  %v3187_v59 = vadd.f32 %v3173_v34, %v3048_v50 }
 0x321   : > { %v8031_v46 = vpop.permute.xlu0 %3289  ;;  %v3045_v61 = vadd.f32 %v8029_v5, %v2931_v16  ;;  %v3046_v38 = vadd.f32 %v8029_v5, %v2932_v41 }
 0x323   : > { %v3184_v36 = vadd.f32 %v3168_v13, %v3045_v61  ;;  %v3185_v1 = vadd.f32 %v3169_v47, %v3046_v38 }
 0x324   : > { %v8033_v19 = vpop.permute.xlu1 %3040 }
 0x325   : > { %v8035_v17 = vpop.permute.xlu0 %3293  ;;  %v3049_v7 = vadd.f32 %v8033_v19, %v2935_v2  ;;  %v3050_v39 = vadd.f32 %v8033_v19, %v2936_v54 }
 0x327   : > { %v3188_v25 = vadd.f32 %v3175_v58, %v3049_v7  ;;  %v3189_v24 = vadd.f32 %v3177_v0, %v3050_v39 }
 0x328   : > { %v8037_v53 = vpop.permute.xlu1 %3291 }
 0x329   : > { %v8039_v14 = vpop.permute.xlu0 %3297  ;;  %v3301_v63 = vsel %vm332_vm5, %v8031_v46, %v8037_v53  ;;  %v3311_v48 = vadd.f32 %v8037_v53, %v3150_v42 }
 0x32a   : > { %v3310_v13 = vadd.f32 %v3301_v63, %v3149_v45 }
 0x32c   : > { %v8041_v15 = vpop.permute.xlu1 %3295 }
 0x32d   : > { %v8043_v20 = vpop.permute.xlu0 %3339  ;;  %v3302_v5 = vsel %vm332_vm5, %v8035_v17, %v8041_v15  ;;  %v3313_v17 = vadd.f32 %v8041_v15, %v3152_v28 }
 0x32e   : > { %v3312_v57 = vadd.f32 %v3302_v5, %v3151_v56 }
 0x330   : > { %v8045_v8 = vpop.permute.xlu1 %3299 }
 0x331   : > { %v8047_v11 = vpop.permute.xlu0 %3343  ;;  %v3303_v30 = vsel %vm332_vm5, %v8039_v14, %v8045_v8 }
 0x332   : > { %v3314_v34 = vadd.f32 %v3303_v30, %v3153_v26 }
 0x334   : > { %v8049_v44 = vpop.permute.xlu1 %3341 }
 0x335   : > { %v8051_v12 = vpop.permute.xlu0 %3347  ;;  %v3351_v46 = vsel %vm332_vm5, %v8043_v20, %v8049_v44  ;;  %v3361_v47 = vadd.f32 %v8049_v44, %v3185_v1 }
 0x336   : > { %v3360_v14 = vadd.f32 %v3351_v46, %v3184_v36 }
 0x338   : > { %v8062_v29 = vpop.permute.xlu1 %3345 }
 0x339   : > { %v8065_v10 = vpop.permute.xlu0 %3438  ;;  %v3352_v19 = vsel %vm332_vm5, %v8047_v11, %v8062_v29  ;;  %v3315_v11 = vadd.f32 %v8045_v8, %v3154_v51  ;;  %v3363_v37 = vadd.f32 %v8062_v29, %v3187_v59 }
 0x33a   : > { %v3362_v6 = vadd.f32 %v3352_v19, %v3186_v49  ;;  %v3447_v16 = vadd.f32 %v8065_v10, %v3310_v13  ;;  %v3448_v8 = vadd.f32 %v8065_v10, %v3311_v48 }
 0x33c   : > { %v8071_v35 = vpop.permute.xlu1 %3349 }
 0x33d   : > { %v8075_v40 = vpop.permute.xlu0 %3442  ;;  %v3353_v20 = vsel %vm332_vm5, %v8051_v12, %v8071_v35  ;;  %v3365_v52 = vadd.f32 %v8071_v35, %v3189_v24 }
 0x33e   : > { %v3364_v2 = vadd.f32 %v3353_v20, %v3188_v25  ;;  %v3451_v61 = vadd.f32 %v8075_v40, %v3314_v34  ;;  %v3452_v10 = vadd.f32 %v8075_v40, %v3315_v11 }
 0x340   : > { %v3441_v21 = vpop.permute.xlu1 %3440 }
 0x341   : > { %v3468_v22 = vpop.permute.xlu0 %3467  ;;  %v3449_v53 = vadd.f32 %v3441_v21, %v3312_v57  ;;  %v3450_v4 = vadd.f32 %v3441_v21, %v3313_v17 }
 0x342   : > { %v3476_v15 = vadd.f32 %v3468_v22, %v3362_v6  ;;  %v3477_v9 = vadd.f32 %v3468_v22, %v3363_v37 }
 0x345   : > { %v3553_v27 = vpop.permute.xlu0 %3552 }
 0x346   : > { %v3466_v62 = vpop.permute.xlu1 %3465  ;;  %v3561_v12 = vadd.f32 %v3553_v27, %v3447_v16  ;;  %v3562_v23 = vadd.f32 %v3553_v27, %v3448_v8 }
 0x347   : > { %v3474_v33 = vadd.f32 %v3466_v62, %v3360_v14  ;;  %v3475_v41 = vadd.f32 %v3466_v62, %v3361_v47 }
 0x349   : > { %v3557_v55 = vpop.permute.xlu0 %3556 }
 0x34a   : > { %v3470_v32 = vpop.permute.xlu1 %3469  ;;  %v3565_v0 = vadd.f32 %v3557_v55, %v3451_v61  ;;  %v3566_v26 = vadd.f32 %v3557_v55, %v3452_v10 }
 0x34b   : > { %v3478_v58 = vadd.f32 %v3470_v32, %v3364_v2  ;;  %v3479_v62 = vadd.f32 %v3470_v32, %v3365_v52 }
 0x34d   : > { %v3582_v29 = vpop.permute.xlu0 %3581 }
 0x34e   : > { %v3555_v60 = vpop.permute.xlu1 %3554  ;;  %v3590_v31 = vadd.f32 %v3582_v29, %v3476_v15  ;;  %v3591_v44 = vadd.f32 %v3582_v29, %v3477_v9 }
 0x34f   : > { %v3563_v43 = vadd.f32 %v3555_v60, %v3449_v53  ;;  %v3564_v3 = vadd.f32 %v3555_v60, %v3450_v4 }
 0x351   : > { %v3596_v21 = vadd.f32 %v3590_v31, %v3563_v43  ;;  %v3597_v50 = vadd.f32 %v3591_v44, %v3564_v3 }
 0x352   : > { %v3580_v18 = vpop.permute.xlu1 %3579 }
 0x353   : > { %v3588_v54 = vadd.f32 %v3580_v18, %v3474_v33  ;;  %v3589_v22 = vadd.f32 %v3580_v18, %v3475_v41 }
 0x355   : > { %v3594_v45 = vadd.f32 %v3588_v54, %v3561_v12  ;;  %v3595_v38 = vadd.f32 %v3589_v22, %v3562_v23 }
 0x356   : > { %v3584_v7 = vpop.permute.xlu1 %3583 }
 0x357   : > { %v3592_v39 = vadd.f32 %v3584_v7, %v3478_v58  ;;  %v3593_v35 = vadd.f32 %v3584_v7, %v3479_v62 }
 0x359   : > { %v3598_v42 = vadd.f32 %v3592_v39, %v3565_v0  ;;  %v3599_v51 = vadd.f32 %v3593_v35, %v3566_v26 }
 0x35f   : > { %v3613_v27 = vpop.permute.xlu0 %3612  ;;  %v3615_v56 = vpop.permute.xlu1 %3614 }
 0x360   : > { %v3624_v49 = vsel %vm727_vm8, %v3613_v27, %v3615_v56  ;;  %v3634_v63 = vadd.f32 %v3615_v56, %v3595_v38 }
 0x361   : > { %v3633_v28 = vadd.f32 %v3624_v49, %v3594_v45 }
 0x362   : > { %v3918_v36 = vmul.f32 -1.442695, %v3634_v63 }
 0x363   : > { %v3917_v5 = vmul.f32 -1.442695, %v3633_v28 }
 0x364   : > { %4006 = vpow2.f32 %v3918_v36 }
 0x365   : > { %4008 = vpow2.f32 %v3917_v5  ;;  %v3617_v40 = vpop.permute.xlu0 %3616  ;;  %v3619_v59 = vpop.permute.xlu1 %3618 }
 0x366   : > { %v3625_v19 = vsel %vm727_vm8, %v3617_v40, %v3619_v59  ;;  %v3636_v32 = vadd.f32 %v3619_v59, %v3597_v50 }
 0x367   : > { %v3635_v25 = vadd.f32 %v3625_v19, %v3596_v21 }
 0x368   : > { %v3920_v30 = vmul.f32 -1.442695, %v3636_v32 }
 0x369   : > { %v3919_v1 = vmul.f32 -1.442695, %v3635_v25  ;;  %v3621_v46 = vpop.permute.xlu0 %3620 }
 0x36a   : > { %v3623_v13 = vpop.permute.xlu1 %3622  ;;  %4010 = vpow2.f32 %v3920_v30 }
 0x36b   : > { %v3626_v48 = vsel %vm727_vm8, %v3621_v46, %v3623_v13  ;;  %v3638_v17 = vadd.f32 %v3623_v13, %v3599_v51  ;;  %4012 = vpow2.f32 %v3919_v1 }
 0x36c   : > { %v3637_v24 = vadd.f32 %v3626_v48, %v3598_v42 }
 0x36d   : > { %v3922_v55 = vmul.f32 -1.442695, %v3638_v17 }
 0x36e   : > { %v3921_v57 = vmul.f32 -1.442695, %v3637_v24  ;;  %v4007_v11 = vpop.eup %4006 }
 0x36f   : > { %4014 = vpow2.f32 %v3922_v55  ;;  %v4009_v6 = vpop.eup %4008  ;;  %v3658_v37 = vadd.f32 1.0, %v4007_v11 }
 0x370   : > { %4016 = vpow2.f32 %v3921_v57  ;;  %v3657_v34 = vadd.f32 1.0, %v4009_v6 }
 0x371   : > { %4018 = vrcp.f32 %v3658_v37 }
 0x372   : > { %4020 = vrcp.f32 %v3657_v34 }
 0x374   : > { %v4011_v14 = vpop.eup %4010 }
 0x375   : > { %v4013_v47 = vpop.eup %4012  ;;  %v3660_v20 = vadd.f32 1.0, %v4011_v14 }
 0x376   : > { %v3659_v60 = vadd.f32 1.0, %v4013_v47 }
 0x377   : > { %4022 = vrcp.f32 %v3660_v20 }
 0x378   : > { %4024 = vrcp.f32 %v3659_v60 }
 0x379   : > { %v4015_v53 = vpop.eup %4014 }
 0x37a   : > { %v4017_v4 = vpop.eup %4016  ;;  %v3662_v15 = vadd.f32 1.0, %v4015_v53 }
 0x37b   : > { %v3661_v9 = vadd.f32 1.0, %v4017_v4  ;;  %v4019_v16 = vpop.eup %4018 }
 0x37c   : > { %4026 = vrcp.f32 %v3662_v15  ;;  %v4021_v8 = vpop.eup %4020  ;;  %3683 = vrot.lane.b32.xlu1 %v4019_v16, %s4218_s18 }
 0x37d   : > { %4028 = vrcp.f32 %v3661_v9  ;;  %3681 = vrot.lane.b32.xlu0 %v4021_v8, %s4218_s18 }
 0x381   : > { %v4023_v33 = vpop.eup %4022 }
 0x382   : > { %v4025_v41 = vpop.eup %4024  ;;  %3687 = vrot.lane.b32.xlu1 %v4023_v33, %s4218_s18 }
 0x383   : > { %3685 = vrot.lane.b32.xlu0 %v4025_v41, %s4218_s18 }
 0x386   : > { %v4027_v29 = vpop.eup %4026 }
 0x387   : > { %v4029_v43 = vpop.eup %4028  ;;  %3691 = vrot.lane.b32.xlu1 %v4027_v29, %s4218_s18 }
 0x388   : > { %3689 = vrot.lane.b32.xlu0 %v4029_v43, %s4218_s18 }
 0x3ee   : > { %v3684_v3 = vpop.permute.xlu1 %3683 }
 0x3ef   : > { %v3682_v31 = vpop.permute.xlu0 %3681 }
 0x3f0   : > { %v3694_v44 = vsel %vm3693_vm10, %v3682_v31, %v3684_v3 }
 0x3f1   : > { %3701 = vst.msk [vmem:[%s156_s12 - $0x5] sm:$0xe0] %vm3700_vm11, %v3694_v44 }
 0x3f4   : > { %v3688_v2 = vpop.permute.xlu1 %3687 }
 0x3f5   : > { %v3686_v52 = vpop.permute.xlu0 %3685 }
 0x3f6   : > { %v3695_v12 = vsel %vm3693_vm10, %v3686_v52, %v3688_v2 }
 0x3f7   : > { %3703 = vst.msk [vmem:[%s156_s12 + $0x3] sm:$0xff] %vm187_vm0, %v3695_v12 }
 0x3f9   : > { %v3692_v23 = vpop.permute.xlu1 %3691 }
 0x3fa   : > { %v3690_v18 = vpop.permute.xlu0 %3689 }
 0x3fb   : > { %v3696_v21 = vsel %vm3693_vm10, %v3690_v18, %v3692_v23 }
 0x3fc   : > { %3705 = vst.msk [vmem:[%s156_s12 + $0xb] sm:$0x1f] %vm3704_vm12, %v3696_v21 }
 0x3fd   : > { %4133 = shalt.err (!%p4130_p8)
}
 0x3fe   : > { %s4134_s6 = scalar_lea.hbm %s8156_s15, 256  ;;  %s4138_s14 = scalar_lea.hbm %s8208_s2, 512 }
 0x3ff   : > { %p4135_p7 = scmp.ne.s32.totalorder %s8156_s15, %s4134_s6  ;;  %p4139_p1 = scmp.lt.u32.totalorder %s8156_s15, %s8208_s2 }
 0x400   : > { %p4140_p4 = scmp.lt.u32.totalorder %s4138_s14, %s4134_s6  ;;  %p4142_p11 = scmp.lt.u32.totalorder %s4134_s6, %s8156_s15 }
 0x401   : > { %p4136_p10 = pnand %p4135_p7, %p9030_p12 }
 0x402   : > { %p4141_p6 = por %p4140_p4, %p4139_p1 }
 0x403   : > { %p4137_p13 = pneg %p4136_p10 }
 0x404   : > { %p4143_p0 = por %p4142_p11, %p4141_p6 }
 0x406   : > { %p4144_p3 = pnand %p4143_p0, %p4137_p13 }
 0x408   : > { %4147 = shalt.err (!%p4144_p3)
}
 0x409   : > { %s4220_s18 = smov 128   ;;  %s4221_s8 = smov 8  }
 0x40a   : > { %3932 = dma.vmem_to_hbm [thread:$0]  (%p9030_p12), %s8150_s16, 256, %s8156_s15, %s3707_s22, %s4220_s18, %s4220_s18, %s4221_s8  }
 0x40b PF: > { %s3735_s12 = sand.u32 1, %s4184_s19   ;;  %p9031_p9 = scmp.ne.s32.totalorder %s8410_s5, 0 }
 0x40c   : > { %p9032_p2 = scmp.ge.s32.totalorder %s4204_s24, 2  ;;  %s3736_s30 = scalar_lea.sflag [#allocation8], %s3735_s12 }
 0x40e   : > { %p3939_p5 = pnand %p9032_p2, %p9031_p9 }
 0x410   : > { %4179 = dma.done.wait (!%p3939_p5), %s3736_s30, 256  }
 0x411   : > { %4181 = vsyncadd (!%p3939_p5), %s3736_s30, 4294967040  ;;  %s22_s24 = sadd.s32 1, %s4204_s24   ;;  %s9033_s19 = smov %s4188_s20 }
 0x412   : > { %p19_p8 = scmp.ge.s32.totalorder %s22_s24, 4   ;;  %s9034_s20 = smov %s4192_s21 }
 0x413   : > { %s9035_s21 = smov %s4305_s4  ;;  %s9036_s22 = smov %s4200_s23 }
 0x414   : > { %s9037_s23 = smov %s9039_s26  ;;  %21 = sbr.rel (!%p19_p8) target bundleno = 18 (0x12), region = 84 }
 0x41b   :  { %3741 = vsyncpa [#allocation7], 1 }
 0x41c   :  { %3743 = vsyncpa [#allocation7 + $0x1], 1 }
 0x41d   :  { %3744 = vsyncpa [#allocation8], 1 }
 0x41e   :  { %3746 = vsyncpa [#allocation8 + $0x1], 1 }

</bundles_post_ra>
